<compile_context>
chip_gen: v5e
topology: v5e:2x2
jax: 0.10.0
libtpu: 0.0.40
codegen_flags: <defaults>
</compile_context>

<pallas_src>
import functools

import jax
import jax.numpy as jnp
from jax.experimental import pallas as pl
from jax.experimental.pallas import tpu as pltpu

EPS = 1e-5  # torch.nn.LayerNorm default


# ---------------------------------------------------------------------------
# Per-generation VMEM budget & tile sizing
# ---------------------------------------------------------------------------
@functools.lru_cache(maxsize=None)
def _vmem_limit_bytes():
    """Scoped-VMEM limit per generation: ~100 MiB on 128 MiB parts (v5e/v6e),
    48 MiB on 64 MiB parts (v7x), leaving headroom for compiler scratch."""
    cap = 64 * 1024 * 1024  # conservative fallback (v7x-like)
    try:
        cap = int(getattr(pltpu.get_tpu_info(), "vmem_capacity_bytes", cap))
    except Exception:
        pass
    if cap >= 128 * 1024 * 1024:
        return 100 * 1024 * 1024
    return 48 * 1024 * 1024


def _round_up(n, m):
    return ((n + m - 1) // m) * m


def _largest_divisor_leq(n, target):
    """Largest divisor of n that is <= target (batch-row tiling)."""
    for d in range(min(n, max(1, target)), 0, -1):
        if n % d == 0:
            return d
    return 1


def _mha_batch_tile(B, S, C, act_bytes, vmem_limit, cap=None):
    """Batch-rows per MHA grid step, sized from the actual (S, C) so the
    temporal call (tiny S) gets a large tile and the spatial call a small one."""
    per_row = (
        2 * 2 * S * C * act_bytes      # double-buffered in + out blocks
        + 3 * S * C * 4                # x / xn / out f32 working values
        + S * 3 * C * (4 + 2)          # qkv f32 + bf16 copy
        + 2 * S * S * 4                # scores + probs (one head live)
        + S * C * 2                    # bf16 context scratch
    )
    weights = 2 * (3 * C * C + C * C) * 2 + 8 * C * 4   # dbl-buffered bf16 wqkv+wo (+biases)
    usable = int(vmem_limit * 0.8) - weights
    target = max(1, usable // per_row)
    if cap is not None:
        target = min(target, cap)
    return _largest_divisor_leq(B, min(B, int(target)))


def _ffn_row_tile(M, C, act_bytes, vmem_limit, cap=None):
    """FFN rows per grid step: multiple of 16 (bf16 sublane); M is padded up
    to a tile multiple by the wrapper, so there is no whole-array fallback."""
    per_row = (
        2 * 2 * C * act_bytes          # double-buffered in + out blocks
        + 2 * C * 4                    # x / xn f32
        + 4 * C * (4 + 2)              # hidden f32 + bf16 copy
        + C * 4                        # y f32
    )
    weights = 2 * (8 * C * C) * 2 + 8 * C * 4           # dbl-buffered bf16 w1 + w2 (+biases)
    usable = int(vmem_limit * 0.8) - weights
    tm = max(16, (int(max(16, usable // per_row)) // 16) * 16)
    if cap is not None:
        tm = max(16, min(tm, (int(cap) // 16) * 16))
    return min(tm, _round_up(M, 16))


# ---------------------------------------------------------------------------
# Kernels
# ---------------------------------------------------------------------------
def _mha_kernel(x_ref, g_ref, b_ref, wqkv_ref, bqkv_ref, wo_ref, bo_ref,
                o_ref, ctx_scratch, *, n_head, add_residual):
    """Fused LayerNorm + multi-head self-attention (+ optional residual).

    x_ref:        (TB, S, C)   TB batch rows per grid step (bf16 or f32)
    g/b:          (1, C)       LayerNorm weight / bias (f32)
    wqkv:         (3C, C)      in_proj_weight, bf16, q rows pre-scaled by dh^-0.5
    bqkv:         (1, 3C)      in_proj_bias (f32, q part pre-scaled)
    wo / bo:      (C, C) bf16, (1, C) f32    out_proj
    ctx_scratch:  (TB, S, C)   bf16 VMEM scratch for the concatenated heads
    """
    x = x_ref[...].astype(jnp.float32)
    TB, S, C = x.shape
    M = TB * S
    dh = C // n_head

    g = g_ref[...].astype(jnp.float32)
    bt = b_ref[...].astype(jnp.float32)

    # LayerNorm in f32 (mirrors the fp16-safe LayerNorm subclass).
    x2 = x.reshape(M, C)
    mean = jnp.mean(x2, axis=-1, keepdims=True)
    var = jnp.mean((x2 - mean) ** 2, axis=-1, keepdims=True)
    xn = (x2 - mean) * jax.lax.rsqrt(var + EPS) * g + bt

    # Fused QKV projection: one bf16 MXU matmul (3C-wide lane-dense output),
    # f32 accumulation.  The 1/sqrt(dh) scale is already folded into wqkv/bqkv.
    qkv = jnp.einsum('mc,dc->md', xn.astype(jnp.bfloat16), wqkv_ref[...],
                     preferred_element_type=jnp.float32)
    qkv = qkv + bqkv_ref[...].astype(jnp.float32)
    qkv = qkv.astype(jnp.bfloat16).reshape(TB, S, 3 * C)   # single bf16 cast

    def head_out(h):
        qh = qkv[:, :, h * dh:(h + 1) * dh]
        kh = qkv[:, :, C + h * dh:C + (h + 1) * dh]
        vh = qkv[:, :, 2 * C + h * dh:2 * C + (h + 1) * dh]
        s = jnp.einsum('bqd,bkd->bqk', qh, kh,
                       preferred_element_type=jnp.float32)
        s = s - jnp.max(s, axis=-1, keepdims=True)
        p = jnp.exp(s)
        p = p * pl.reciprocal(jnp.sum(p, axis=-1, keepdims=True), approx=True)
        oh = jnp.einsum('bqk,bkd->bqd', p.astype(jnp.bfloat16), vh,
                        preferred_element_type=jnp.float32)
        return oh.astype(jnp.bfloat16)

    # TODO(synk): fully batching heads ((TB,S,H,dh)->(TB*H,S,dh)) requires a
    # second-minor relayout / multi-batch dot_general that Mosaic does not
    # lower reliably; instead heads are processed in pairs so each scratch
    # store is 2*dh (=128 lanes for CLIP ViT) wide, i.e. lane-dense.
    h = 0
    while h < n_head:
        if h + 1 < n_head:
            ctx_scratch[:, :, h * dh:(h + 2) * dh] = jnp.concatenate(
                [head_out(h), head_out(h + 1)], axis=-1)
            h += 2
        else:
            ctx_scratch[:, :, h * dh:(h + 1) * dh] = head_out(h)
            h += 1

    # Single output projection (K = C fills the MXU), bf16 in / f32 accum.
    out = jnp.einsum('md,cd->mc', ctx_scratch[...].reshape(M, C), wo_ref[...],
                     preferred_element_type=jnp.float32)
    out = out + bo_ref[...].astype(jnp.float32)
    if add_residual:
        out = out + x2
    o_ref[...] = out.reshape(TB, S, C).astype(o_ref.dtype)


def _ffn_kernel(x_ref, g_ref, b_ref, w1_ref, b1_ref, w2_ref, b2_ref, o_ref):
    """Fused LayerNorm + Linear(C,4C) + QuickGELU + Linear(4C,C) + residual.

    x_ref: (TM, C) tile of rows; weights bf16, biases / LN params f32.
    """
    x = x_ref[...].astype(jnp.float32)            # (TM, C)
    g = g_ref[...].astype(jnp.float32)
    bt = b_ref[...].astype(jnp.float32)

    mean = jnp.mean(x, axis=-1, keepdims=True)
    var = jnp.mean((x - mean) ** 2, axis=-1, keepdims=True)
    xn = (x - mean) * jax.lax.rsqrt(var + EPS) * g + bt

    h = jnp.einsum('mc,dc->md', xn.astype(jnp.bfloat16), w1_ref[...],
                   preferred_element_type=jnp.float32)
    h = h + b1_ref[...].astype(jnp.float32)
    h = h * jax.nn.sigmoid(1.702 * h)             # QuickGELU in f32
    y = jnp.einsum('md,cd->mc', h.astype(jnp.bfloat16), w2_ref[...],
                   preferred_element_type=jnp.float32)
    y = y + b2_ref[...].astype(jnp.float32)
    o_ref[...] = (x + y).astype(o_ref.dtype)      # residual fused in-kernel


# ---------------------------------------------------------------------------
# Pallas wrappers
# ---------------------------------------------------------------------------
def mha_block(x, ln_g, ln_b, wqkv, bqkv, wo, bo, n_head, *,
              add_residual=False, max_batch_rows=None):
    """x: (B, S, C) batch-first.  Returns (x +) MHA(LN(x)), same shape/dtype."""
    B, S, C = x.shape
    dh = C // n_head
    vlimit = _vmem_limit_bytes()
    act_bytes = jnp.dtype(x.dtype).itemsize
    TB = _mha_batch_tile(B, S, C, act_bytes, vlimit, cap=max_batch_rows)

    # Fold 1/sqrt(dh) into the q rows of the in-projection weight + bias so the
    # kernel never multiplies the (M, C) q block by the scale.
    scale = float(dh) ** -0.5
    wqkv_s = jnp.concatenate([wqkv[:C] * scale, wqkv[C:]],
                             axis=0).astype(jnp.bfloat16)
    bqkv_s = jnp.concatenate([bqkv[:, :C] * scale, bqkv[:, C:]], axis=1)

    kernel = functools.partial(_mha_kernel, n_head=n_head,
                               add_residual=add_residual)
    # TODO(synk): on v7x, single-buffer the constant weight blocks
    # (pipeline_mode=pl.Buffered(1)) to halve their VMEM footprint once that
    # path is validated on the target jax/Mosaic version; the tile sizing
    # above already accounts for the double-buffered footprint.
    return pl.pallas_call(
        kernel,
        out_shape=jax.ShapeDtypeStruct((B, S, C), x.dtype),
        grid=(B // TB,),
        in_specs=[
            pl.BlockSpec((TB, S, C), lambda b: (b, 0, 0)),
            pl.BlockSpec((1, C), lambda b: (0, 0)),
            pl.BlockSpec((1, C), lambda b: (0, 0)),
            pl.BlockSpec((3 * C, C), lambda b: (0, 0)),
            pl.BlockSpec((1, 3 * C), lambda b: (0, 0)),
            pl.BlockSpec((C, C), lambda b: (0, 0)),
            pl.BlockSpec((1, C), lambda b: (0, 0)),
        ],
        out_specs=pl.BlockSpec((TB, S, C), lambda b: (b, 0, 0)),
        scratch_shapes=[pltpu.VMEM((TB, S, C), jnp.bfloat16)],
        compiler_params=pltpu.CompilerParams(
            dimension_semantics=("parallel",),
            vmem_limit_bytes=vlimit),
    )(x, ln_g, ln_b, wqkv_s, bqkv_s, wo.astype(jnp.bfloat16), bo)


def ffn_block(x2d, ln_g, ln_b, w1, b1, w2, b2, *, max_rows=None):
    """x2d: (M, C).  Returns x + MLP(LN(x)), tiled over rows (parallel grid).
    Rows are padded up to a multiple of the tile (no whole-array fallback)."""
    M, C = x2d.shape
    vlimit = _vmem_limit_bytes()
    act_bytes = jnp.dtype(x2d.dtype).itemsize
    TM = _ffn_row_tile(M, C, act_bytes, vlimit, cap=max_rows)
    Mp = _round_up(M, TM)
    xp = x2d if Mp == M else jnp.pad(x2d, ((0, Mp - M), (0, 0)))
    out = pl.pallas_call(
        _ffn_kernel,
        out_shape=jax.ShapeDtypeStruct((Mp, C), x2d.dtype),
        grid=(Mp // TM,),
        in_specs=[
            pl.BlockSpec((TM, C), lambda i: (i, 0)),
            pl.BlockSpec((1, C), lambda i: (0, 0)),
            pl.BlockSpec((1, C), lambda i: (0, 0)),
            pl.BlockSpec((4 * C, C), lambda i: (0, 0)),
            pl.BlockSpec((1, 4 * C), lambda i: (0, 0)),
            pl.BlockSpec((C, 4 * C), lambda i: (0, 0)),
            pl.BlockSpec((1, C), lambda i: (0, 0)),
        ],
        out_specs=pl.BlockSpec((TM, C), lambda i: (i, 0)),
        compiler_params=pltpu.CompilerParams(
            dimension_semantics=("parallel",),
            vmem_limit_bytes=vlimit),
    )(xp, ln_g, ln_b,
      w1.astype(jnp.bfloat16), b1, w2.astype(jnp.bfloat16), b2)
    return out if Mp == M else out[:M]


# ---------------------------------------------------------------------------
# Pure-JAX f32 reference (same math, for correctness check only)
# ---------------------------------------------------------------------------
def ref_mha(x, ln_g, ln_b, wqkv, bqkv, wo, bo, n_head, *,
            add_residual=False, **_):
    x = x.astype(jnp.float32)
    B, S, C = x.shape
    dh = C // n_head
    mean = x.mean(-1, keepdims=True)
    var = ((x - mean) ** 2).mean(-1, keepdims=True)
    xn = (x - mean) * jax.lax.rsqrt(var + EPS) * ln_g[None] + ln_b[None]
    qkv = jnp.einsum('bsc,dc->bsd', xn, wqkv) + bqkv[0][None, None]
    q, k, v = qkv[..., :C], qkv[..., C:2 * C], qkv[..., 2 * C:]

    def split(t):
        return t.reshape(B, S, n_head, dh).transpose(0, 2, 1, 3)

    qh, kh, vh = split(q) * (dh ** -0.5), split(k), split(v)
    s = jnp.einsum('bhqd,bhkd->bhqk', qh, kh)
    p = jax.nn.softmax(s, axis=-1)
    o = jnp.einsum('bhqk,bhkd->bhqd', p, vh).transpose(0, 2, 1, 3).reshape(B, S, C)
    out = jnp.einsum('bsd,cd->bsc', o, wo) + bo[0][None, None]
    return x + out if add_residual else out


def ref_ffn(x2d, ln_g, ln_b, w1, b1, w2, b2, **_):
    x = x2d.astype(jnp.float32)
    mean = x.mean(-1, keepdims=True)
    var = ((x - mean) ** 2).mean(-1, keepdims=True)
    xn = (x - mean) * jax.lax.rsqrt(var + EPS) * ln_g + ln_b
    h = jnp.einsum('mc,dc->md', xn, w1) + b1
    h = h * jax.nn.sigmoid(1.702 * h)
    return x + jnp.einsum('md,cd->mc', h, w2) + b2


# ---------------------------------------------------------------------------
# ResidualAttentionBlock / Transformer forward (JAX glue around the kernels)
# ---------------------------------------------------------------------------
def resblock_forward(x, p, T, n_head, mha_fn, ffn_fn):
    # x: (1 + L*T, N, C) seq-first.  drop_path rate == 0 -> identity.
    LT1, N, C = x.shape
    L = (LT1 - 1) // T

    # ---- temporal attention on x[1:] rearranged '(l t) n c -> t (n l) c'.
    # Residual add is fused into the kernel (addition commutes with the
    # rearrange permutation), so the output rearranged back IS xt.
    xt_r = x[1:].reshape(L, T, N, C).transpose(1, 2, 0, 3).reshape(T, N * L, C)
    yt = mha_fn(xt_r.transpose(1, 0, 2),             # (N*L, T, C) batch-first
                p['ln_t_g'], p['ln_t_b'],
                p['attn_t_wqkv'], p['attn_t_bqkv'],
                p['attn_t_wo'], p['attn_t_bo'], n_head, add_residual=True)
    yt = yt.transpose(1, 0, 2)                       # (T, N*L, C)
    # 't (n l) c -> (l t) n c'
    xt = yt.reshape(T, N, L, C).transpose(2, 0, 1, 3).reshape(L * T, N, C)

    # ---- spatial attention with shared cls token
    # TODO(synk): these rearranges are plain-JAX HBM passes; folding them into
    # BlockSpec index_maps (grid over (t, n)) would remove the extra traffic.
    init_cls = x[:1]                                  # (1, N, C)
    cls_token = jnp.tile(init_cls, (1, T, 1))         # (1, T*N, C)
    xs = xt.reshape(L, T, N, C).reshape(L, T * N, C)  # '(l t) n c -> l (t n) c'
    xs = jnp.concatenate([cls_token, xs], axis=0)     # (1+L, T*N, C)
    ys = mha_fn(xs.transpose(1, 0, 2),                # (T*N, 1+L, C)
                p['ln_1_g'], p['ln_1_b'],
                p['attn_wqkv'], p['attn_bqkv'],
                p['attn_wo'], p['attn_bo'], n_head, add_residual=False)
    ys = ys.transpose(1, 0, 2)                        # (1+L, T*N, C)
    cls_tok = (ys[0].reshape(T, N, C).astype(jnp.float32)
               .mean(axis=0, keepdims=True).astype(ys.dtype))          # (1, N, C)
    res_sp = ys[1:].reshape(L, T, N, C).reshape(L * T, N, C)           # 'l (t n) c -> (l t) n c'
    x = x + jnp.concatenate([cls_tok, res_sp], axis=0)

    # ---- MLP (LN + Linear + QuickGELU + Linear + residual) fused in one kernel
    M = x.shape[0] * x.shape[1]
    x = ffn_fn(x.reshape(M, C), p['ln_2_g'], p['ln_2_b'],
               p['w1'], p['b1'], p['w2'], p['b2']).reshape(x.shape)
    return x


def transformer_forward(x, blocks, T, n_head, return_num, mha_fn, ffn_fn):
    features = []
    layers = len(blocks)
    for i, p in enumerate(blocks):
        x = resblock_forward(x, p, T, n_head, mha_fn, ffn_fn)
        if i >= layers - return_num:
            LT, N, C = x.shape
            L = (LT - 1) // T
            cls_x = jnp.tile(x[:1][:, :, None, :], (1, 1, T, 1))       # (1, N, T, C)
            tmp_x = x[1:].reshape(L, T, N, C).transpose(0, 2, 1, 3)    # (L, N, T, C)
            features.append(jnp.concatenate([cls_x, tmp_x], axis=0))
    return features


# ---------------------------------------------------------------------------
# Deterministic parameter init (mirrors ResidualAttentionBlock.__init__)
# ---------------------------------------------------------------------------
def init_block_params(key, C):
    ks = jax.random.split(key, 4)
    f32 = jnp.float32
    return {
        # temporal attention: the module hard-codes this init ("Init zero for (2+1)d")
        'ln_t_g': jnp.ones((1, C), f32), 'ln_t_b': jnp.zeros((1, C), f32),
        'attn_t_wqkv': jnp.zeros((3 * C, C), f32),
        'attn_t_bqkv': jnp.zeros((1, 3 * C), f32),
        'attn_t_wo': jnp.ones((C, C), f32),
        'attn_t_bo': jnp.zeros((1, C), f32),
        # spatial attention: deterministic random (stands in for default init)
        'ln_1_g': jnp.ones((1, C), f32), 'ln_1_b': jnp.zeros((1, C), f32),
        'attn_wqkv': 0.02 * jax.random.normal(ks[0], (3 * C, C), f32),
        'attn_bqkv': jnp.zeros((1, 3 * C), f32),
        'attn_wo': 0.02 * jax.random.normal(ks[1], (C, C), f32),
        'attn_bo': jnp.zeros((1, C), f32),
        # MLP
        'ln_2_g': jnp.ones((1, C), f32), 'ln_2_b': jnp.zeros((1, C), f32),
        'w1': 0.02 * jax.random.normal(ks[2], (4 * C, C), f32),
        'b1': jnp.zeros((1, 4 * C), f32),
        'w2': 0.02 * jax.random.normal(ks[3], (C, 4 * C), f32),
        'b2': jnp.zeros((1, C), f32),
    }


# TODO(synk): constructor arg `attn_mask` is not wired through (it is None in
# this Transformer configuration); DropPath is identity since drop_path_rate=0.

if __name__ == "__main__":
    C, heads, layers = 64, 4, 2
    T, L, N = 4, 4, 8            # temporal frames, spatial patches, batch
    return_num = 2

    key = jax.random.PRNGKey(0)
    kx, kp = jax.random.split(key)
    x = jax.random.normal(kx, (1 + L * T, N, C), jnp.float32)
    pkeys = jax.random.split(kp, layers)
    params = [init_block_params(pkeys[i], C) for i in range(layers)]

    # Small caps so the demo exercises multi-step pipelined grids and the FFN
    # row-padding path; in production leave both unset so tiles are sized
    # automatically per TPU generation (large tiles on v5e/v6e, VMEM-bounded
    # tiles on v7x, and a much larger batch tile for the tiny-S temporal call).
    mha_fn = functools.partial(mha_block, max_batch_rows=8)
    ffn_fn = functools.partial(ffn_block, max_rows=64)

    # bf16 activation carry between kernels (LN/softmax/GELU stay f32 inside).
    x_bf = x.astype(jnp.bfloat16)
    feats = transformer_forward(x_bf, params, T, heads, return_num, mha_fn, ffn_fn)
    feats = jax.block_until_ready(feats)

    feats_ref = transformer_forward(x, params, T, heads, return_num,
                                    ref_mha, ref_ffn)
    for a, b in zip(feats, feats_ref):
        a = a.astype(jnp.float32)
        err = float(jnp.max(jnp.abs(a - b)))
        ref_mag = float(jnp.max(jnp.abs(b)))
        # Tolerance budget: bf16 activation carry across ~8 kernel boundaries
        # (~1e-2 of max) + bf16 MXU operands + approx reciprocal; real kernel
        # bugs produce O(1) errors, far above this threshold.
        assert err < 5e-2 * max(ref_mag, 1.0), \
            f"mismatch vs reference: abs={err} ref_mag={ref_mag}"

    print("KERNEL_OK")
</pallas_src>

<mosaic_0001>
module attributes {stable_mosaic.version = 11 : i64} {
  func.func @_mha_kernel(%arg0: i32, %arg1: memref<8x4x64xbf16, #tpu.memory_space<vmem>>, %arg2: memref<1x64xf32, #tpu.memory_space<vmem>>, %arg3: memref<1x64xf32, #tpu.memory_space<vmem>>, %arg4: memref<192x64xbf16, #tpu.memory_space<vmem>>, %arg5: memref<1x192xf32, #tpu.memory_space<vmem>>, %arg6: memref<64x64xbf16, #tpu.memory_space<vmem>>, %arg7: memref<1x64xf32, #tpu.memory_space<vmem>>, %arg8: memref<8x4x64xbf16, #tpu.memory_space<vmem>>, %arg9: memref<8x4x64xbf16, #tpu.memory_space<vmem>>) attributes {dimension_semantics = [#tpu.dimension_semantics<parallel>], iteration_bounds = array<i64: 4>, scalar_prefetch = 0 : i64, scratch_operands = 1 : i64, tpu.core_type = #tpu.core_type<tc>, window_params = [{transform_indices = @transform_0, window_bounds = array<i64: 8, 4, 64>}, {pipeline_mode = #tpu.pipeline_mode<synchronous>, transform_indices = @transform_1, window_bounds = array<i64: 1, 64>}, {pipeline_mode = #tpu.pipeline_mode<synchronous>, transform_indices = @transform_2, window_bounds = array<i64: 1, 64>}, {pipeline_mode = #tpu.pipeline_mode<synchronous>, transform_indices = @transform_3, window_bounds = array<i64: 192, 64>}, {pipeline_mode = #tpu.pipeline_mode<synchronous>, transform_indices = @transform_4, window_bounds = array<i64: 1, 192>}, {pipeline_mode = #tpu.pipeline_mode<synchronous>, transform_indices = @transform_5, window_bounds = array<i64: 64, 64>}, {pipeline_mode = #tpu.pipeline_mode<synchronous>, transform_indices = @transform_6, window_bounds = array<i64: 1, 64>}, {transform_indices = @transform_7, window_bounds = array<i64: 8, 4, 64>}]} {
    %c0 = arith.constant 0 : index
    %c0_0 = arith.constant 0 : index
    %c0_1 = arith.constant 0 : index
    %0 = vector.load %arg1[%c0, %c0_0, %c0_1] : memref<8x4x64xbf16, #tpu.memory_space<vmem>>, vector<8x4x64xbf16>
    %1 = arith.extf %0 : vector<8x4x64xbf16> to vector<8x4x64xf32>
    %c0_2 = arith.constant 0 : index
    %c0_3 = arith.constant 0 : index
    %2 = vector.load %arg2[%c0_2, %c0_3] : memref<1x64xf32, #tpu.memory_space<vmem>>, vector<1x64xf32>
    %c0_4 = arith.constant 0 : index
    %c0_5 = arith.constant 0 : index
    %3 = vector.load %arg3[%c0_4, %c0_5] : memref<1x64xf32, #tpu.memory_space<vmem>>, vector<1x64xf32>
    %4 = vector.shape_cast %1 : vector<8x4x64xf32> to vector<32x64xf32>
    %cst = arith.constant dense<0.000000e+00> : vector<32xf32>
    %5 = vector.multi_reduction <add>, %4, %cst [1] : vector<32x64xf32> to vector<32xf32>
    %6 = vector.shape_cast %5 : vector<32xf32> to vector<32x1xf32>
    %cst_6 = arith.constant 6.400000e+01 : f32
    %7 = vector.broadcast %cst_6 : f32 to vector<32x1xf32>
    %8 = arith.divf %6, %7 : vector<32x1xf32>
    %9 = vector.broadcast %8 : vector<32x1xf32> to vector<32x64xf32>
    %10 = arith.subf %4, %9 : vector<32x64xf32>
    %11 = arith.mulf %10, %10 : vector<32x64xf32>
    %cst_7 = arith.constant dense<0.000000e+00> : vector<32xf32>
    %12 = vector.multi_reduction <add>, %11, %cst_7 [1] : vector<32x64xf32> to vector<32xf32>
    %13 = vector.shape_cast %12 : vector<32xf32> to vector<32x1xf32>
    %cst_8 = arith.constant 6.400000e+01 : f32
    %14 = vector.broadcast %cst_8 : f32 to vector<32x1xf32>
    %15 = arith.divf %13, %14 : vector<32x1xf32>
    %16 = vector.broadcast %8 : vector<32x1xf32> to vector<32x64xf32>
    %17 = arith.subf %4, %16 : vector<32x64xf32>
    %cst_9 = arith.constant 9.99999974E-6 : f32
    %18 = vector.broadcast %cst_9 : f32 to vector<32x1xf32>
    %19 = arith.addf %15, %18 : vector<32x1xf32>
    %20 = math.rsqrt %19 : vector<32x1xf32>
    %21 = vector.broadcast %20 : vector<32x1xf32> to vector<32x64xf32>
    %22 = arith.mulf %17, %21 : vector<32x64xf32>
    %23 = vector.broadcast %2 : vector<1x64xf32> to vector<32x64xf32>
    %24 = arith.mulf %22, %23 : vector<32x64xf32>
    %25 = vector.broadcast %3 : vector<1x64xf32> to vector<32x64xf32>
    %26 = arith.addf %24, %25 : vector<32x64xf32>
    %27 = arith.truncf %26 : vector<32x64xf32> to vector<32x64xbf16>
    %c0_10 = arith.constant 0 : index
    %c0_11 = arith.constant 0 : index
    %28 = vector.load %arg4[%c0_10, %c0_11] : memref<192x64xbf16, #tpu.memory_space<vmem>>, vector<192x64xbf16>
    "tpu.trace_start"() <{level = 10 : i32, message = "mc,dc->md"}> : () -> ()
    %cst_12 = arith.constant dense<0.000000e+00> : vector<32x192xf32>
    %29 = tpu.matmul %27, %28, %cst_12 {dimension_numbers = #tpu.dot_dimension_numbers<[1], [1], [0], [0], [0, 0, 1, 0], [], []>} : vector<32x64xbf16>, vector<192x64xbf16>, vector<32x192xf32> -> vector<32x192xf32>
    "tpu.trace_stop"() : () -> ()
    %c0_13 = arith.constant 0 : index
    %c0_14 = arith.constant 0 : index
    %30 = vector.load %arg5[%c0_13, %c0_14] : memref<1x192xf32, #tpu.memory_space<vmem>>, vector<1x192xf32>
    %31 = vector.broadcast %30 : vector<1x192xf32> to vector<32x192xf32>
    %32 = arith.addf %29, %31 : vector<32x192xf32>
    %33 = arith.truncf %32 : vector<32x192xf32> to vector<32x192xbf16>
    %34 = vector.shape_cast %33 : vector<32x192xbf16> to vector<8x4x192xbf16>
    %35 = vector.extract_strided_slice %34 {offsets = [0, 0, 0], sizes = [8, 4, 16], strides = [1, 1, 1]} : vector<8x4x192xbf16> to vector<8x4x16xbf16>
    %36 = vector.extract_strided_slice %34 {offsets = [0, 0, 64], sizes = [8, 4, 16], strides = [1, 1, 1]} : vector<8x4x192xbf16> to vector<8x4x16xbf16>
    %37 = vector.extract_strided_slice %34 {offsets = [0, 0, 128], sizes = [8, 4, 16], strides = [1, 1, 1]} : vector<8x4x192xbf16> to vector<8x4x16xbf16>
    "tpu.trace_start"() <{level = 10 : i32, message = "bqd,bkd->bqk"}> : () -> ()
    %cst_15 = arith.constant dense<0.000000e+00> : vector<8x4x4xf32>
    %38 = tpu.matmul %35, %36, %cst_15 {dimension_numbers = #tpu.dot_dimension_numbers<[2], [2], [1], [1], [0, 0, 0, 1, 1, 1], [0], [0]>} : vector<8x4x16xbf16>, vector<8x4x16xbf16>, vector<8x4x4xf32> -> vector<8x4x4xf32>
    "tpu.trace_stop"() : () -> ()
    %cst_16 = arith.constant dense<0xFF800000> : vector<8x4xf32>
    %39 = vector.multi_reduction <maximumf>, %38, %cst_16 [2] : vector<8x4x4xf32> to vector<8x4xf32>
    %40 = vector.shape_cast %39 : vector<8x4xf32> to vector<8x4x1xf32>
    %41 = vector.broadcast %40 : vector<8x4x1xf32> to vector<8x4x4xf32>
    %42 = arith.subf %38, %41 : vector<8x4x4xf32>
    %43 = math.exp %42 : vector<8x4x4xf32>
    %cst_17 = arith.constant dense<0.000000e+00> : vector<8x4xf32>
    %44 = vector.multi_reduction <add>, %43, %cst_17 [2] : vector<8x4x4xf32> to vector<8x4xf32>
    %45 = vector.shape_cast %44 : vector<8x4xf32> to vector<8x4x1xf32>
    %46 = tpu.reciprocal %45 {approx = true} : vector<8x4x1xf32> -> vector<8x4x1xf32>
    %47 = vector.broadcast %46 : vector<8x4x1xf32> to vector<8x4x4xf32>
    %48 = arith.mulf %43, %47 : vector<8x4x4xf32>
    %49 = arith.truncf %48 : vector<8x4x4xf32> to vector<8x4x4xbf16>
    "tpu.trace_start"() <{level = 10 : i32, message = "bqk,bkd->bqd"}> : () -> ()
    %cst_18 = arith.constant dense<0.000000e+00> : vector<8x4x16xf32>
    %50 = tpu.matmul %49, %37, %cst_18 {dimension_numbers = #tpu.dot_dimension_numbers<[2], [1], [1], [2], [0, 0, 0, 1, 1, 2], [0], [0]>} : vector<8x4x4xbf16>, vector<8x4x16xbf16>, vector<8x4x16xf32> -> vector<8x4x16xf32>
    "tpu.trace_stop"() : () -> ()
    %51 = arith.truncf %50 : vector<8x4x16xf32> to vector<8x4x16xbf16>
    %52 = vector.extract_strided_slice %34 {offsets = [0, 0, 16], sizes = [8, 4, 16], strides = [1, 1, 1]} : vector<8x4x192xbf16> to vector<8x4x16xbf16>
    %53 = vector.extract_strided_slice %34 {offsets = [0, 0, 80], sizes = [8, 4, 16], strides = [1, 1, 1]} : vector<8x4x192xbf16> to vector<8x4x16xbf16>
    %54 = vector.extract_strided_slice %34 {offsets = [0, 0, 144], sizes = [8, 4, 16], strides = [1, 1, 1]} : vector<8x4x192xbf16> to vector<8x4x16xbf16>
    "tpu.trace_start"() <{level = 10 : i32, message = "bqd,bkd->bqk"}> : () -> ()
    %cst_19 = arith.constant dense<0.000000e+00> : vector<8x4x4xf32>
    %55 = tpu.matmul %52, %53, %cst_19 {dimension_numbers = #tpu.dot_dimension_numbers<[2], [2], [1], [1], [0, 0, 0, 1, 1, 1], [0], [0]>} : vector<8x4x16xbf16>, vector<8x4x16xbf16>, vector<8x4x4xf32> -> vector<8x4x4xf32>
    "tpu.trace_stop"() : () -> ()
    %cst_20 = arith.constant dense<0xFF800000> : vector<8x4xf32>
    %56 = vector.multi_reduction <maximumf>, %55, %cst_20 [2] : vector<8x4x4xf32> to vector<8x4xf32>
    %57 = vector.shape_cast %56 : vector<8x4xf32> to vector<8x4x1xf32>
    %58 = vector.broadcast %57 : vector<8x4x1xf32> to vector<8x4x4xf32>
    %59 = arith.subf %55, %58 : vector<8x4x4xf32>
    %60 = math.exp %59 : vector<8x4x4xf32>
    %cst_21 = arith.constant dense<0.000000e+00> : vector<8x4xf32>
    %61 = vector.multi_reduction <add>, %60, %cst_21 [2] : vector<8x4x4xf32> to vector<8x4xf32>
    %62 = vector.shape_cast %61 : vector<8x4xf32> to vector<8x4x1xf32>
    %63 = tpu.reciprocal %62 {approx = true} : vector<8x4x1xf32> -> vector<8x4x1xf32>
    %64 = vector.broadcast %63 : vector<8x4x1xf32> to vector<8x4x4xf32>
    %65 = arith.mulf %60, %64 : vector<8x4x4xf32>
    %66 = arith.truncf %65 : vector<8x4x4xf32> to vector<8x4x4xbf16>
    "tpu.trace_start"() <{level = 10 : i32, message = "bqk,bkd->bqd"}> : () -> ()
    %cst_22 = arith.constant dense<0.000000e+00> : vector<8x4x16xf32>
    %67 = tpu.matmul %66, %54, %cst_22 {dimension_numbers = #tpu.dot_dimension_numbers<[2], [1], [1], [2], [0, 0, 0, 1, 1, 2], [0], [0]>} : vector<8x4x4xbf16>, vector<8x4x16xbf16>, vector<8x4x16xf32> -> vector<8x4x16xf32>
    "tpu.trace_stop"() : () -> ()
    %68 = arith.truncf %67 : vector<8x4x16xf32> to vector<8x4x16xbf16>
    %69 = tpu.concatenate %51, %68 in 2 : vector<8x4x16xbf16>, vector<8x4x16xbf16> -> vector<8x4x32xbf16>
    %c0_23 = arith.constant 0 : index
    %c0_24 = arith.constant 0 : index
    %c0_25 = arith.constant 0 : index
    %70 = vector.load %arg9[%c0_23, %c0_24, %c0_25] : memref<8x4x64xbf16, #tpu.memory_space<vmem>>, vector<8x4x32xbf16>
    tpu.vector_store %arg9[%c0_23, %c0_24, %c0_25], %69 {strides = array<i32>} : memref<8x4x64xbf16, #tpu.memory_space<vmem>>, vector<8x4x32xbf16>,
    %71 = vector.extract_strided_slice %34 {offsets = [0, 0, 32], sizes = [8, 4, 16], strides = [1, 1, 1]} : vector<8x4x192xbf16> to vector<8x4x16xbf16>
    %72 = vector.extract_strided_slice %34 {offsets = [0, 0, 96], sizes = [8, 4, 16], strides = [1, 1, 1]} : vector<8x4x192xbf16> to vector<8x4x16xbf16>
    %73 = vector.extract_strided_slice %34 {offsets = [0, 0, 160], sizes = [8, 4, 16], strides = [1, 1, 1]} : vector<8x4x192xbf16> to vector<8x4x16xbf16>
    "tpu.trace_start"() <{level = 10 : i32, message = "bqd,bkd->bqk"}> : () -> ()
    %cst_26 = arith.constant dense<0.000000e+00> : vector<8x4x4xf32>
    %74 = tpu.matmul %71, %72, %cst_26 {dimension_numbers = #tpu.dot_dimension_numbers<[2], [2], [1], [1], [0, 0, 0, 1, 1, 1], [0], [0]>} : vector<8x4x16xbf16>, vector<8x4x16xbf16>, vector<8x4x4xf32> -> vector<8x4x4xf32>
    "tpu.trace_stop"() : () -> ()
    %cst_27 = arith.constant dense<0xFF800000> : vector<8x4xf32>
    %75 = vector.multi_reduction <maximumf>, %74, %cst_27 [2] : vector<8x4x4xf32> to vector<8x4xf32>
    %76 = vector.shape_cast %75 : vector<8x4xf32> to vector<8x4x1xf32>
    %77 = vector.broadcast %76 : vector<8x4x1xf32> to vector<8x4x4xf32>
    %78 = arith.subf %74, %77 : vector<8x4x4xf32>
    %79 = math.exp %78 : vector<8x4x4xf32>
    %cst_28 = arith.constant dense<0.000000e+00> : vector<8x4xf32>
    %80 = vector.multi_reduction <add>, %79, %cst_28 [2] : vector<8x4x4xf32> to vector<8x4xf32>
    %81 = vector.shape_cast %80 : vector<8x4xf32> to vector<8x4x1xf32>
    %82 = tpu.reciprocal %81 {approx = true} : vector<8x4x1xf32> -> vector<8x4x1xf32>
    %83 = vector.broadcast %82 : vector<8x4x1xf32> to vector<8x4x4xf32>
    %84 = arith.mulf %79, %83 : vector<8x4x4xf32>
    %85 = arith.truncf %84 : vector<8x4x4xf32> to vector<8x4x4xbf16>
    "tpu.trace_start"() <{level = 10 : i32, message = "bqk,bkd->bqd"}> : () -> ()
    %cst_29 = arith.constant dense<0.000000e+00> : vector<8x4x16xf32>
    %86 = tpu.matmul %85, %73, %cst_29 {dimension_numbers = #tpu.dot_dimension_numbers<[2], [1], [1], [2], [0, 0, 0, 1, 1, 2], [0], [0]>} : vector<8x4x4xbf16>, vector<8x4x16xbf16>, vector<8x4x16xf32> -> vector<8x4x16xf32>
    "tpu.trace_stop"() : () -> ()
    %87 = arith.truncf %86 : vector<8x4x16xf32> to vector<8x4x16xbf16>
    %88 = vector.extract_strided_slice %34 {offsets = [0, 0, 48], sizes = [8, 4, 16], strides = [1, 1, 1]} : vector<8x4x192xbf16> to vector<8x4x16xbf16>
    %89 = vector.extract_strided_slice %34 {offsets = [0, 0, 112], sizes = [8, 4, 16], strides = [1, 1, 1]} : vector<8x4x192xbf16> to vector<8x4x16xbf16>
    %90 = vector.extract_strided_slice %34 {offsets = [0, 0, 176], sizes = [8, 4, 16], strides = [1, 1, 1]} : vector<8x4x192xbf16> to vector<8x4x16xbf16>
    "tpu.trace_start"() <{level = 10 : i32, message = "bqd,bkd->bqk"}> : () -> ()
    %cst_30 = arith.constant dense<0.000000e+00> : vector<8x4x4xf32>
    %91 = tpu.matmul %88, %89, %cst_30 {dimension_numbers = #tpu.dot_dimension_numbers<[2], [2], [1], [1], [0, 0, 0, 1, 1, 1], [0], [0]>} : vector<8x4x16xbf16>, vector<8x4x16xbf16>, vector<8x4x4xf32> -> vector<8x4x4xf32>
    "tpu.trace_stop"() : () -> ()
    %cst_31 = arith.constant dense<0xFF800000> : vector<8x4xf32>
    %92 = vector.multi_reduction <maximumf>, %91, %cst_31 [2] : vector<8x4x4xf32> to vector<8x4xf32>
    %93 = vector.shape_cast %92 : vector<8x4xf32> to vector<8x4x1xf32>
    %94 = vector.broadcast %93 : vector<8x4x1xf32> to vector<8x4x4xf32>
    %95 = arith.subf %91, %94 : vector<8x4x4xf32>
    %96 = math.exp %95 : vector<8x4x4xf32>
    %cst_32 = arith.constant dense<0.000000e+00> : vector<8x4xf32>
    %97 = vector.multi_reduction <add>, %96, %cst_32 [2] : vector<8x4x4xf32> to vector<8x4xf32>
    %98 = vector.shape_cast %97 : vector<8x4xf32> to vector<8x4x1xf32>
    %99 = tpu.reciprocal %98 {approx = true} : vector<8x4x1xf32> -> vector<8x4x1xf32>
    %100 = vector.broadcast %99 : vector<8x4x1xf32> to vector<8x4x4xf32>
    %101 = arith.mulf %96, %100 : vector<8x4x4xf32>
    %102 = arith.truncf %101 : vector<8x4x4xf32> to vector<8x4x4xbf16>
    "tpu.trace_start"() <{level = 10 : i32, message = "bqk,bkd->bqd"}> : () -> ()
    %cst_33 = arith.constant dense<0.000000e+00> : vector<8x4x16xf32>
    %103 = tpu.matmul %102, %90, %cst_33 {dimension_numbers = #tpu.dot_dimension_numbers<[2], [1], [1], [2], [0, 0, 0, 1, 1, 2], [0], [0]>} : vector<8x4x4xbf16>, vector<8x4x16xbf16>, vector<8x4x16xf32> -> vector<8x4x16xf32>
    "tpu.trace_stop"() : () -> ()
    %104 = arith.truncf %103 : vector<8x4x16xf32> to vector<8x4x16xbf16>
    %105 = tpu.concatenate %87, %104 in 2 : vector<8x4x16xbf16>, vector<8x4x16xbf16> -> vector<8x4x32xbf16>
    %c0_34 = arith.constant 0 : index
    %c0_35 = arith.constant 0 : index
    %c32 = arith.constant 32 : index
    %106 = vector.load %arg9[%c0_34, %c0_35, %c32] : memref<8x4x64xbf16, #tpu.memory_space<vmem>>, vector<8x4x32xbf16>
    tpu.vector_store %arg9[%c0_34, %c0_35, %c32], %105 {strides = array<i32>} : memref<8x4x64xbf16, #tpu.memory_space<vmem>>, vector<8x4x32xbf16>,
    %c0_36 = arith.constant 0 : index
    %c0_37 = arith.constant 0 : index
    %c0_38 = arith.constant 0 : index
    %107 = vector.load %arg9[%c0_36, %c0_37, %c0_38] : memref<8x4x64xbf16, #tpu.memory_space<vmem>>, vector<8x4x64xbf16>
    %108 = vector.shape_cast %107 : vector<8x4x64xbf16> to vector<32x64xbf16>
    %c0_39 = arith.constant 0 : index
    %c0_40 = arith.constant 0 : index
    %109 = vector.load %arg6[%c0_39, %c0_40] : memref<64x64xbf16, #tpu.memory_space<vmem>>, vector<64x64xbf16>
    "tpu.trace_start"() <{level = 10 : i32, message = "md,cd->mc"}> : () -> ()
    %cst_41 = arith.constant dense<0.000000e+00> : vector<32x64xf32>
    %110 = tpu.matmul %108, %109, %cst_41 {dimension_numbers = #tpu.dot_dimension_numbers<[1], [1], [0], [0], [0, 0, 1, 0], [], []>} : vector<32x64xbf16>, vector<64x64xbf16>, vector<32x64xf32> -> vector<32x64xf32>
    "tpu.trace_stop"() : () -> ()
    %c0_42 = arith.constant 0 : index
    %c0_43 = arith.constant 0 : index
    %111 = vector.load %arg7[%c0_42, %c0_43] : memref<1x64xf32, #tpu.memory_space<vmem>>, vector<1x64xf32>
    %112 = vector.broadcast %111 : vector<1x64xf32> to vector<32x64xf32>
    %113 = arith.addf %110, %112 : vector<32x64xf32>
    %114 = arith.addf %113, %4 : vector<32x64xf32>
    %115 = vector.shape_cast %114 : vector<32x64xf32> to vector<8x4x64xf32>
    %116 = arith.truncf %115 : vector<8x4x64xf32> to vector<8x4x64xbf16>
    %c0_44 = arith.constant 0 : index
    %c0_45 = arith.constant 0 : index
    %c0_46 = arith.constant 0 : index
    %117 = vector.load %arg8[%c0_44, %c0_45, %c0_46] : memref<8x4x64xbf16, #tpu.memory_space<vmem>>, vector<8x4x64xbf16>
    tpu.vector_store %arg8[%c0_44, %c0_45, %c0_46], %116 {strides = array<i32>} : memref<8x4x64xbf16, #tpu.memory_space<vmem>>, vector<8x4x64xbf16>,
    return
  }
  func.func @transform_0(%arg0: i32) -> (i32, i32, i32) {
    %c0_i32 = arith.constant 0 : i32
    %c0_i32_0 = arith.constant 0 : i32
    %c0_i32_1 = arith.constant 0 : i32
    return %arg0, %c0_i32, %c0_i32_0 : i32, i32, i32
  }
  func.func @transform_1(%arg0: i32) -> (i32, i32) {
    %c0_i32 = arith.constant 0 : i32
    %c0_i32_0 = arith.constant 0 : i32
    %c0_i32_1 = arith.constant 0 : i32
    return %c0_i32, %c0_i32_0 : i32, i32
  }
  func.func @transform_2(%arg0: i32) -> (i32, i32) {
    %c0_i32 = arith.constant 0 : i32
    %c0_i32_0 = arith.constant 0 : i32
    %c0_i32_1 = arith.constant 0 : i32
    return %c0_i32, %c0_i32_0 : i32, i32
  }
  func.func @transform_3(%arg0: i32) -> (i32, i32) {
    %c0_i32 = arith.constant 0 : i32
    %c0_i32_0 = arith.constant 0 : i32
    %c0_i32_1 = arith.constant 0 : i32
    return %c0_i32, %c0_i32_0 : i32, i32
  }
  func.func @transform_4(%arg0: i32) -> (i32, i32) {
    %c0_i32 = arith.constant 0 : i32
    %c0_i32_0 = arith.constant 0 : i32
    %c0_i32_1 = arith.constant 0 : i32
    return %c0_i32, %c0_i32_0 : i32, i32
  }
  func.func @transform_5(%arg0: i32) -> (i32, i32) {
    %c0_i32 = arith.constant 0 : i32
    %c0_i32_0 = arith.constant 0 : i32
    %c0_i32_1 = arith.constant 0 : i32
    return %c0_i32, %c0_i32_0 : i32, i32
  }
  func.func @transform_6(%arg0: i32) -> (i32, i32) {
    %c0_i32 = arith.constant 0 : i32
    %c0_i32_0 = arith.constant 0 : i32
    %c0_i32_1 = arith.constant 0 : i32
    return %c0_i32, %c0_i32_0 : i32, i32
  }
  func.func @transform_7(%arg0: i32) -> (i32, i32, i32) {
    %c0_i32 = arith.constant 0 : i32
    %c0_i32_0 = arith.constant 0 : i32
    %c0_i32_1 = arith.constant 0 : i32
    return %arg0, %c0_i32, %c0_i32_0 : i32, i32, i32
  }
}

</mosaic_0001>

<bundles_post_ra>
// kernel: tpu_custom_call.1
= control target key start
LH: loop header
LB: loop body
LE: loop exit
PB: predicated region body
PF: predicated region fallthrough
CT: control target
= control target key end

     0   :  { %12 = vsyncpa [#allocation4], 0  ;;  %s4921_s0 = inlined_call_operand.vmem [shape: bf16[32,4,64], index: 0, kind: input, shape index: {}]   ;;  %s4922_s1 = inlined_call_operand.vmem [shape: f32[1,64], index: 1, kind: input, shape index: {}]   ;;  %s4923_s2 = inlined_call_operand.vmem [shape: f32[1,64], index: 2, kind: input, shape index: {}]   ;;  %s4924_s3 = inlined_call_operand.vmem [shape: bf16[192,64], index: 3, kind: input, shape index: {}]   ;;  %s4925_s4 = inlined_call_operand.vmem [shape: f32[1,192], index: 4, kind: input, shape index: {}]   ;;  %s4926_s5 = inlined_call_operand.vmem [shape: bf16[64,64], index: 5, kind: input, shape index: {}]   ;;  %s4927_s6 = inlined_call_operand.vmem [shape: f32[1,64], index: 6, kind: input, shape index: {}]   ;;  %s4928_s7 = inlined_call_operand.hbm [shape: bf16[32,4,64], index: 7, kind: output, shape index: {}]  }
   0x1   :  { %14 = vsyncpa [#allocation4 + $0x1], 0  ;;  %s3708_s24 = smov 0   ;;  %s3710_s25 = smov 0  }
   0x2   :  { %s3712_s26 = smov 0   ;;  %s3714_s27 = smov 0  }
   0x3 LB: > { %s3729_s28 = sadd.s32 4294967295, %s3655_s27   ;;  %s3239_s29 = sadd.s32 4294967294, %s3655_s27   ;;  %s3655_s27 = sphi %s3714_s27, %s4970_s27   ;;  %s3651_s26 = sphi %s3712_s26, %s4969_s26   ;;  %s3647_s25 = sphi %s3710_s25, %s4968_s25   ;;  %s3643_s24 = sphi %s3708_s24, %s4967_s24  }
   0x4   : > { %s3733_s30 = sadd.s32 1, %s3655_s27   ;;  %s179_s8 = sadd.s32 1, %s3651_s26 }
   0x5   : > { %s176_s9 = ssub.s32 %s3655_s27, %s3733_s30  ;;  %p189_p0 = scmp.ne.s32.totalorder %s3651_s26, %s3647_s25 }
   0x6   : > { %p177_p1 = scmp.eq.s32.totalorder %s176_s9, 0  ;;  %p190_p2 = scmp.eq.s32.totalorder %s3729_s28, 3 }
   0x7   : > { %p195_p3 = scmp.ne.s32.totalorder %s3647_s25, %s3643_s24  ;;  %p196_p4 = scmp.eq.s32.totalorder %s3239_s29, 3 }
   0x8   : > { %s3744_s10 = scalar_select %p177_p1, %s3651_s26, %s179_s8  }
   0x9   : > { %p3746_p5 = por %p190_p2, %p189_p0  ;;  %p3750_p6 = por %p196_p4, %p195_p3 }
   0xa   : > { %p3242_p7 = scmp.ge.s32.totalorder %s3655_s27, 1  ;;  %p241_p8 = scmp.lt.s32.totalorder %s3655_s27, 5 }
   0xc   : > { %p242_p9 = pnand %p3242_p7, %p241_p8 }
   0xe   : > { %245 = sbr.rel (%p242_p9) target bundleno = 3017 (0xbc9), region = 48 }
  0x13   : > { %s3244_s13 = sshll.u32 %s3729_s28, 3  ;;  %vm330_vm0 = vcmask 523264   ;;  %v3657_v24 = vmov 64.0   ;;  %v3658_v30 = vmov 839922192   ;;  %v3392_v34 = vld [vmem:[%s4924_s3 + $0x38] sm:$0xff] }
  0x14   : > { %p274_p10 = scmp.lt.s32.totalorder %s3244_s13, 31  ;;  %3455 = vrcp.f32 %v3657_v24  ;;  %v359_v31 = vunpack.c.l.s4 %v3658_v30  ;;  %v3659_v32 = vmov 1985246804   ;;  %v734_v38 = vsel %vm330_vm0, %v3392_v34, 0  ;;  %v3391_v40 = vld [vmem:[%s4924_s3 + $0x30] sm:$0xff]  ;;  %v3396_v30 = vld [vmem:[%s4924_s3 + $0x58] sm:$0xff] }
  0x15   : > { %v363_v33 = vunpack.c.l.s4 %v3659_v32  ;;  %748 = vmatpush.bf16.xpose.msra.mxu0 %v734_v38  ;;  %v731_v46 = vsel %vm330_vm0, %v3391_v40, 0  ;;  %v746_v32 = vsel %vm330_vm0, %v3396_v30, 0  ;;  %v3395_v34 = vld [vmem:[%s4924_s3 + $0x50] sm:$0xff]  ;;  %vm798_vm14 = vcmask 1041408   ;;  %s3660_s20 = smov 64   ;;  %s3661_s21 = smov 112  }
  0x16   : > { %s4972_s13 = smov (!%p274_p10, %s3244_s13), 31  ;;  %v3793_v36 = vunpack.c.0.s8 %v359_v31  ;;  %771 = vmatpush.bf16.xpose.msra.mxu1 %v746_v32  ;;  %vm803_vm15 = vcmask 1043458   ;;  %s3662_s22 = smov 48  }
  0x17   : > { %s3245_s14 = sshll.u32 %s4972_s13, 1  ;;  %v3795_v37 = vunpack.c.0.s8 %v363_v33  ;;  %v3387_v33 = vld [vmem:[%s4924_s3 + $0x10] sm:$0xff]  ;;  %s3663_s23 = smov 32  }
  0x18   : > { %s277_s17 = scalar_lea.vmem %s4921_s0, %s3245_s14  ;;  %v719_v38 = vsel %vm330_vm0, %v3387_v33, 0  ;;  %s3664_s29 = smov 96  }
  0x19   : > { %v285_v0 = vld [vmem:[%s277_s17 + $0x8] sm:$0x3]  ;;  %v286_v1 = vld [vmem:[%s277_s17 + $0xa] sm:$0x3]  ;;  %v281_v2 = vld [vmem:[%s277_s17] sm:$0x3] }
  0x1a   : > { %v3760_v3 = vunpack.c.l.bf16 %v285_v0  ;;  %v3762_v4 = vunpack.c.l.bf16 %v286_v1  ;;  %v282_v5 = vld [vmem:[%s277_s17 + $0x2] sm:$0x3]  ;;  %v283_v6 = vld [vmem:[%s277_s17 + $0x4] sm:$0x3]  ;;  %v284_v7 = vld [vmem:[%s277_s17 + $0x6] sm:$0x3]  ;;  %v3764_v8 = vunpack.c.l.bf16 %v281_v2  ;;  %v3456_v25 = vpop.eup %3455 }
  0x1b   : > { %v3766_v9 = vunpack.c.l.bf16 %v282_v5  ;;  %v287_v10 = vld [vmem:[%s277_s17 + $0xc] sm:$0x3]  ;;  %v3769_v11 = vunpack.c.l.bf16 %v283_v6  ;;  %v288_v12 = vld [vmem:[%s277_s17 + $0xe] sm:$0x3]  ;;  %v3772_v13 = vunpack.c.l.bf16 %v284_v7  ;;  %v344_v26 = vmul.f32 64.0, %v3456_v25  ;;  %s3665_s8 = smov 16  }
  0x1c   : > { %4939 = vst [vmem:[#allocation6_spill] sm:$0xff] %v3760_v3  ;;  %v3775_v14 = vunpack.c.l.bf16 %v287_v10  ;;  %v3778_v15 = vunpack.c.l.bf16 %v288_v12  ;;  %vm348_vm1 = vweird.f32 %v3456_v25  ;;  %s3666_s9 = smov 80   ;;  %s3401_s13 = sshll.u32 %s3729_s28, 4 }
  0x1d   : > { %4940 = vst [vmem:[#allocation7_spill] sm:$0xff] %v3762_v4  ;;  %v345_v27 = vsub.f32 1.0, %v344_v26  ;;  %749 = vmatpush.bf16.xpose.msra.mxu0 %v731_v46  ;;  %s3173_s16 = scalar_lea.hbm %s4928_s7, %s3401_s13 }
  0x1e   : > { %4941 = vst [vmem:[#allocation8_spill] sm:$0xff] %v3764_v8  ;;  %s3176_s18 = sshll.u32 %s3173_s16, 4  ;;  %s3177_s18 = int_to_ptr.hbm [resolvable:$true] %s3176_s18 }
  0x1f   : > { %4942 = vst [vmem:[#allocation9_spill] sm:$0xff] %v3766_v9  ;;  %v346_v28 = vmul.f32 %v3456_v25, %v345_v27  ;;  %v3389_v27 = vld [vmem:[%s4924_s3 + $0x20] sm:$0xff]  ;;  %s3607_s19 = sshra.s32 %s3177_s18, 4  ;;  %s3608_s19 = int_to_ptr.hbm [resolvable:$true] %s3607_s19 }
  0x20   : > { %315 = vst [vmem:[#allocation1 + $0x20] ss:$2 sm:$0xff] %v3760_v3  ;;  %p3614_p0 = scmp.lt.s32.totalorder %s3608_s19, %s4928_s7 }
  0x21   : > { %4943 = vst [vmem:[#allocation10_spill] sm:$0xff] %v3769_v11  ;;  %v347_v29 = vadd.f32 %v3456_v25, %v346_v28  ;;  %v725_v28 = vsel %vm330_vm0, %v3389_v27, 0 }
  0x22   : > { %317 = vst [vmem:[#allocation1 + $0x21] ss:$2 sm:$0xff] %v3762_v4 }
  0x23   : > { %4944 = vst [vmem:[#allocation11_spill] sm:$0xff] %v3772_v13  ;;  %v3791_v35 = vsel %vm348_vm1, %v3456_v25, %v347_v29  ;;  %v3390_v25 = vld [vmem:[%s4924_s3 + $0x28] sm:$0xff]  ;;  %v3388_v29 = vld [vmem:[%s4924_s3 + $0x18] sm:$0xff]  ;;  %vm833_vm1 = vcmask 130048  }
  0x24   : > { %307 = vst [vmem:[#allocation1] ss:$2 sm:$0xff] %v3764_v8  ;;  %v728_v26 = vsel %vm330_vm0, %v3390_v25, 0  ;;  %v722_v31 = vsel %vm330_vm0, %v3388_v29, 0 }
  0x25   : > { %4945 = vst [vmem:[#allocation12_spill] sm:$0xff] %v3775_v14  ;;  %750 = vmatpush.bf16.xpose.msra.mxu0 %v728_v26 }
  0x26   : > { %309 = vst [vmem:[#allocation1 + $0x1] ss:$2 sm:$0xff] %v3766_v9 }
  0x27   : > { %4946 = vst [vmem:[#allocation13_spill] sm:$0xff] %v3778_v15 }
  0x28   : > { %311 = vst [vmem:[#allocation1 + $0x10] ss:$2 sm:$0xff] %v3769_v11 }
  0x29   : > { %313 = vst [vmem:[#allocation1 + $0x11] ss:$2 sm:$0xff] %v3772_v13  ;;  %v324_v16 = vld.sshfl [vmem:[#allocation1 + $0x20] sm:$0xff pattern:$0x75316420] }
  0x2a   : > { %319 = vst [vmem:[#allocation1 + $0x30] ss:$2 sm:$0xff] %v3775_v14  ;;  %v337_v17 = vsel %vm330_vm0, %v324_v16, 0.0 }
  0x2b   : > { %321 = vst [vmem:[#allocation1 + $0x31] ss:$2 sm:$0xff] %v3778_v15  ;;  %338 = vadd.xlane.f32.xlu1 %v337_v17 }
  0x2d   : > { %v322_v18 = vld.sshfl [vmem:[#allocation1] sm:$0xff pattern:$0x75316420]  ;;  %751 = vmatpush.bf16.xpose.msra.mxu0 %v725_v28 }
  0x2e   : > { %v331_v19 = vsel %vm330_vm0, %v322_v18, 0.0 }
  0x2f   : > { %332 = vadd.xlane.f32.xlu0 %v331_v19 }
  0x30   : > { %v323_v20 = vld.sshfl [vmem:[#allocation1 + $0x10] sm:$0xff pattern:$0x75316420] }
  0x31   : > { %v334_v23 = vsel %vm330_vm0, %v323_v20, 0.0 }
  0x32   : > { %v325_v21 = vld.sshfl [vmem:[#allocation1 + $0x30] sm:$0xff pattern:$0x75316420] }
  0x33   : > { %v340_v22 = vsel %vm330_vm0, %v325_v21, 0.0 }
  0x34   : > { %341 = vadd.xlane.f32.xlu1 %v340_v22 }
  0x35   : > { %752 = vmatpush.bf16.xpose.msra.mxu0 %v722_v31 }
  0x37   : > { %335 = vadd.xlane.f32.xlu0 %v334_v23 }
  0x3d   : > { %753 = vmatpush.bf16.xpose.msra.mxu0 %v719_v38 }
  0x9e   : > { %v339_v39 = vpop.xlane.xlu1 %338 }
  0x9f   : > { %v352_v41 = vmul.f32 %v3791_v35, %v339_v39  ;;  %v743_v39 = vsel %vm330_vm0, %v3395_v34, 0 }
  0xa0   : > { %772 = vmatpush.bf16.xpose.msra.mxu1 %v743_v39 }
  0xa1   : > { %v377_v43 = vperm.slane %v352_v41, %v3793_v36  ;;  %v381_v44 = vperm.slane %v352_v41, %v3795_v37 }
  0xa2   : > { %v333_v42 = vpop.xlane.xlu0 %332 }
  0xa3   : > { %v350_v45 = vmul.f32 %v3791_v35, %v333_v42  ;;  %v3807_v47 = vsub.f32 %v3760_v3, %v377_v43  ;;  %v3810_v48 = vsub.f32 %v3762_v4, %v381_v44  ;;  %v3386_v43 = vld [vmem:[%s4924_s3 + $0x8] sm:$0xff] }
  0xa4   : > { %v3394_v44 = vld [vmem:[%s4924_s3 + $0x48] sm:$0xff] }
  0xa5   : > { %v361_v49 = vperm.slane %v350_v45, %v3793_v36  ;;  %v365_v50 = vperm.slane %v350_v45, %v3795_v37  ;;  %v410_v51 = vmul.f32 %v3807_v47, %v3807_v47  ;;  %v411_v52 = vmul.f32 %v3810_v48, %v3810_v48 }
  0xa7   : > { %v3819_v53 = vsub.f32 %v3764_v8, %v361_v49  ;;  %v3822_v54 = vsub.f32 %v3766_v9, %v365_v50  ;;  %v342_v55 = vpop.xlane.xlu1 %341  ;;  %430 = vst [vmem:[#allocation1 + $0x20] ss:$2 sm:$0xff] %v410_v51  ;;  %v716_v49 = vsel %vm330_vm0, %v3386_v43, 0  ;;  %v740_v50 = vsel %vm330_vm0, %v3394_v44, 0 }
  0xa8   : > { %v353_v58 = vmul.f32 %v3791_v35, %v342_v55  ;;  %432 = vst [vmem:[#allocation1 + $0x21] ss:$2 sm:$0xff] %v411_v52  ;;  %754 = vmatpush.bf16.xpose.msra.mxu0 %v716_v49  ;;  %773 = vmatpush.bf16.xpose.msra.mxu1 %v740_v50 }
  0xa9   : > { %v406_v56 = vmul.f32 %v3819_v53, %v3819_v53  ;;  %v407_v57 = vmul.f32 %v3822_v54, %v3822_v54 }
  0xaa   : > { %v336_v59 = vpop.xlane.xlu0 %335  ;;  %v385_v60 = vperm.slane %v353_v58, %v3793_v36  ;;  %v389_v61 = vperm.slane %v353_v58, %v3795_v37  ;;  %v3393_v58 = vld [vmem:[%s4924_s3 + $0x40] sm:$0xff] }
  0xab   : > { %422 = vst [vmem:[#allocation1] ss:$2 sm:$0xff] %v406_v56  ;;  %v351_v62 = vmul.f32 %v3791_v35, %v336_v59 }
  0xac   : > { %424 = vst [vmem:[#allocation1 + $0x1] ss:$2 sm:$0xff] %v407_v57  ;;  %v3833_v63 = vsub.f32 %v3775_v14, %v385_v60  ;;  %v3836_v0 = vsub.f32 %v3778_v15, %v389_v61  ;;  %v3385_v57 = vld [vmem:[%s4924_s3] sm:$0xff] }
  0xad   : > { %v369_v1 = vperm.slane %v351_v62, %v3793_v36  ;;  %v373_v2 = vperm.slane %v351_v62, %v3795_v37 }
  0xae   : > { %v412_v5 = vmul.f32 %v3833_v63, %v3833_v63  ;;  %v413_v6 = vmul.f32 %v3836_v0, %v3836_v0 }
  0xaf   : > { %v3845_v7 = vsub.f32 %v3769_v11, %v369_v1  ;;  %v3848_v10 = vsub.f32 %v3772_v13, %v373_v2  ;;  %v439_v17 = vld.sshfl [vmem:[#allocation1 + $0x20] sm:$0xff pattern:$0x75316420]  ;;  %v713_v1 = vsel %vm330_vm0, %v3385_v57, 0  ;;  %v737_v2 = vsel %vm330_vm0, %v3393_v58, 0 }
  0xb0   : > { %434 = vst [vmem:[#allocation1 + $0x30] ss:$2 sm:$0xff] %v412_v5  ;;  %v451_v18 = vsel %vm330_vm0, %v439_v17, 0.0  ;;  %755 = vmatpush.bf16.xpose.msra.mxu0 %v713_v1  ;;  %774 = vmatpush.bf16.xpose.msra.mxu1 %v737_v2 }
  0xb1   : > { %v408_v12 = vmul.f32 %v3845_v7, %v3845_v7  ;;  %v409_v16 = vmul.f32 %v3848_v10, %v3848_v10  ;;  %436 = vst [vmem:[#allocation1 + $0x31] ss:$2 sm:$0xff] %v413_v6  ;;  %452 = vadd.xlane.f32.xlu0 %v451_v18 }
  0xb3   : > { %v437_v19 = vld.sshfl [vmem:[#allocation1] sm:$0xff pattern:$0x75316420]  ;;  %426 = vst [vmem:[#allocation1 + $0x10] ss:$2 sm:$0xff] %v408_v12 }
  0xb4   : > { %428 = vst [vmem:[#allocation1 + $0x11] ss:$2 sm:$0xff] %v409_v16  ;;  %v445_v20 = vsel %vm330_vm0, %v437_v19, 0.0 }
  0xb5   : > { %446 = vadd.xlane.f32.xlu2 %v445_v20 }
  0xb8   : > { %v440_v21 = vld.sshfl [vmem:[#allocation1 + $0x30] sm:$0xff pattern:$0x75316420] }
  0xb9   : > { %v454_v22 = vsel %vm330_vm0, %v440_v21, 0.0 }
  0xba   : > { %455 = vadd.xlane.f32.xlu1 %v454_v22  ;;  %v3910_v22 = vld [vmem:[%s4923_s2] ss:$0 sm:$0xff] }
  0xbb   : > { %v438_v23 = vld.sshfl [vmem:[#allocation1 + $0x10] sm:$0xff pattern:$0x75316420]  ;;  %v573_v32 = vrot.slane %v3910_v22, 4 }
  0xbc   : > { %v448_v24 = vsel %vm330_vm0, %v438_v23, 0.0 }
  0xbd   : > { %449 = vadd.xlane.f32.xlu2 %v448_v24 }
 0x124   : > { %v453_v40 = vpop.xlane.xlu0 %452 }
 0x125   : > { %v459_v41 = vmul.f32 %v453_v40, %v3791_v35 }
 0x127   : > { %v463_v46 = vadd.f32 1e-05, %v459_v41 }
 0x128   : > { %v447_v42 = vpop.xlane.xlu2 %446 }
 0x129   : > { %v457_v45 = vmul.f32 %v447_v42, %v3791_v35  ;;  %3457 = vrsqrt.f32 %v463_v46  ;;  %vm491_vm2 = vweird.f32 %v463_v46 }
 0x12b   : > { %v461_v51 = vadd.f32 1e-05, %v457_v45 }
 0x12d   : > { %3459 = vrsqrt.f32 %v461_v51  ;;  %v456_v52 = vpop.xlane.xlu1 %455  ;;  %vm471_vm6 = vweird.f32 %v461_v51 }
 0x12e   : > { %v460_v55 = vmul.f32 %v456_v52, %v3791_v35 }
 0x12f   : > { %v3458_v59 = vpop.eup %3457 }
 0x130   : > { %v450_v56 = vpop.xlane.xlu2 %449  ;;  %v464_v60 = vadd.f32 1e-05, %v460_v55  ;;  %v486_v62 = vmul.f32 %v3458_v59, %v463_v46  ;;  %vm492_vm3 = vweird.f32 %v3458_v59 }
 0x131   : > { %v458_v61 = vmul.f32 %v450_v56, %v3791_v35  ;;  %v3905_v35 = vld [vmem:[%s4922_s1] ss:$0 sm:$0xff]  ;;  %vm493_vm4 = vmor %vm491_vm2, %vm492_vm3  ;;  %vm1017_vm2 = vcmask 27648   ;;  %vm1115_vm3 = vcmask 31744  }
 0x132   : > { %3461 = vrsqrt.f32 %v464_v60  ;;  %v487_v16 = vmul.f32 %v3458_v59, %v486_v62  ;;  %v560_v27 = vrot.slane %v3905_v35, 4  ;;  %vm501_vm8 = vweird.f32 %v464_v60 }
 0x133   : > { %v3460_v5 = vpop.eup %3459  ;;  %v462_v6 = vadd.f32 1e-05, %v458_v61 }
 0x134   : > { %v466_v12 = vmul.f32 %v3460_v5, %v461_v51  ;;  %v488_v18 = vmul.f32 0.5, %v487_v16  ;;  %vm472_vm5 = vweird.f32 %v3460_v5 }
 0x135   : > { %3463 = vrsqrt.f32 %v462_v6  ;;  %vm473_vm7 = vmor %vm471_vm6, %vm472_vm5  ;;  %vm481_vm12 = vweird.f32 %v462_v6  ;;  %vm2996_vm5 = vcmask 517376   ;;  %vm3152_vm6 = vcmask 517120  }
 0x136   : > { %v467_v17 = vmul.f32 %v3460_v5, %v466_v12  ;;  %v489_v20 = vsub.f32 1.5, %v488_v18 }
 0x138   : > { %v468_v19 = vmul.f32 0.5, %v467_v17  ;;  %v3462_v21 = vpop.eup %3461  ;;  %v490_v24 = vmul.f32 %v3458_v59, %v489_v20 }
 0x139   : > { %v496_v25 = vmul.f32 %v3462_v21, %v464_v60  ;;  %vm502_vm9 = vweird.f32 %v3462_v21 }
 0x13a   : > { %v469_v23 = vsub.f32 1.5, %v468_v19  ;;  %v494_v29 = vsel %vm493_vm4, %v3458_v59, %v490_v24  ;;  %vm503_vm10 = vmor %vm501_vm8, %vm502_vm9  ;;  %vm1867_vm4 = vcmask 254976  }
 0x13b   : > { %v3464_v26 = vpop.eup %3463  ;;  %v497_v30 = vmul.f32 %v3462_v21, %v496_v25  ;;  %v528_v33 = vperm.slane %v494_v29, %v3793_v36  ;;  %v532_v34 = vperm.slane %v494_v29, %v3795_v37 }
 0x13c   : > { %v470_v28 = vmul.f32 %v3460_v5, %v469_v23  ;;  %v476_v31 = vmul.f32 %v3464_v26, %v462_v6  ;;  %vm482_vm11 = vweird.f32 %v3464_v26 }
 0x13d   : > { %v498_v39 = vmul.f32 0.5, %v497_v30  ;;  %v553_v43 = vmul.f32 %v528_v33, %v3807_v47  ;;  %v554_v44 = vmul.f32 %v532_v34, %v3810_v48  ;;  %vm483_vm13 = vmor %vm481_vm12, %vm482_vm11 }
 0x13e   : > { %v474_v38 = vsel %vm473_vm7, %v3460_v5, %v470_v28  ;;  %v477_v40 = vmul.f32 %v3464_v26, %v476_v31 }
 0x13f   : > { %v512_v41 = vperm.slane %v474_v38, %v3793_v36  ;;  %v516_v42 = vperm.slane %v474_v38, %v3795_v37  ;;  %v499_v45 = vsub.f32 1.5, %v498_v39  ;;  %v566_v51 = vmul.f32 %v3905_v35, %v553_v43 }
 0x140   : > { %v478_v46 = vmul.f32 0.5, %v477_v40  ;;  %v567_v52 = vmul.f32 %v560_v27, %v554_v44 }
 0x141   : > { %v549_v49 = vmul.f32 %v512_v41, %v3819_v53  ;;  %v550_v50 = vmul.f32 %v516_v42, %v3822_v54  ;;  %v500_v55 = vmul.f32 %v3462_v21, %v499_v45  ;;  %v579_v47 = vadd.f32 %v3910_v22, %v566_v51 }
 0x142   : > { %v479_v56 = vsub.f32 1.5, %v478_v46  ;;  %v580_v48 = vadd.f32 %v573_v32, %v567_v52 }
 0x143   : > { %v562_v57 = vmul.f32 %v3905_v35, %v549_v49  ;;  %v563_v58 = vmul.f32 %v560_v27, %v550_v50  ;;  %v504_v59 = vsel %vm503_vm10, %v3462_v21, %v500_v55  ;;  %599 = vst [vmem:[#allocation1 + $0x20] ss:$2 sm:$0xff] %v579_v47 }
 0x144   : > { %v480_v61 = vmul.f32 %v3464_v26, %v479_v56  ;;  %v536_v62 = vperm.slane %v504_v59, %v3793_v36  ;;  %v540_v60 = vperm.slane %v504_v59, %v3795_v37  ;;  %601 = vst [vmem:[#allocation1 + $0x21] ss:$2 sm:$0xff] %v580_v48 }
 0x145   : > { %v575_v53 = vadd.f32 %v3910_v22, %v562_v57  ;;  %v576_v54 = vadd.f32 %v573_v32, %v563_v58 }
 0x146   : > { %v484_v1 = vsel %vm483_vm13, %v3464_v26, %v480_v61  ;;  %v555_v2 = vmul.f32 %v536_v62, %v3833_v63  ;;  %v556_v5 = vmul.f32 %v540_v60, %v3836_v0 }
 0x147   : > { %591 = vst [vmem:[#allocation1] ss:$2 sm:$0xff] %v575_v53  ;;  %v520_v12 = vperm.slane %v484_v1, %v3793_v36  ;;  %v524_v6 = vperm.slane %v484_v1, %v3795_v37 }
 0x148   : > { %593 = vst [vmem:[#allocation1 + $0x1] ss:$2 sm:$0xff] %v576_v54  ;;  %v568_v16 = vmul.f32 %v3905_v35, %v555_v2  ;;  %v569_v17 = vmul.f32 %v560_v27, %v556_v5 }
 0x149   : > { %v551_v18 = vmul.f32 %v520_v12, %v3845_v7  ;;  %v552_v19 = vmul.f32 %v524_v6, %v3848_v10 }
 0x14a   : > { %v581_v20 = vadd.f32 %v3910_v22, %v568_v16  ;;  %v582_v21 = vadd.f32 %v573_v32, %v569_v17 }
 0x14b   : > { %v564_v23 = vmul.f32 %v3905_v35, %v551_v18  ;;  %v565_v63 = vmul.f32 %v560_v27, %v552_v19  ;;  %v608_v10 = vld.sshfl [vmem:[#allocation1 + $0x20] sm:$0xff pattern:$0x75316420] }
 0x14c   : > { %603 = vst [vmem:[#allocation1 + $0x30] ss:$2 sm:$0xff] %v581_v20  ;;  %v640_v35 = vld [vmem:[%s4925_s4] sm:$0x3] }
 0x14d   : > { %v577_v0 = vadd.f32 %v3910_v22, %v564_v23  ;;  %v578_v36 = vadd.f32 %v573_v32, %v565_v63  ;;  %605 = vst [vmem:[#allocation1 + $0x31] ss:$2 sm:$0xff] %v582_v21  ;;  %v642_v22 = vperm.slane %v640_v35, 0  ;;  %v643_v27 = vperm.slane %v640_v35, 1 }
 0x14f   : > { %595 = vst [vmem:[#allocation1 + $0x10] ss:$2 sm:$0xff] %v577_v0  ;;  %v606_v24 = vld.sshfl [vmem:[#allocation1] sm:$0xff pattern:$0x75316420] }
 0x150   : > { %597 = vst [vmem:[#allocation1 + $0x11] ss:$2 sm:$0xff] %v578_v36 }
 0x154   : > { %v609_v7 = vld.sshfl [vmem:[#allocation1 + $0x30] sm:$0xff pattern:$0x75316420] }
 0x155   : > { %v615_v26 = vpack.c.bf16 %v609_v7, %v608_v10 }
 0x157   : > { %v607_v37 = vld.sshfl [vmem:[#allocation1 + $0x10] sm:$0xff pattern:$0x75316420] }
 0x158   : > { %v614_v25 = vpack.c.bf16 %v607_v37, %v606_v24 }
 0x15a   : > { %3294 = vmatmul.msk.bf16.vlgmr.msra.gmra.mxu0 %vm330_vm0, %v614_v25  ;;  %3296 = vmatmul.msk.bf16.vlgmr.msra.gmra.mxu1 %vm330_vm0, %v614_v25 }
 0x16a   : > { %3295 = vmatmul.msk.bf16.gmra.mxu0 %vm330_vm0, %v615_v26  ;;  %3297 = vmatmul.msk.bf16.gmra.mxu1 %vm330_vm0, %v615_v26 }
 0x1d7   : > { %v757_v28 = vpop.f32.mrf.mxu0  ;;  %v776_v29 = vpop.f32.mrf.mxu1 }
 0x1d8   : > { %v758_v30 = vadd.f32 %v757_v28, %v642_v22  ;;  %v777_v31 = vadd.f32 %v776_v29, %v643_v27 }
 0x1da   : > { %v786_v32 = vpack.c.bf16 %v777_v31, %v758_v30 }
 0x1dc   : > { %v794_v33 = vrot.slane %v786_v32, 2 }
 0x1de   : > { %v3947_v34 = vsel %vm798_vm14, %v786_v32, %v794_v33  ;;  %v804_v44 = vsel %vm803_vm15, %v786_v32, %v794_v33 }
 0x1df   : > { %828 = vst [vmem:[#allocation1] ss:$4 sm:$0xff] %v3947_v34  ;;  %v759_v38 = vpop.f32.mrf.mxu0  ;;  %v778_v39 = vpop.f32.mrf.mxu1  ;;  %v1114_v40 = vrot.slane %v3947_v34, 2  ;;  %v3953_v49 = vrot.slane %v804_v44, 2 }
 0x1e0   : > { %v760_v41 = vadd.f32 %v759_v38, %v642_v22  ;;  %v779_v42 = vadd.f32 %v778_v39, %v643_v27 }
 0x1e1   : > { %v1120_v43 = vsel %vm798_vm14, %v1114_v40, 0 }
 0x1e2   : > { %v787_v45 = vpack.c.bf16 %v779_v42, %v760_v41  ;;  %1129 = vmatpush.bf16.msrb.mxu1 %v1120_v43 }
 0x1e4   : > { %v795_v46 = vrot.slane %v787_v45, 2 }
 0x1e6   : > { %v829_v50 = vld.sshfl [vmem:[#allocation1] sm:$0xff pattern:$0x73625140]  ;;  %v811_v51 = vsel %vm803_vm15, %v787_v45, %v795_v46  ;;  %v3963_v58 = vsel %vm798_vm14, %v787_v45, %v795_v46 }
 0x1e7   : > { %853 = vst [vmem:[#allocation1] ss:$4 sm:$0xff] %v3953_v49  ;;  %v3957_v52 = vrot.slane %v811_v51, 2  ;;  %831 = vrot.lane.b32.xlu2 %v829_v50, %s3660_s20  ;;  %v762_v47 = vpop.f32.mrf.mxu0  ;;  %v781_v48 = vpop.f32.mrf.mxu1 }
 0x1e8   : > { %v763_v59 = vadd.f32 %v762_v47, %v642_v22  ;;  %v782_v61 = vadd.f32 %v781_v48, %v643_v27 }
 0x1e9   : > { %v1175_v55 = vrot.slane %v3957_v52, 2 }
 0x1ea   : > { %v788_v54 = vpack.c.bf16 %v782_v61, %v763_v59 }
 0x1eb   : > { %v1180_v56 = vsel %vm798_vm14, %v1175_v55, 0 }
 0x1ec   : > { %1189 = vmatpush.bf16.msra.mxu1 %v1180_v56  ;;  %v796_v62 = vrot.slane %v788_v54, 2 }
 0x1ee   : > { %v854_v57 = vld.sshfl [vmem:[#allocation1] sm:$0xff pattern:$0x73625140]  ;;  %v3970_v1 = vsel %vm798_vm14, %v788_v54, %v796_v62  ;;  %v818_v12 = vsel %vm803_vm15, %v788_v54, %v796_v62  ;;  %v1155_v54 = vrot.slane %v3963_v58, 2 }
 0x1ef   : > { %876 = vst [vmem:[#allocation1] ss:$4 sm:$0xff] %v3963_v58  ;;  %856 = vrot.lane.b32.xlu0 %v854_v57, %s3660_s20  ;;  %v764_v2 = vpop.f32.mrf.mxu0  ;;  %v783_v5 = vpop.f32.mrf.mxu1  ;;  %v3975_v17 = vrot.slane %v818_v12, 2  ;;  %v1135_v57 = vrot.slane %v3953_v49, 2 }
 0x1f0   : > { %v765_v6 = vadd.f32 %v764_v2, %v642_v22  ;;  %v784_v16 = vadd.f32 %v783_v5, %v643_v27  ;;  %v1160_v5 = vsel %vm798_vm14, %v1155_v54, 0 }
 0x1f1   : > { %v1140_v59 = vsel %vm798_vm14, %v1135_v57, 0  ;;  %v1215_v12 = vrot.slane %v3975_v17, 2 }
 0x1f2   : > { %v789_v19 = vpack.c.bf16 %v784_v16, %v765_v6 }
 0x1f3   : > { %v1220_v16 = vsel %vm798_vm14, %v1215_v12, 0 }
 0x1f4   : > { %v797_v20 = vrot.slane %v789_v19, 2 }
 0x1f6   : > { %v877_v53 = vld.sshfl [vmem:[#allocation1] sm:$0xff pattern:$0x73625140]  ;;  %v3980_v23 = vsel %vm798_vm14, %v789_v19, %v797_v20  ;;  %v825_v63 = vsel %vm803_vm15, %v789_v19, %v797_v20 }
 0x1f7   : > { %900 = vst [vmem:[#allocation1] ss:$4 sm:$0xff] %v3957_v52  ;;  %879 = vrot.lane.b32.xlu2 %v877_v53, %s3660_s20  ;;  %v3985_v0 = vrot.slane %v825_v63, 2  ;;  %v1235_v28 = vrot.slane %v3980_v23, 2  ;;  %v1195_v53 = vrot.slane %v3970_v1, 2 }
 0x1f9   : > { %v1240_v31 = vsel %vm798_vm14, %v1235_v28, 0  ;;  %v1200_v2 = vsel %vm798_vm14, %v1195_v53, 0 }
 0x1fe   : > { %v901_v60 = vld.sshfl [vmem:[#allocation1] sm:$0xff pattern:$0x73625140] }
 0x1ff   : > { %923 = vst [vmem:[#allocation1] ss:$4 sm:$0xff] %v3970_v1  ;;  %903 = vrot.lane.b32.xlu1 %v901_v60, %s3660_s20 }
 0x206   : > { %v924_v18 = vld.sshfl [vmem:[#allocation1] sm:$0xff pattern:$0x73625140] }
 0x207   : > { %947 = vst [vmem:[#allocation1] ss:$4 sm:$0xff] %v3975_v17  ;;  %926 = vrot.lane.b32.xlu0 %v924_v18, %s3660_s20 }
 0x20e   : > { %v948_v21 = vld.sshfl [vmem:[#allocation1] sm:$0xff pattern:$0x73625140] }
 0x20f   : > { %970 = vst [vmem:[#allocation1] ss:$4 sm:$0xff] %v3980_v23  ;;  %950 = vrot.lane.b32.xlu2 %v948_v21, %s3660_s20 }
 0x216   : > { %v971_v36 = vld.sshfl [vmem:[#allocation1] sm:$0xff pattern:$0x73625140] }
 0x217   : > { %994 = vst [vmem:[#allocation1] ss:$4 sm:$0xff] %v3985_v0  ;;  %973 = vrot.lane.b32.xlu1 %v971_v36, %s3660_s20 }
 0x21e   : > { %v995_v37 = vld.sshfl [vmem:[#allocation1] sm:$0xff pattern:$0x73625140] }
 0x21f   : > { %1283 = vst [vmem:[#allocation1] ss:$4 sm:$0xff] %v3947_v34  ;;  %997 = vrot.lane.b32.xlu0 %v995_v37, %s3660_s20  ;;  %s3609_s20 = scalar_lea.hbm %s3608_s19, 16 }
 0x220   : > { %p3610_p11 = scmp.ne.s32.totalorder %s3608_s19, %s3609_s20 }
 0x222   : > { %p3611_p12 = pnand %p3610_p11, %p3746_p5 }
 0x224   : > { %p3612_p13 = pneg %p3611_p12 }
 0x226   : > { %v1284_v24 = vld.sshfl [vmem:[#allocation1] sm:$0xff pattern:$0x73625140] }
 0x227   : > { %1288 = vst [vmem:[#allocation1] ss:$4 sm:$0xff] %v3947_v34  ;;  %1286 = vrot.lane.b32.xlu0 %v1284_v24, %s3661_s21 }
 0x22e   : > { %v1289_v25 = vld.sshfl [vmem:[#allocation1] sm:$0xff pattern:$0x73625140] }
 0x22f   : > { %1312 = vst [vmem:[#allocation1] ss:$4 sm:$0xff] %v3953_v49  ;;  %1291 = vrot.lane.b32.xlu0 %v1289_v25, %s3662_s22 }
 0x236   : > { %v1313_v7 = vld.sshfl [vmem:[#allocation1] sm:$0xff pattern:$0x73625140] }
 0x237   : > { %1317 = vst [vmem:[#allocation1] ss:$4 sm:$0xff] %v3953_v49  ;;  %1315 = vrot.lane.b32.xlu1 %v1313_v7, %s3661_s21 }
 0x23e   : > { %v1318_v10 = vld.sshfl [vmem:[#allocation1] sm:$0xff pattern:$0x73625140] }
 0x23f   : > { %1341 = vst [vmem:[#allocation1] ss:$4 sm:$0xff] %v3963_v58  ;;  %1320 = vrot.lane.b32.xlu2 %v1318_v10, %s3662_s22 }
 0x241   : > { %v832_v26 = vpop.permute.xlu2 %831 }
 0x242   : > { %v837_v35 = vsel %vm833_vm1, %v832_v26, 0 }
 0x243   : > { %846 = vmatpush.bf16.xpose.msra.mxu3 %v837_v35 }
 0x246   : > { %v4000_v22 = vld.sshfl [vmem:[#allocation1] sm:$0xff pattern:$0x73625140] }
 0x247   : > { %1346 = vst [vmem:[#allocation1] ss:$4 sm:$0xff] %v3963_v58 }
 0x24a   : > { %3298 = vmatmul.msk.bf16.vlgmr.msra.gmra.mxu3 %vm833_vm1, %v3947_v34 }
 0x24e   : > { %v4005_v27 = vld.sshfl [vmem:[#allocation1] sm:$0xff pattern:$0x73625140] }
 0x24f   : > { %1370 = vst [vmem:[#allocation1] ss:$4 sm:$0xff] %v3957_v52 }
 0x251   : > { %v880_v29 = vpop.permute.xlu2 %879 }
 0x252   : > { %v884_v30 = vsel %vm833_vm1, %v880_v29, 0 }
 0x253   : > { %893 = vmatpush.bf16.xpose.msrb.mxu0 %v884_v30 }
 0x256   : > { %v4011_v32 = vld.sshfl [vmem:[#allocation1] sm:$0xff pattern:$0x73625140] }
 0x257   : > { %1375 = vst [vmem:[#allocation1] ss:$4 sm:$0xff] %v3957_v52 }
 0x25a   : > { %3300 = vmatmul.msk.bf16.vlgmr.msrb.gmra.mxu0 %vm833_vm1, %v3963_v58 }
 0x25b   : > { %1249 = vmatpush.bf16.msra.mxu0 %v1240_v31 }
 0x25e   : > { %v4016_v33 = vld.sshfl [vmem:[#allocation1] sm:$0xff pattern:$0x73625140] }
 0x25f   : > { %1399 = vst [vmem:[#allocation1] ss:$4 sm:$0xff] %v3970_v1 }
 0x261   : > { %v857_v38 = vpop.permute.xlu0 %856 }
 0x262   : > { %v861_v39 = vsel %vm833_vm1, %v857_v38, 0 }
 0x263   : > { %870 = vmatpush.bf16.xpose.msrb.mxu3 %v861_v39 }
 0x266   : > { %v4020_v40 = vld.sshfl [vmem:[#allocation1] sm:$0xff pattern:$0x73625140] }
 0x267   : > { %1404 = vst [vmem:[#allocation1] ss:$4 sm:$0xff] %v3970_v1 }
 0x269   : > { %v951_v42 = vpop.permute.xlu2 %950 }
 0x26a   : > { %3299 = vmatmul.msk.bf16.vlgmr.msrb.gmra.mxu3 %vm833_vm1, %v3953_v49  ;;  %v955_v45 = vsel %vm833_vm1, %v951_v42, 0 }
 0x26e   : > { %v4025_v41 = vld.sshfl [vmem:[#allocation1] sm:$0xff pattern:$0x73625140] }
 0x26f   : > { %1428 = vst [vmem:[#allocation1] ss:$4 sm:$0xff] %v3975_v17 }
 0x271   : > { %v904_v43 = vpop.permute.xlu1 %903 }
 0x272   : > { %v908_v44 = vsel %vm833_vm1, %v904_v43, 0 }
 0x273   : > { %917 = vmatpush.bf16.xpose.msra.mxu3 %v908_v44 }
 0x276   : > { %v4030_v46 = vld.sshfl [vmem:[#allocation1] sm:$0xff pattern:$0x73625140] }
 0x277   : > { %1433 = vst [vmem:[#allocation1] ss:$4 sm:$0xff] %v3975_v17 }
 0x279   : > { %v927_v50 = vpop.permute.xlu0 %926 }
 0x27a   : > { %3301 = vmatmul.msk.bf16.vlgmr.msra.gmra.mxu3 %vm833_vm1, %v3957_v52  ;;  %v931_v51 = vsel %vm833_vm1, %v927_v50, 0 }
 0x27b   : > { %964 = vmatpush.bf16.xpose.msrb.mxu3 %v955_v45  ;;  %940 = vmatpush.bf16.xpose.msra.mxu2 %v931_v51 }
 0x27e   : > { %v4036_v55 = vld.sshfl [vmem:[#allocation1] sm:$0xff pattern:$0x73625140] }
 0x27f   : > { %1457 = vst [vmem:[#allocation1] ss:$4 sm:$0xff] %v3980_v23 }
 0x282   : > { %3302 = vmatmul.msk.bf16.vlgmr.msra.gmra.mxu2 %vm833_vm1, %v3970_v1 }
 0x286   : > { %v4041_v56 = vld.sshfl [vmem:[#allocation1] sm:$0xff pattern:$0x73625140] }
 0x287   : > { %1462 = vst [vmem:[#allocation1] ss:$4 sm:$0xff] %v3980_v23 }
 0x289   : > { %v974_v47 = vpop.permute.xlu1 %973 }
 0x28a   : > { %3303 = vmatmul.msk.bf16.vlgmr.msrb.gmra.mxu3 %vm833_vm1, %v3975_v17  ;;  %v978_v48 = vsel %vm833_vm1, %v974_v47, 0 }
 0x28b   : > { %987 = vmatpush.bf16.xpose.msrb.mxu2 %v978_v48 }
 0x28e   : > { %v4049_v61 = vld.sshfl [vmem:[#allocation1] sm:$0xff pattern:$0x73625140] }
 0x28f   : > { %1486 = vst [vmem:[#allocation1] ss:$4 sm:$0xff] %v3985_v0 }
 0x291   : > { %v998_v62 = vpop.permute.xlu0 %997 }
 0x292   : > { %v1002_v60 = vsel %vm833_vm1, %v998_v62, 0  ;;  %3304 = vmatmul.msk.bf16.vlgmr.msrb.gmra.mxu2 %vm833_vm1, %v3980_v23 }
 0x293   : > { %1149 = vmatpush.bf16.msra.mxu2 %v1140_v59  ;;  %1011 = vmatpush.bf16.xpose.msra.mxu3 %v1002_v60 }
 0x296   : > { %v4060_v6 = vld.sshfl [vmem:[#allocation1] sm:$0xff pattern:$0x73625140] }
 0x297   : > { %1209 = vmatpush.bf16.msrb.mxu2 %v1200_v2  ;;  %1491 = vst [vmem:[#allocation1] ss:$4 sm:$0xff] %v3985_v0 }
 0x29a   : > { %3305 = vmatmul.msk.bf16.vlgmr.msra.gmra.mxu3 %vm833_vm1, %v3985_v0 }
 0x29b   : > { %1169 = vmatpush.bf16.msrb.mxu3 %v1160_v5 }
 0x29e   : > { %v4066_v18 = vld.sshfl [vmem:[#allocation1] sm:$0xff pattern:$0x73625140] }
 0x29f   : > { %1229 = vmatpush.bf16.msra.mxu3 %v1220_v16  ;;  %1876 = vst [vmem:[#allocation1] ss:$4 sm:$0xff] %v3947_v34 }
 0x2a6   : > { %v4069_v19 = vld.sshfl [vmem:[#allocation1] sm:$0xff pattern:$0x73625140] }
 0x2a7   : > { %1881 = vst [vmem:[#allocation1] ss:$4 sm:$0xff] %v3947_v34 }
 0x2ae   : > { %v4072_v20 = vld.sshfl [vmem:[#allocation1] sm:$0xff pattern:$0x73625140] }
 0x2af   : > { %1905 = vst [vmem:[#allocation1] ss:$4 sm:$0xff] %v3953_v49 }
 0x2b6   : > { %v4075_v21 = vld.sshfl [vmem:[#allocation1] sm:$0xff pattern:$0x73625140] }
 0x2b7   : > { %1910 = vst [vmem:[#allocation1] ss:$4 sm:$0xff] %v3953_v49 }
 0x2be   : > { %v4078_v63 = vld.sshfl [vmem:[#allocation1] sm:$0xff pattern:$0x73625140] }
 0x2bf   : > { %1934 = vst [vmem:[#allocation1] ss:$4 sm:$0xff] %v3963_v58 }
 0x2c6   : > { %v4081_v36 = vld.sshfl [vmem:[#allocation1] sm:$0xff pattern:$0x73625140] }
 0x2c7   : > { %1939 = vst [vmem:[#allocation1] ss:$4 sm:$0xff] %v3963_v58 }
 0x2cd   : > { %v4084_v37 = vpop.f32.mrf.mxu3 }
 0x2ce   : > { %v1018_v24 = vsel %vm1017_vm2, %v4084_v37, -inf  ;;  %v4088_v25 = vld.sshfl [vmem:[#allocation1] sm:$0xff pattern:$0x73625140] }
 0x2cf   : > { %1019 = vmax.xlane.f32.xlu0 %v1018_v24  ;;  %1963 = vst [vmem:[#allocation1] ss:$4 sm:$0xff] %v3957_v52 }
 0x2d5   : > { %v850_v7 = vpop.f32.mrf.mxu3 }
 0x2d6   : > { %v4091_v10 = vld.sshfl [vmem:[#allocation1] sm:$0xff pattern:$0x73625140] }
 0x2d7   : > { %v4093_v26 = vpop.f32.mrf.mxu0  ;;  %1968 = vst [vmem:[#allocation1] ss:$4 sm:$0xff] %v3957_v52 }
 0x2d8   : > { %v1024_v35 = vsel %vm1017_vm2, %v4093_v26, -inf }
 0x2d9   : > { %1025 = vmax.xlane.f32.xlu1 %v1024_v35 }
 0x2de   : > { %v4098_v28 = vld.sshfl [vmem:[#allocation1] sm:$0xff pattern:$0x73625140] }
 0x2df   : > { %v897_v29 = vpop.f32.mrf.mxu0  ;;  %1992 = vst [vmem:[#allocation1] ss:$4 sm:$0xff] %v3970_v1 }
 0x2e6   : > { %v4101_v30 = vld.sshfl [vmem:[#allocation1] sm:$0xff pattern:$0x73625140] }
 0x2e7   : > { %1997 = vst [vmem:[#allocation1] ss:$4 sm:$0xff] %v3970_v1 }
 0x2ed   : > { %v4104_v31 = vpop.f32.mrf.mxu3 }
 0x2ee   : > { %v1021_v38 = vsel %vm1017_vm2, %v4104_v31, -inf  ;;  %v4108_v39 = vld.sshfl [vmem:[#allocation1] sm:$0xff pattern:$0x73625140] }
 0x2ef   : > { %1022 = vmax.xlane.f32.xlu2 %v1021_v38  ;;  %2021 = vst [vmem:[#allocation1] ss:$4 sm:$0xff] %v3975_v17 }
 0x2f5   : > { %v874_v42 = vpop.f32.mrf.mxu3 }
 0x2f6   : > { %v4111_v43 = vld.sshfl [vmem:[#allocation1] sm:$0xff pattern:$0x73625140] }
 0x2f7   : > { %2026 = vst [vmem:[#allocation1] ss:$4 sm:$0xff] %v3975_v17 }
 0x2fd   : > { %v4114_v44 = vpop.f32.mrf.mxu3 }
 0x2fe   : > { %v1027_v45 = vsel %vm1017_vm2, %v4114_v44, -inf  ;;  %v4118_v50 = vld.sshfl [vmem:[#allocation1] sm:$0xff pattern:$0x73625140] }
 0x2ff   : > { %1028 = vmax.xlane.f32.xlu0 %v1027_v45  ;;  %2050 = vst [vmem:[#allocation1] ss:$4 sm:$0xff] %v3980_v23  ;;  %v4155_v45 = vpop.permute.xlu0 %1286 }
 0x305   : > { %v921_v51 = vpop.f32.mrf.mxu3  ;;  %v4121_v57 = vpop.f32.mrf.mxu2 }
 0x306   : > { %v1030_v47 = vsel %vm1017_vm2, %v4121_v57, -inf  ;;  %v4125_v48 = vld.sshfl [vmem:[#allocation1] sm:$0xff pattern:$0x73625140] }
 0x307   : > { %1031 = vmax.xlane.f32.xlu2 %v1030_v47  ;;  %2055 = vst [vmem:[#allocation1] ss:$4 sm:$0xff] %v3980_v23  ;;  %v4160_v47 = vpop.permute.xlu0 %1291 }
 0x30d   : > { %v944_v59 = vpop.f32.mrf.mxu2  ;;  %v4128_v53 = vpop.f32.mrf.mxu3 }
 0x30e   : > { %v1033_v54 = vsel %vm1017_vm2, %v4128_v53, -inf  ;;  %v4132_v62 = vld.sshfl [vmem:[#allocation1] sm:$0xff pattern:$0x73625140] }
 0x30f   : > { %1034 = vmax.xlane.f32.xlu1 %v1033_v54  ;;  %2079 = vst [vmem:[#allocation1] ss:$4 sm:$0xff] %v3985_v0 }
 0x315   : > { %v968_v60 = vpop.f32.mrf.mxu3  ;;  %v4135_v2 = vpop.f32.mrf.mxu2 }
 0x316   : > { %v1036_v5 = vsel %vm1017_vm2, %v4135_v2, -inf  ;;  %v4139_v12 = vld.sshfl [vmem:[#allocation1] sm:$0xff pattern:$0x73625140] }
 0x317   : > { %1037 = vmax.xlane.f32.xlu2 %v1036_v5  ;;  %2084 = vst [vmem:[#allocation1] ss:$4 sm:$0xff] %v3985_v0  ;;  %v4166_v5 = vpop.permute.xlu1 %1315 }
 0x31d   : > { %v991_v16 = vpop.f32.mrf.mxu2  ;;  %v4142_v24 = vpop.f32.mrf.mxu3 }
 0x31e   : > { %v1039_v7 = vsel %vm1017_vm2, %v4142_v24, -inf  ;;  %v4146_v35 = vld.sshfl [vmem:[#allocation1] sm:$0xff pattern:$0x73625140] }
 0x31f   : > { %1040 = vmax.xlane.f32.xlu1 %v1039_v7  ;;  %2388 = vst [vmem:[#allocation1] ss:$4 sm:$0xff] %v3947_v34 }
 0x325   : > { %v1015_v29 = vpop.f32.mrf.mxu3 }
 0x326   : > { %v4149_v38 = vld.sshfl [vmem:[#allocation1] sm:$0xff pattern:$0x73625140] }
 0x327   : > { %2393 = vst [vmem:[#allocation1] ss:$4 sm:$0xff] %v3947_v34 }
 0x32e   : > { %v4152_v42 = vld.sshfl [vmem:[#allocation1] sm:$0xff pattern:$0x73625140] }
 0x32f   : > { %2417 = vst [vmem:[#allocation1] ss:$4 sm:$0xff] %v3953_v49 }
 0x336   : > { %v4157_v51 = vld.sshfl [vmem:[#allocation1] sm:$0xff pattern:$0x73625140] }
 0x337   : > { %2422 = vst [vmem:[#allocation1] ss:$4 sm:$0xff] %v3953_v49 }
 0x33e   : > { %v4162_v59 = vld.sshfl [vmem:[#allocation1] sm:$0xff pattern:$0x73625140] }
 0x33f   : > { %2446 = vst [vmem:[#allocation1] ss:$4 sm:$0xff] %v3963_v58 }
 0x342   : > { %v1020_v54 = vpop.xlane.xlu0 %1019 }
 0x343   : > { %v1042_v60 = vsub.f32 %v4084_v37, %v1020_v54 }
 0x345   : > { %v1050_v16 = vmul.f32 1.442695, %v1042_v60 }
 0x346   : > { %v4168_v7 = vld.sshfl [vmem:[#allocation1] sm:$0xff pattern:$0x73625140] }
 0x347   : > { %3465 = vpow2.f32 %v1050_v16  ;;  %2451 = vst [vmem:[#allocation1] ss:$4 sm:$0xff] %v3963_v58 }
 0x34c   : > { %v1026_v29 = vpop.xlane.xlu1 %1025 }
 0x34d   : > { %v4171_v4 = vpop.eup %3465  ;;  %v1044_v3 = vsub.f32 %v4093_v26, %v1026_v29  ;;  %v4186_v26 = vpop.permute.xlu2 %1320 }
 0x34e   : > { %v1066_v15 = vsel %vm1017_vm2, %v4171_v4, 0.0  ;;  %v4176_v14 = vld.sshfl [vmem:[#allocation1] sm:$0xff pattern:$0x73625140] }
 0x34f   : > { %v1054_v9 = vmul.f32 1.442695, %v1044_v3  ;;  %1067 = vadd.xlane.f32.xlu1 %v1066_v15  ;;  %2475 = vst [vmem:[#allocation1] ss:$4 sm:$0xff] %v3957_v52 }
 0x351   : > { %3467 = vpow2.f32 %v1054_v9 }
 0x356   : > { %v4179_v37 = vld.sshfl [vmem:[#allocation1] sm:$0xff pattern:$0x73625140] }
 0x357   : > { %4947 = vst [vmem:[#allocation14_spill] sm:$0xff] %v4179_v37  ;;  %v4181_v54 = vpop.eup %3467 }
 0x358   : > { %2480 = vst [vmem:[#allocation1] ss:$4 sm:$0xff] %v3957_v52  ;;  %v1072_v60 = vsel %vm1017_vm2, %v4181_v54, 0.0 }
 0x359   : > { %1073 = vadd.xlane.f32.xlu2 %v1072_v60 }
 0x35f   : > { %v4188_v16 = vld.sshfl [vmem:[#allocation1] sm:$0xff pattern:$0x73625140] }
 0x360   : > { %2504 = vst [vmem:[#allocation1] ss:$4 sm:$0xff] %v3970_v1 }
 0x362   : > { %v1023_v3 = vpop.xlane.xlu2 %1022 }
 0x363   : > { %v1043_v15 = vsub.f32 %v4104_v31, %v1023_v3 }
 0x365   : > { %v1052_v9 = vmul.f32 1.442695, %v1043_v15 }
 0x367   : > { %v4192_v29 = vld.sshfl [vmem:[#allocation1] sm:$0xff pattern:$0x73625140]  ;;  %3469 = vpow2.f32 %v1052_v9 }
 0x368   : > { %2509 = vst [vmem:[#allocation1] ss:$4 sm:$0xff] %v3970_v1 }
 0x36d   : > { %v4195_v8 = vpop.eup %3469 }
 0x36e   : > { %v1069_v60 = vsel %vm1017_vm2, %v4195_v8, 0.0 }
 0x36f   : > { %v4199_v13 = vld.sshfl [vmem:[#allocation1] sm:$0xff pattern:$0x73625140]  ;;  %1070 = vadd.xlane.f32.xlu0 %v1069_v60 }
 0x370   : > { %4948 = vst [vmem:[#allocation15_spill] sm:$0xff] %v4199_v13 }
 0x371   : > { %2533 = vst [vmem:[#allocation1] ss:$4 sm:$0xff] %v3975_v17  ;;  %1407 = vrot.lane.b32.xlu2 %v4025_v41, %s3662_s22 }
 0x372   : > { %v1029_v31 = vpop.xlane.xlu0 %1028 }
 0x373   : > { %v1045_v3 = vsub.f32 %v4114_v44, %v1029_v31 }
 0x375   : > { %v1056_v15 = vmul.f32 1.442695, %v1045_v3 }
 0x377   : > { %3471 = vpow2.f32 %v1056_v15 }
 0x378   : > { %v4205_v9 = vld.sshfl [vmem:[#allocation1] sm:$0xff pattern:$0x73625140] }
 0x379   : > { %4949 = vst [vmem:[#allocation16_spill] sm:$0xff] %v4205_v9 }
 0x37a   : > { %2538 = vst [vmem:[#allocation1] ss:$4 sm:$0xff] %v3975_v17 }
 0x37d   : > { %v4208_v11 = vpop.eup %3471 }
 0x37e   : > { %v1075_v37 = vsel %vm1017_vm2, %v4208_v11, 0.0 }
 0x37f   : > { %1076 = vadd.xlane.f32.xlu1 %v1075_v37 }
 0x381   : > { %v4212_v60 = vld.sshfl [vmem:[#allocation1] sm:$0xff pattern:$0x73625140] }
 0x382   : > { %2562 = vst [vmem:[#allocation1] ss:$4 sm:$0xff] %v3980_v23  ;;  %v1035_v41 = vpop.xlane.xlu1 %1034 }
 0x383   : > { %1436 = vrot.lane.b32.xlu0 %v4036_v55, %s3662_s22  ;;  %v1047_v31 = vsub.f32 %v4128_v53, %v1035_v41  ;;  %v1032_v55 = vpop.xlane.xlu2 %1031 }
 0x384   : > { %v1046_v53 = vsub.f32 %v4121_v57, %v1032_v55 }
 0x385   : > { %v1060_v3 = vmul.f32 1.442695, %v1047_v31 }
 0x386   : > { %v1058_v41 = vmul.f32 1.442695, %v1046_v53 }
 0x387   : > { %3473 = vpow2.f32 %v1060_v3 }
 0x388   : > { %3475 = vpow2.f32 %v1058_v41  ;;  %v1326_v41 = vsel %vm833_vm1, %v4186_v26, 0 }
 0x389   : > { %v4217_v44 = vld.sshfl [vmem:[#allocation1] sm:$0xff pattern:$0x73625140] }
 0x38a   : > { %4950 = vst [vmem:[#allocation17_spill] sm:$0xff] %v4217_v44 }
 0x38b   : > { %2567 = vst [vmem:[#allocation1] ss:$4 sm:$0xff] %v3980_v23 }
 0x38d   : > { %v4224_v9 = vpop.eup %3473 }
 0x38e   : > { %v1081_v44 = vsel %vm1017_vm2, %v4224_v9, 0.0  ;;  %v4234_v31 = vpop.eup %3475 }
 0x38f   : > { %v1078_v3 = vsel %vm1017_vm2, %v4234_v31, 0.0 }
 0x392   : > { %v4221_v15 = vld.sshfl [vmem:[#allocation1] sm:$0xff pattern:$0x73625140]  ;;  %v1041_v13 = vpop.xlane.xlu1 %1040 }
 0x393   : > { %4951 = vst [vmem:[#allocation18_spill] sm:$0xff] %v4221_v15 }
 0x394   : > { %2591 = vst [vmem:[#allocation1] ss:$4 sm:$0xff] %v3985_v0 }
 0x398   : > { %1344 = vrot.lane.b32.xlu1 %v4000_v22, %s3661_s21 }
 0x39a   : > { %1082 = vadd.xlane.f32.xlu2 %v1081_v44  ;;  %v1049_v44 = vsub.f32 %v4142_v24, %v1041_v13 }
 0x39b   : > { %v4226_v37 = vld.sshfl [vmem:[#allocation1] sm:$0xff pattern:$0x73625140] }
 0x39c   : > { %4952 = vst [vmem:[#allocation19_spill] sm:$0xff] %v4226_v37  ;;  %v1038_v37 = vpop.xlane.xlu2 %1037  ;;  %v1064_v57 = vmul.f32 1.442695, %v1049_v44 }
 0x39d   : > { %2596 = vst [vmem:[#allocation1] ss:$4 sm:$0xff] %v3985_v0  ;;  %v1048_v15 = vsub.f32 %v4135_v2, %v1038_v37 }
 0x39f   : > { %v1062_v22 = vmul.f32 1.442695, %v1048_v15 }
 0x3a1   : > { %3477 = vpow2.f32 %v1062_v22 }
 0x3a2   : > { %3479 = vpow2.f32 %v1064_v57 }
 0x3a7   : > { %v4244_v55 = vpop.eup %3477 }
 0x3a8   : > { %v1084_v2 = vsel %vm1017_vm2, %v4244_v55, 0.0  ;;  %v4252_v13 = vpop.eup %3479 }
 0x3ad   : > { %1079 = vadd.xlane.f32.xlu0 %v1078_v3  ;;  %v1297_v3 = vsel %vm833_vm1, %v4160_v47, 0 }
 0x3b2   : > { %1349 = vrot.lane.b32.xlu2 %v4005_v27, %s3662_s22 }
 0x3ba   : > { %1402 = vrot.lane.b32.xlu2 %v4020_v40, %s3661_s21  ;;  %v1087_v40 = vsel %vm1017_vm2, %v4252_v13, 0.0 }
 0x3c1   : > { %1378 = vrot.lane.b32.xlu0 %v4016_v33, %s3662_s22 }
 0x3c2   : > { %1373 = vrot.lane.b32.xlu2 %v4011_v32, %s3661_s21  ;;  %v1068_v27 = vpop.xlane.xlu1 %1067  ;;  %1085 = vadd.xlane.f32.xlu1 %v1084_v2  ;;  %v1255_v32 = vrot.slane %v3985_v0, 2 }
 0x3c3   : > { %3481 = vrcp.f32 %v1068_v27 }
 0x3c4   : > { %v1260_v53 = vsel %vm798_vm14, %v1255_v32, 0 }
 0x3c9   : > { %v3482_v24 = vpop.eup %3481  ;;  %1431 = vrot.lane.b32.xlu0 %v4030_v46, %s3661_s21 }
 0x3ca   : > { %v1098_v33 = vmul.f32 %v3482_v24, %v4171_v4  ;;  %1460 = vrot.lane.b32.xlu2 %v4041_v56, %s3661_s21  ;;  %1088 = vadd.xlane.f32.xlu1 %v1087_v40 }
 0x3cc   : > { %v1074_v15 = vpop.xlane.xlu2 %1073  ;;  %v1106_v37 = vpack.c.bf16 %v1098_v33, %v1098_v33 }
 0x3cd   : > { %3483 = vrcp.f32 %v1074_v15 }
 0x3ce   : > { %3306 = vmatmul.msk.bf16.vlgmr.msrb.gmra.mxu1 %vm1115_vm3, %v1106_v37 }
 0x3cf   : > { %1269 = vmatpush.bf16.msrb.mxu1 %v1260_v53 }
 0x3d1   : > { %1465 = vrot.lane.b32.xlu0 %v4049_v61, %s3662_s22 }
 0x3d2   : > { %1611 = vrot.lane.b32.xlu2 %v3947_v34, %s3661_s21 }
 0x3d3   : > { %v3484_v4 = vpop.eup %3483 }
 0x3d4   : > { %v1100_v46 = vmul.f32 %v3484_v4, %v4181_v54 }
 0x3d6   : > { %v1108_v56 = vpack.c.bf16 %v1100_v46, %v1100_v46 }
 0x3d8   : > { %3308 = vmatmul.msk.bf16.vlgmr.msrb.gmra.mxu3 %vm1115_vm3, %v1108_v56 }
 0x3d9   : > { %1335 = vmatpush.bf16.xpose.msrb.mxu3 %v1326_v41  ;;  %1489 = vrot.lane.b32.xlu0 %v4060_v6, %s3661_s21 }
 0x3da   : > { %1699 = vrot.lane.b32.xlu2 %v3970_v1, %s3661_s21 }
 0x3e1   : > { %1633 = vrot.lane.b32.xlu0 %v3953_v49, %s3661_s21 }
 0x3e2   : > { %1655 = vrot.lane.b32.xlu2 %v3963_v58, %s3661_s21  ;;  %v1071_v61 = vpop.xlane.xlu0 %1070 }
 0x3e3   : > { %3485 = vrcp.f32 %v1071_v61  ;;  %1494 = vrot.lane.b32.xlu1 %v4066_v18, %s3662_s22 }
 0x3e9   : > { %v3486_v54 = vpop.eup %3485  ;;  %1884 = vrot.lane.b32.xlu0 %v4072_v20, %s3663_s23 }
 0x3ea   : > { %v1099_v6 = vmul.f32 %v3486_v54, %v4195_v8  ;;  %1677 = vrot.lane.b32.xlu2 %v3957_v52, %s3661_s21 }
 0x3eb   : > { %1721 = vrot.lane.b32.xlu1 %v3975_v17, %s3661_s21 }
 0x3ec   : > { %v1107_v26 = vpack.c.bf16 %v1099_v6, %v1099_v6 }
 0x3ee   : > { %3307 = vmatmul.msk.bf16.vlgmr.msra.gmra.mxu2 %vm1115_vm3, %v1107_v26 }
 0x3ef   : > { %1306 = vmatpush.bf16.xpose.msra.mxu2 %v1297_v3 }
 0x3f1   : > { %1913 = vrot.lane.b32.xlu0 %v4078_v63, %s3663_s23  ;;  %v1408_v63 = vpop.permute.xlu2 %1407 }
 0x3f2   : > { %1743 = vrot.lane.b32.xlu2 %v3980_v23, %s3661_s21  ;;  %v1077_v8 = vpop.xlane.xlu1 %1076  ;;  %v1413_v32 = vsel %vm833_vm1, %v1408_v63, 0 }
 0x3f3   : > { %3487 = vrcp.f32 %v1077_v8  ;;  %1879 = vrot.lane.b32.xlu1 %v4069_v19, %s3664_s29 }
 0x3f9   : > { %v3488_v18 = vpop.eup %3487  ;;  %1765 = vrot.lane.b32.xlu0 %v3985_v0, %s3661_s21 }
 0x3fa   : > { %v1101_v20 = vmul.f32 %v3488_v18, %v4208_v11  ;;  %2029 = vrot.lane.b32.xlu2 %v4118_v50, %s3663_s23  ;;  %v1437_v11 = vpop.permute.xlu0 %1436 }
 0x3fb   : > { %v1442_v27 = vsel %vm833_vm1, %v1437_v11, 0 }
 0x3fc   : > { %v1109_v47 = vpack.c.bf16 %v1101_v20, %v1101_v20 }
 0x3fe   : > { %3309 = vmatmul.msk.bf16.vlgmr.msra.gmra.mxu1 %vm1115_vm3, %v1109_v47 }
 0x401   : > { %1908 = vrot.lane.b32.xlu0 %v4075_v21, %s3664_s29 }
 0x409   : > { %2000 = vrot.lane.b32.xlu0 %v4108_v39, %s3663_s23 }
 0x40a   : > { %v1345_v15 = vpop.permute.xlu1 %1344 }
 0x40d   : > { %v1083_v19 = vpop.xlane.xlu2 %1082 }
 0x40e   : > { %3489 = vrcp.f32 %v1083_v19 }
 0x414   : > { %v3490_v22 = vpop.eup %3489 }
 0x415   : > { %v1103_v44 = vmul.f32 %v3490_v22, %v4224_v9  ;;  %v1350_v57 = vpop.permute.xlu2 %1349 }
 0x416   : > { %v1355_v2 = vsel %vm833_vm1, %v1350_v57, 0 }
 0x417   : > { %v1111_v50 = vpack.c.bf16 %v1103_v44, %v1103_v44  ;;  %1364 = vmatpush.bf16.xpose.msrb.mxu0 %v1355_v2 }
 0x419   : > { %3311 = vmatmul.msk.bf16.vlgmr.msra.gmra.mxu3 %vm1115_vm3, %v1111_v50 }
 0x41a   : > { %1451 = vmatpush.bf16.xpose.msra.mxu3 %v1442_v27 }
 0x41d   : > { %v1403_v21 = vpop.permute.xlu2 %1402 }
 0x420   : > { %v1080_v24 = vpop.xlane.xlu0 %1079 }
 0x421   : > { %3491 = vrcp.f32 %v1080_v24 }
 0x425   : > { %v1374_v39 = vpop.permute.xlu2 %1373 }
 0x427   : > { %v3492_v40 = vpop.eup %3491 }
 0x428   : > { %v1102_v33 = vmul.f32 %v3492_v40, %v4234_v31 }
 0x429   : > { %3315 = vmatmul.msk.bf16.vlgmr.msrb.gmra.mxu3 %vm833_vm1, %v4166_v5 }
 0x42a   : > { %v1110_v9 = vpack.c.bf16 %v1102_v33, %v1102_v33 }
 0x42c   : > { %3310 = vmatmul.msk.bf16.vlgmr.msrb.gmra.mxu2 %vm1115_vm3, %v1110_v9 }
 0x42d   : > { %1422 = vmatpush.bf16.xpose.msrb.mxu2 %v1413_v32  ;;  %v1461_v37 = vpop.permute.xlu2 %1460 }
 0x433   : > { %v1379_v53 = vpop.permute.xlu0 %1378 }
 0x434   : > { %v1384_v4 = vsel %vm833_vm1, %v1379_v53, 0 }
 0x435   : > { %v1612_v46 = vpop.permute.xlu2 %1611  ;;  %v1086_v56 = vpop.xlane.xlu1 %1085  ;;  %1393 = vmatpush.bf16.xpose.msra.mxu1 %v1384_v4 }
 0x436   : > { %3493 = vrcp.f32 %v1086_v56  ;;  %v1613_v41 = vrot.slane %v1612_v46, 2 }
 0x438   : > { %v1618_v5 = vsel %vm798_vm14, %v1613_v41, 0 }
 0x43b   : > { %v1432_v31 = vpop.permute.xlu0 %1431 }
 0x43c   : > { %v3494_v61 = vpop.eup %3493  ;;  %3314 = vmatmul.msk.bf16.vlgmr.msra.gmra.mxu2 %vm833_vm1, %v4155_v45  ;;  %3319 = vmatmul.msk.bf16.vlgmr.msra.gmra.mxu3 %vm833_vm1, %v1432_v31 }
 0x43d   : > { %v1104_v54 = vmul.f32 %v3494_v61, %v4244_v55  ;;  %1627 = vmatpush.bf16.msra.mxu2 %v1618_v5  ;;  %v1700_v6 = vpop.permute.xlu2 %1699  ;;  %v1089_v26 = vpop.xlane.xlu1 %1088 }
 0x43e   : > { %3495 = vrcp.f32 %v1089_v26  ;;  %v1701_v19 = vrot.slane %v1700_v6, 2 }
 0x43f   : > { %v1112_v3 = vpack.c.bf16 %v1104_v54, %v1104_v54 }
 0x440   : > { %v1706_v44 = vsel %vm798_vm14, %v1701_v19, 0 }
 0x441   : > { %3312 = vmatmul.msk.bf16.vlgmr.msra.gmra.mxu0 %vm1115_vm3, %v1112_v3 }
 0x443   : > { %v1466_v8 = vpop.permute.xlu0 %1465 }
 0x444   : > { %v3496_v18 = vpop.eup %3495  ;;  %v1471_v20 = vsel %vm833_vm1, %v1466_v8, 0 }
 0x445   : > { %v1105_v47 = vmul.f32 %v3496_v18, %v4252_v13  ;;  %1480 = vmatpush.bf16.xpose.msra.mxu0 %v1471_v20  ;;  %v1656_v63 = vpop.permute.xlu2 %1655 }
 0x446   : > { %v1657_v57 = vrot.slane %v1656_v63, 2 }
 0x447   : > { %v1113_v45 = vpack.c.bf16 %v1105_v47, %v1105_v47 }
 0x448   : > { %v1662_v2 = vsel %vm798_vm14, %v1657_v57, 0 }
 0x449   : > { %3313 = vmatmul.msk.bf16.vlgmr.msrb.gmra.mxu1 %vm1115_vm3, %v1113_v45 }
 0x44b   : > { %v4327_v55 = vpop.f32.mrf.mxu1  ;;  %v1490_v22 = vpop.permute.xlu0 %1489 }
 0x44c   : > { %3318 = vmatmul.msk.bf16.vlgmr.msrb.gmra.mxu2 %vm833_vm1, %v1403_v21 }
 0x44d   : > { %1715 = vmatpush.bf16.msrb.mxu2 %v1706_v44  ;;  %v1678_v11 = vpop.permute.xlu2 %1677 }
 0x44e   : > { %v1679_v24 = vrot.slane %v1678_v11, 2 }
 0x450   : > { %v1684_v21 = vsel %vm798_vm14, %v1679_v24, 0 }
 0x451   : > { %3316 = vmatmul.msk.bf16.vlgmr.msrb.gmra.mxu0 %vm833_vm1, %v1345_v15 }
 0x452   : > { %1671 = vmatpush.bf16.msrb.mxu0 %v1662_v2 }
 0x453   : > { %v1133_v13 = vpop.f32.mrf.mxu1  ;;  %v1634_v50 = vpop.permute.xlu0 %1633 }
 0x454   : > { %v1635_v27 = vrot.slane %v1634_v50, 2 }
 0x455   : > { %v1495_v40 = vpop.permute.xlu1 %1494  ;;  %v1744_v32 = vpop.permute.xlu2 %1743 }
 0x456   : > { %v1640_v33 = vsel %vm798_vm14, %v1635_v27, 0  ;;  %v1500_v9 = vsel %vm833_vm1, %v1495_v40, 0  ;;  %v1745_v4 = vrot.slane %v1744_v32, 2 }
 0x457   : > { %1509 = vmatpush.bf16.xpose.msrb.mxu1 %v1500_v9  ;;  %1649 = vmatpush.bf16.msrb.mxu3 %v1640_v33 }
 0x458   : > { %v1750_v31 = vsel %vm798_vm14, %v1745_v4, 0 }
 0x459   : > { %3317 = vmatmul.msk.bf16.vlgmr.msra.gmra.mxu1 %vm833_vm1, %v1374_v39 }
 0x45b   : > { %v4337_v53 = vpop.f32.mrf.mxu3  ;;  %v4339_v15 = vpop.permute.xlu0 %1884 }
 0x45d   : > { %v1722_v46 = vpop.permute.xlu1 %1721 }
 0x45e   : > { %v1723_v56 = vrot.slane %v1722_v46, 2 }
 0x45f   : > { %1693 = vmatpush.bf16.msra.mxu1 %v1684_v21 }
 0x460   : > { %v1728_v41 = vsel %vm798_vm14, %v1723_v56, 0 }
 0x461   : > { %3320 = vmatmul.msk.bf16.vlgmr.msra.gmra.mxu0 %vm833_vm1, %v1461_v37  ;;  %1737 = vmatpush.bf16.msra.mxu3 %v1728_v41 }
 0x462   : > { %1759 = vmatpush.bf16.msra.mxu0 %v1750_v31 }
 0x463   : > { %v1173_v61 = vpop.f32.mrf.mxu3  ;;  %v4344_v5 = vpop.permute.xlu0 %1913 }
 0x469   : > { %3321 = vmatmul.msk.bf16.vlgmr.msrb.gmra.mxu1 %vm833_vm1, %v1490_v22 }
 0x46b   : > { %v1766_v39 = vpop.permute.xlu0 %1765 }
 0x46c   : > { %v1767_v54 = vrot.slane %v1766_v39, 2 }
 0x46e   : > { %v1772_v6 = vsel %vm798_vm14, %v1767_v54, 0 }
 0x46f   : > { %1781 = vmatpush.bf16.msrb.mxu1 %v1772_v6 }
 0x471   : > { %v4348_v26 = vpop.f32.mrf.mxu2 }
 0x479   : > { %v1153_v3 = vpop.f32.mrf.mxu2 }
 0x47b   : > { %v4350_v8 = vpop.f32.mrf.mxu1 }
 0x483   : > { %v1193_v18 = vpop.f32.mrf.mxu1 }
 0x49c   : > { %v4352_v20 = vpop.f32.mrf.mxu3 }
 0x4a4   : > { %v1233_v37 = vpop.f32.mrf.mxu3 }
 0x4ac   : > { %v1337_v47 = vpop.f32.mrf.mxu3 }
 0x4ad   : > { %v1518_v56 = vsel %vm1017_vm2, %v1337_v47, -inf }
 0x4af   : > { %v4354_v63 = vpop.f32.mrf.mxu2 }
 0x4b4   : > { %v1339_v45 = vpop.f32.mrf.mxu3 }
 0x4b5   : > { %v4381_v45 = vpop.permute.xlu1 %1879 }
 0x4b7   : > { %v1213_v19 = vpop.f32.mrf.mxu2 }
 0x4be   : > { %v4356_v22 = vpop.f32.mrf.mxu0 }
 0x4bf   : > { %v1308_v44 = vpop.f32.mrf.mxu2  ;;  %v4358_v57 = vpop.f32.mrf.mxu3 }
 0x4c0   : > { %v1515_v11 = vsel %vm1017_vm2, %v1308_v44, -inf  ;;  %v1530_v3 = vsel %vm1017_vm2, %v4358_v57, -inf }
 0x4c1   : > { %1516 = vmax.xlane.f32.xlu1 %v1515_v11 }
 0x4c6   : > { %v1253_v2 = vpop.f32.mrf.mxu0  ;;  %v4361_v13 = vpop.f32.mrf.mxu1 }
 0x4c7   : > { %v1310_v50 = vpop.f32.mrf.mxu2  ;;  %v1455_v27 = vpop.f32.mrf.mxu3 }
 0x4c8   : > { %v4383_v50 = vpop.permute.xlu0 %1908  ;;  %v4385_v27 = vpop.permute.xlu2 %2029 }
 0x4ce   : > { %v1273_v24 = vpop.f32.mrf.mxu1  ;;  %v1366_v40 = vpop.f32.mrf.mxu0 }
 0x4cf   : > { %v1424_v33 = vpop.f32.mrf.mxu2  ;;  %v1521_v9 = vsel %vm1017_vm2, %v1366_v40, -inf }
 0x4d0   : > { %1522 = vmax.xlane.f32.xlu2 %v1521_v9  ;;  %v1527_v21 = vsel %vm1017_vm2, %v1424_v33, -inf }
 0x4d1   : > { %1528 = vmax.xlane.f32.xlu0 %v1527_v21 }
 0x4d6   : > { %v1368_v32 = vpop.f32.mrf.mxu0  ;;  %v4365_v4 = vpop.f32.mrf.mxu1 }
 0x4d7   : > { %v1426_v46 = vpop.f32.mrf.mxu2  ;;  %v1524_v41 = vsel %vm1017_vm2, %v4365_v4, -inf }
 0x4d8   : > { %1519 = vmax.xlane.f32.xlu2 %v1518_v56 }
 0x4d9   : > { %1525 = vmax.xlane.f32.xlu0 %v1524_v41 }
 0x4de   : > { %v1397_v31 = vpop.f32.mrf.mxu1  ;;  %v1482_v61 = vpop.f32.mrf.mxu0 }
 0x4df   : > { %v1533_v39 = vsel %vm1017_vm2, %v1482_v61, -inf }
 0x4e0   : > { %1534 = vmax.xlane.f32.xlu1 %v1533_v39 }
 0x4e6   : > { %v1484_v54 = vpop.f32.mrf.mxu0  ;;  %v4371_v6 = vpop.f32.mrf.mxu1 }
 0x4e7   : > { %v1536_v18 = vsel %vm1017_vm2, %v4371_v6, -inf }
 0x4e8   : > { %1531 = vmax.xlane.f32.xlu1 %v1530_v3  ;;  %1537 = vmax.xlane.f32.xlu2 %v1536_v18 }
 0x4ee   : > { %v1513_v37 = vpop.f32.mrf.mxu1 }
 0x500   : > { %1995 = vrot.lane.b32.xlu2 %v4101_v30, %s3664_s29  ;;  %v4391_v30 = vpop.permute.xlu0 %2000 }
 0x501   : > { %1971 = vrot.lane.b32.xlu1 %v4098_v28, %s3663_s23 }
 0x534   : > { %v1517_v19 = vpop.xlane.xlu1 %1516 }
 0x535   : > { %v1539_v11 = vsub.f32 %v1308_v44, %v1517_v19 }
 0x537   : > { %v1547_v2 = vmul.f32 1.442695, %v1539_v11 }
 0x539   : > { %3497 = vpow2.f32 %v1547_v2 }
 0x53f   : > { %v4387_v24 = vpop.eup %3497 }
 0x540   : > { %v1563_v9 = vsel %vm1017_vm2, %v4387_v24, 0.0 }
 0x541   : > { %1564 = vadd.xlane.f32.xlu0 %v1563_v9 }
 0x543   : > { %v1523_v21 = vpop.xlane.xlu2 %1522 }
 0x544   : > { %v1541_v28 = vsub.f32 %v1366_v40, %v1523_v21  ;;  %v1529_v46 = vpop.xlane.xlu0 %1528 }
 0x545   : > { %v1543_v31 = vsub.f32 %v1424_v33, %v1529_v46 }
 0x546   : > { %v1551_v32 = vmul.f32 1.442695, %v1541_v28 }
 0x547   : > { %v1555_v3 = vmul.f32 1.442695, %v1543_v31 }
 0x548   : > { %3499 = vpow2.f32 %v1551_v32 }
 0x54b   : > { %v1520_v44 = vpop.xlane.xlu2 %1519 }
 0x54c   : > { %v1540_v56 = vsub.f32 %v1337_v47, %v1520_v44  ;;  %v1526_v46 = vpop.xlane.xlu0 %1525 }
 0x54e   : > { %v4393_v41 = vpop.eup %3499  ;;  %v1549_v39 = vmul.f32 1.442695, %v1540_v56 }
 0x54f   : > { %v1569_v54 = vsel %vm1017_vm2, %v4393_v41, 0.0 }
 0x550   : > { %3501 = vpow2.f32 %v1549_v39  ;;  %1570 = vadd.xlane.f32.xlu1 %v1569_v54  ;;  %v1890_v54 = vsel %vm833_vm1, %v4339_v15, 0 }
 0x551   : > { %3503 = vpow2.f32 %v1555_v3 }
 0x553   : > { %v1535_v18 = vpop.xlane.xlu1 %1534 }
 0x554   : > { %v1545_v37 = vsub.f32 %v1482_v61, %v1535_v18 }
 0x555   : > { %1942 = vrot.lane.b32.xlu0 %v4088_v25, %s3663_s23 }
 0x556   : > { %v4399_v40 = vpop.eup %3501  ;;  %v1559_v19 = vmul.f32 1.442695, %v1545_v37 }
 0x557   : > { %v1566_v47 = vsel %vm1017_vm2, %v4399_v40, 0.0  ;;  %v4403_v11 = vpop.eup %3503 }
 0x558   : > { %3505 = vpow2.f32 %v1559_v19  ;;  %1567 = vadd.xlane.f32.xlu1 %v1566_v47  ;;  %v1575_v21 = vsel %vm1017_vm2, %v4403_v11, 0.0 }
 0x55b   : > { %v1532_v33 = vpop.xlane.xlu1 %1531 }
 0x55c   : > { %v1544_v2 = vsub.f32 %v4358_v57, %v1532_v33  ;;  %v1542_v57 = vsub.f32 %v4365_v4, %v1526_v46 }
 0x55e   : > { %v4406_v9 = vpop.eup %3505  ;;  %v1557_v61 = vmul.f32 1.442695, %v1544_v2  ;;  %v1553_v44 = vmul.f32 1.442695, %v1542_v57  ;;  %v1919_v2 = vsel %vm833_vm1, %v4344_v5, 0  ;;  %v2006_v5 = vsel %vm833_vm1, %v4391_v30, 0 }
 0x55f   : > { %v1581_v25 = vsel %vm1017_vm2, %v4406_v9, 0.0 }
 0x560   : > { %3507 = vpow2.f32 %v1557_v61  ;;  %1582 = vadd.xlane.f32.xlu2 %v1581_v25  ;;  %1576 = vadd.xlane.f32.xlu1 %v1575_v21 }
 0x561   : > { %3509 = vpow2.f32 %v1553_v44 }
 0x566   : > { %v4412_v28 = vpop.eup %3507 }
 0x567   : > { %v1578_v32 = vsel %vm1017_vm2, %v4412_v28, 0.0  ;;  %v4419_v56 = vpop.eup %3509 }
 0x568   : > { %1579 = vadd.xlane.f32.xlu1 %v1578_v32  ;;  %v1572_v31 = vsel %vm1017_vm2, %v4419_v56, 0.0 }
 0x578   : > { %1966 = vrot.lane.b32.xlu2 %v4091_v10, %s3664_s29  ;;  %v1538_v10 = vpop.xlane.xlu2 %1537 }
 0x579   : > { %v1546_v4 = vsub.f32 %v4371_v6, %v1538_v10  ;;  %v4454_v6 = vpop.permute.xlu1 %1971  ;;  %v2035_v10 = vsel %vm833_vm1, %v4385_v27, 0 }
 0x57f   : > { %1573 = vadd.xlane.f32.xlu0 %v1572_v31 }
 0x580   : > { %2053 = vrot.lane.b32.xlu2 %v4125_v48, %s3664_s29  ;;  %v1561_v48 = vmul.f32 1.442695, %v1546_v4  ;;  %v4466_v18 = vpop.permute.xlu2 %1995 }
 0x581   : > { %1937 = vrot.lane.b32.xlu1 %v4081_v36, %s3664_s29 }
 0x582   : > { %3511 = vpow2.f32 %v1561_v48 }
 0x588   : > { %2204 = vrot.lane.b32.xlu2 %v3947_v34, %s3664_s29  ;;  %v4442_v36 = vpop.eup %3511 }
 0x590   : > { %2248 = vrot.lane.b32.xlu2 %v3963_v58, %s3664_s29 }
 0x593   : > { %2024 = vrot.lane.b32.xlu0 %v4111_v43, %s3664_s29  ;;  %v1584_v43 = vsel %vm1017_vm2, %v4442_v36, 0.0 }
 0x598   : > { %2292 = vrot.lane.b32.xlu2 %v3970_v1, %s3664_s29 }
 0x59b   : > { %2058 = vrot.lane.b32.xlu0 %v4132_v62, %s3663_s23 }
 0x5a0   : > { %2314 = vrot.lane.b32.xlu2 %v3975_v17, %s3664_s29 }
 0x5a3   : > { %2082 = vrot.lane.b32.xlu0 %v4139_v12, %s3664_s29 }
 0x5a8   : > { %2396 = vrot.lane.b32.xlu2 %v4152_v42, %s3665_s8 }
 0x5ab   : > { %1585 = vadd.xlane.f32.xlu1 %v1584_v43  ;;  %2226 = vrot.lane.b32.xlu0 %v3953_v49, %s3664_s29 }
 0x5b0   : > { %2483 = vrot.lane.b32.xlu2 %v4188_v16, %s3665_s8 }
 0x5b3   : > { %2336 = vrot.lane.b32.xlu0 %v3980_v23, %s3664_s29 }
 0x5b4   : > { %v1565_v62 = vpop.xlane.xlu0 %1564 }
 0x5b5   : > { %3513 = vrcp.f32 %v1565_v62 }
 0x5bb   : > { %v3514_v12 = vpop.eup %3513  ;;  %2358 = vrot.lane.b32.xlu0 %v3985_v0, %s3664_s29 }
 0x5bc   : > { %v1595_v42 = vmul.f32 %v3514_v12, %v4387_v24 }
 0x5be   : > { %v1603_v39 = vpack.c.bf16 %v1595_v42, %v1595_v42 }
 0x5c0   : > { %3322 = vmatmul.msk.bf16.vlgmr.msra.gmra.mxu2 %vm1115_vm3, %v1603_v39 }
 0x5c1   : > { %1899 = vmatpush.bf16.xpose.msra.mxu2 %v1890_v54  ;;  %v1977_v54 = vsel %vm833_vm1, %v4454_v6, 0 }
 0x5c3   : > { %v1571_v16 = vpop.xlane.xlu1 %1570  ;;  %2425 = vrot.lane.b32.xlu0 %v4162_v59, %s3665_s8 }
 0x5c4   : > { %3515 = vrcp.f32 %v1571_v16  ;;  %2087 = vrot.lane.b32.xlu1 %v4146_v35, %s3663_s23 }
 0x5c7   : > { %v1943_v15 = vpop.permute.xlu0 %1942 }
 0x5c8   : > { %v1948_v19 = vsel %vm833_vm1, %v1943_v15, 0 }
 0x5ca   : > { %v3516_v3 = vpop.eup %3515 }
 0x5cb   : > { %v1597_v24 = vmul.f32 %v3516_v3, %v4393_v41  ;;  %v1568_v37 = vpop.xlane.xlu1 %1567  ;;  %2420 = vrot.lane.b32.xlu0 %v4157_v51, %s3666_s9 }
 0x5cc   : > { %3517 = vrcp.f32 %v1568_v37  ;;  %2270 = vrot.lane.b32.xlu1 %v3957_v52, %s3664_s29  ;;  %s270_s29 = sand.u32 1, %s3647_s25  }
 0x5cd   : > { %v1605_v59 = vpack.c.bf16 %v1597_v24, %v1597_v24  ;;  %s3162_s28 = scalar_lea.sflag [#allocation4], %s270_s29 }
 0x5cf   : > { %3324 = vmatmul.msk.bf16.vlgmr.msrb.gmra.mxu0 %vm1115_vm3, %v1605_v59 }
 0x5d0   : > { %1957 = vmatpush.bf16.xpose.msrb.mxu0 %v1948_v19 }
 0x5d2   : > { %v3518_v35 = vpop.eup %3517 }
 0x5d3   : > { %v1596_v47 = vmul.f32 %v3518_v35, %v4399_v40  ;;  %v1583_v41 = vpop.xlane.xlu2 %1582  ;;  %v1577_v33 = vpop.xlane.xlu1 %1576  ;;  %2454 = vrot.lane.b32.xlu0 %v4176_v14, %s3665_s8 }
 0x5d4   : > { %3519 = vrcp.f32 %v1583_v41  ;;  %2391 = vrot.lane.b32.xlu1 %v4149_v38, %s3666_s9 }
 0x5d5   : > { %v1604_v51 = vpack.c.bf16 %v1596_v47, %v1596_v47  ;;  %3521 = vrcp.f32 %v1577_v33 }
 0x5d7   : > { %3323 = vmatmul.msk.bf16.vlgmr.msrb.gmra.mxu3 %vm1115_vm3, %v1604_v51 }
 0x5d8   : > { %1928 = vmatpush.bf16.xpose.msrb.mxu3 %v1919_v2 }
 0x5da   : > { %v3520_v61 = vpop.eup %3519 }
 0x5db   : > { %v3522_v25 = vpop.eup %3521  ;;  %v1601_v40 = vmul.f32 %v3520_v61, %v4406_v9  ;;  %v4484_v21 = vpop.permute.xlu2 %1966 }
 0x5dc   : > { %v1580_v32 = vpop.xlane.xlu1 %1579  ;;  %v1599_v14 = vmul.f32 %v3522_v25, %v4403_v11 }
 0x5dd   : > { %3523 = vrcp.f32 %v1580_v32  ;;  %v1609_v46 = vpack.c.bf16 %v1601_v40, %v1601_v40 }
 0x5de   : > { %v1607_v38 = vpack.c.bf16 %v1599_v14, %v1599_v14 }
 0x5df   : > { %3328 = vmatmul.msk.bf16.vlgmr.msra.gmra.mxu0 %vm1115_vm3, %v1609_v46 }
 0x5e0   : > { %3326 = vmatmul.msk.bf16.vlgmr.msrb.gmra.mxu2 %vm1115_vm3, %v1607_v38 }
 0x5e1   : > { %2015 = vmatpush.bf16.xpose.msrb.mxu2 %v2006_v5 }
 0x5e3   : > { %v3524_v57 = vpop.eup %3523  ;;  %v2054_v9 = vpop.permute.xlu2 %2053 }
 0x5e4   : > { %v1600_v44 = vmul.f32 %v3524_v57, %v4412_v28 }
 0x5e6   : > { %v1608_v31 = vpack.c.bf16 %v1600_v44, %v1600_v44 }
 0x5e8   : > { %3327 = vmatmul.msk.bf16.vlgmr.msra.gmra.mxu3 %vm1115_vm3, %v1608_v31 }
 0x5e9   : > { %2044 = vmatpush.bf16.xpose.msra.mxu3 %v2035_v10 }
 0x5eb   : > { %v2205_v11 = vpop.permute.xlu2 %2204 }
 0x5ec   : > { %v2206_v4 = vrot.slane %v2205_v11, 2 }
 0x5ee   : > { %v2211_v48 = vsel %vm798_vm14, %v2206_v4, 0 }
 0x5f0   : > { %3330 = vmatmul.msk.bf16.vlgmr.msra.gmra.mxu2 %vm833_vm1, %v4381_v45 }
 0x5f1   : > { %2220 = vmatpush.bf16.msra.mxu2 %v2211_v48 }
 0x5f2   : > { %v1574_v30 = vpop.xlane.xlu0 %1573 }
 0x5f3   : > { %3525 = vrcp.f32 %v1574_v30  ;;  %v2249_v43 = vpop.permute.xlu2 %2248  ;;  %v1938_v28 = vpop.permute.xlu1 %1937 }
 0x5f4   : > { %3332 = vmatmul.msk.bf16.vlgmr.msrb.gmra.mxu0 %vm833_vm1, %v1938_v28 }
 0x5f8   : > { %3331 = vmatmul.msk.bf16.vlgmr.msrb.gmra.mxu3 %vm833_vm1, %v4383_v50  ;;  %v2250_v50 = vrot.slane %v2249_v43, 2 }
 0x5f9   : > { %v3526_v27 = vpop.eup %3525 }
 0x5fa   : > { %v1598_v62 = vmul.f32 %v3526_v27, %v4419_v56  ;;  %v2255_v24 = vsel %vm798_vm14, %v2250_v50, 0 }
 0x5fb   : > { %v2293_v12 = vpop.permute.xlu2 %2292 }
 0x5fc   : > { %v1606_v42 = vpack.c.bf16 %v1598_v62, %v1598_v62  ;;  %v2294_v39 = vrot.slane %v2293_v12, 2 }
 0x5fe   : > { %v2299_v45 = vsel %vm798_vm14, %v2294_v39, 0  ;;  %3325 = vmatmul.msk.bf16.vlgmr.msra.gmra.mxu1 %vm1115_vm3, %v1606_v42 }
 0x5ff   : > { %1986 = vmatpush.bf16.xpose.msra.mxu1 %v1977_v54 }
 0x600   : > { %3334 = vmatmul.msk.bf16.vlgmr.msrb.gmra.mxu2 %vm833_vm1, %v4466_v18 }
 0x601   : > { %2308 = vmatpush.bf16.msrb.mxu2 %v2299_v45 }
 0x603   : > { %v2315_v37 = vpop.permute.xlu2 %2314 }
 0x604   : > { %v2316_v15 = vrot.slane %v2315_v37, 2 }
 0x605   : > { %v2025_v16 = vpop.permute.xlu0 %2024 }
 0x606   : > { %v2321_v47 = vsel %vm798_vm14, %v2316_v15, 0 }
 0x608   : > { %3335 = vmatmul.msk.bf16.vlgmr.msra.gmra.mxu3 %vm833_vm1, %v2025_v16 }
 0x60d   : > { %v2059_v56 = vpop.permute.xlu0 %2058 }
 0x60e   : > { %v2064_v3 = vsel %vm833_vm1, %v2059_v56, 0 }
 0x60f   : > { %2073 = vmatpush.bf16.xpose.msra.mxu0 %v2064_v3 }
 0x615   : > { %v2083_v6 = vpop.permute.xlu0 %2082 }
 0x616   : > { %3336 = vmatmul.msk.bf16.vlgmr.msra.gmra.mxu0 %vm833_vm1, %v2054_v9 }
 0x617   : > { %2264 = vmatpush.bf16.msrb.mxu0 %v2255_v24 }
 0x61d   : > { %v2227_v59 = vpop.permute.xlu0 %2226 }
 0x61e   : > { %v2228_v19 = vrot.slane %v2227_v59, 2  ;;  %v1586_v18 = vpop.xlane.xlu1 %1585 }
 0x61f   : > { %3527 = vrcp.f32 %v1586_v18 }
 0x620   : > { %v2233_v35 = vsel %vm798_vm14, %v2228_v19, 0 }
 0x621   : > { %2242 = vmatpush.bf16.msrb.mxu3 %v2233_v35 }
 0x625   : > { %2330 = vmatpush.bf16.msra.mxu3 %v2321_v47  ;;  %v3528_v41 = vpop.eup %3527  ;;  %v2337_v33 = vpop.permute.xlu0 %2336 }
 0x626   : > { %v1602_v51 = vmul.f32 %v3528_v41, %v4442_v36  ;;  %v2338_v2 = vrot.slane %v2337_v33, 2 }
 0x628   : > { %v1610_v61 = vpack.c.bf16 %v1602_v51, %v1602_v51  ;;  %v2343_v25 = vsel %vm798_vm14, %v2338_v2, 0 }
 0x629   : > { %2352 = vmatpush.bf16.msra.mxu0 %v2343_v25 }
 0x62a   : > { %3329 = vmatmul.msk.bf16.vlgmr.msrb.gmra.mxu1 %vm1115_vm3, %v1610_v61 }
 0x62d   : > { %v2359_v36 = vpop.permute.xlu0 %2358 }
 0x62e   : > { %v2360_v57 = vrot.slane %v2359_v36, 2 }
 0x630   : > { %v2365_v44 = vsel %vm798_vm14, %v2360_v57, 0  ;;  %v4560_v57 = vpop.permute.xlu2 %2396 }
 0x636   : > { %v2088_v40 = vpop.permute.xlu1 %2087 }
 0x637   : > { %v2093_v32 = vsel %vm833_vm1, %v2088_v40, 0 }
 0x638   : > { %2102 = vmatpush.bf16.xpose.msrb.mxu1 %v2093_v32 }
 0x63a   : > { %3333 = vmatmul.msk.bf16.vlgmr.msra.gmra.mxu1 %vm833_vm1, %v4484_v21 }
 0x63e   : > { %v2271_v14 = vpop.permute.xlu1 %2270 }
 0x63f   : > { %v2272_v46 = vrot.slane %v2271_v14, 2 }
 0x641   : > { %v2277_v38 = vsel %vm798_vm14, %v2272_v46, 0  ;;  %v4550_v46 = vpop.permute.xlu0 %2425 }
 0x642   : > { %2286 = vmatpush.bf16.msra.mxu1 %v2277_v38 }
 0x643   : > { %v4521_v5 = vpop.f32.mrf.mxu2 }
 0x646   : > { %v4556_v36 = vpop.permute.xlu1 %2391 }
 0x649   : > { %v4554_v38 = vpop.permute.xlu0 %2420 }
 0x64a   : > { %3337 = vmatmul.msk.bf16.vlgmr.msrb.gmra.mxu1 %vm833_vm1, %v2083_v6 }
 0x64b   : > { %2374 = vmatpush.bf16.msrb.mxu1 %v2365_v44  ;;  %v1631_v9 = vpop.f32.mrf.mxu2 }
 0x64c   : > { %v4525_v31 = vpop.f32.mrf.mxu0 }
 0x651   : > { %v4562_v44 = vpop.permute.xlu0 %2454 }
 0x654   : > { %v1675_v10 = vpop.f32.mrf.mxu0 }
 0x65a   : > { %v4527_v11 = vpop.f32.mrf.mxu3 }
 0x65c   : > { %v4529_v21 = vpop.f32.mrf.mxu0 }
 0x662   : > { %v1653_v4 = vpop.f32.mrf.mxu3 }
 0x663   : > { %v4531_v48 = vpop.f32.mrf.mxu2 }
 0x664   : > { %v1763_v30 = vpop.f32.mrf.mxu0 }
 0x665   : > { %v4566_v30 = vpop.permute.xlu2 %2483 }
 0x66b   : > { %v4533_v43 = vpop.f32.mrf.mxu3  ;;  %v1719_v28 = vpop.f32.mrf.mxu2 }
 0x671   : > { %v1959_v27 = vpop.f32.mrf.mxu0 }
 0x672   : > { %v2114_v12 = vsel %vm1017_vm2, %v1959_v27, -inf }
 0x673   : > { %v1741_v62 = vpop.f32.mrf.mxu3  ;;  %v1901_v42 = vpop.f32.mrf.mxu2  ;;  %2115 = vmax.xlane.f32.xlu0 %v2114_v12 }
 0x674   : > { %v2108_v39 = vsel %vm1017_vm2, %v1901_v42, -inf }
 0x675   : > { %2109 = vmax.xlane.f32.xlu1 %v2108_v39 }
 0x679   : > { %v1961_v54 = vpop.f32.mrf.mxu0 }
 0x67b   : > { %v1930_v45 = vpop.f32.mrf.mxu3  ;;  %v1903_v16 = vpop.f32.mrf.mxu2 }
 0x67c   : > { %v4537_v50 = vpop.f32.mrf.mxu1  ;;  %v2111_v56 = vsel %vm1017_vm2, %v1930_v45, -inf }
 0x67d   : > { %2112 = vmax.xlane.f32.xlu2 %v2111_v56 }
 0x683   : > { %v1932_v3 = vpop.f32.mrf.mxu3  ;;  %v2017_v24 = vpop.f32.mrf.mxu2 }
 0x684   : > { %v1697_v6 = vpop.f32.mrf.mxu1  ;;  %v2120_v37 = vsel %vm1017_vm2, %v2017_v24, -inf }
 0x685   : > { %2121 = vmax.xlane.f32.xlu2 %v2120_v37 }
 0x68b   : > { %v2046_v15 = vpop.f32.mrf.mxu3  ;;  %v2019_v59 = vpop.f32.mrf.mxu2 }
 0x68c   : > { %v2123_v19 = vsel %vm1017_vm2, %v2046_v15, -inf }
 0x68d   : > { %2124 = vmax.xlane.f32.xlu0 %v2123_v19 }
 0x693   : > { %v2048_v18 = vpop.f32.mrf.mxu3  ;;  %v4542_v35 = vpop.f32.mrf.mxu0 }
 0x694   : > { %v2126_v25 = vsel %vm1017_vm2, %v4542_v35, -inf }
 0x69b   : > { %v2077_v47 = vpop.f32.mrf.mxu0 }
 0x6a7   : > { %v4544_v41 = vpop.f32.mrf.mxu1 }
 0x6af   : > { %v1785_v33 = vpop.f32.mrf.mxu1 }
 0x6b7   : > { %v1988_v51 = vpop.f32.mrf.mxu1 }
 0x6b8   : > { %v2117_v2 = vsel %vm1017_vm2, %v1988_v51, -inf }
 0x6b9   : > { %2118 = vmax.xlane.f32.xlu1 %v2117_v2 }
 0x6bf   : > { %v1990_v61 = vpop.f32.mrf.mxu1 }
 0x6c1   : > { %2127 = vmax.xlane.f32.xlu1 %v2126_v25 }
 0x6c7   : > { %v2104_v40 = vpop.f32.mrf.mxu1 }
 0x6c8   : > { %v2129_v32 = vsel %vm1017_vm2, %v2104_v40, -inf }
 0x6c9   : > { %2130 = vmax.xlane.f32.xlu2 %v2129_v32 }
 0x6cf   : > { %v2106_v14 = vpop.f32.mrf.mxu1 }
 0x6da   : > { %2449 = vrot.lane.b32.xlu1 %v4168_v7, %s3666_s9 }
 0x6e1   : > { %2541 = vrot.lane.b32.xlu2 %v4212_v60, %s3665_s8 }
 0x6e6   : > { %v2116_v7 = vpop.xlane.xlu0 %2115 }
 0x6e7   : > { %v2134_v28 = vsub.f32 %v1959_v27, %v2116_v7  ;;  %v4953_v27 = vld [vmem:[#allocation15_spill] sm:$0xff] }
 0x6e8   : > { %v2110_v9 = vpop.xlane.xlu1 %2109 }
 0x6e9   : > { %v2132_v10 = vsub.f32 %v1901_v42, %v2110_v9  ;;  %2507 = vrot.lane.b32.xlu2 %v4192_v29, %s3666_s9  ;;  %v2144_v12 = vmul.f32 1.442695, %v2134_v28 }
 0x6eb   : > { %v2140_v4 = vmul.f32 1.442695, %v2132_v10 }
 0x6ed   : > { %3529 = vpow2.f32 %v2140_v4 }
 0x6ee   : > { %3531 = vpow2.f32 %v2144_v12 }
 0x6f0   : > { %v2113_v39 = vpop.xlane.xlu2 %2112 }
 0x6f1   : > { %v2133_v54 = vsub.f32 %v1930_v45, %v2113_v39  ;;  %v4954_v39 = vld [vmem:[#allocation14_spill] sm:$0xff] }
 0x6f3   : > { %v4568_v62 = vpop.eup %3529  ;;  %v2142_v42 = vmul.f32 1.442695, %v2133_v54  ;;  %v4955_v54 = vld [vmem:[#allocation18_spill] sm:$0xff] }
 0x6f4   : > { %v2156_v60 = vsel %vm1017_vm2, %v4568_v62, 0.0  ;;  %v4572_v16 = vpop.eup %3531 }
 0x6f5   : > { %2157 = vadd.xlane.f32.xlu0 %v2156_v60  ;;  %3533 = vpow2.f32 %v2142_v42  ;;  %v2162_v29 = vsel %vm1017_vm2, %v4572_v16, 0.0  ;;  %v4956_v42 = vld [vmem:[#allocation19_spill] sm:$0xff] }
 0x6f8   : > { %v2122_v6 = vpop.xlane.xlu2 %2121 }
 0x6f9   : > { %v2136_v37 = vsub.f32 %v2017_v24, %v2122_v6  ;;  %v4958_v6 = vld [vmem:[#allocation17_spill] sm:$0xff] }
 0x6fb   : > { %v4576_v56 = vpop.eup %3533  ;;  %v2148_v45 = vmul.f32 1.442695, %v2136_v37 }
 0x6fc   : > { %v2159_v3 = vsel %vm1017_vm2, %v4576_v56, 0.0 }
 0x6fd   : > { %3535 = vpow2.f32 %v2148_v45 }
 0x700   : > { %v2125_v59 = vpop.xlane.xlu0 %2124 }
 0x701   : > { %v2137_v33 = vsub.f32 %v2046_v15, %v2125_v59 }
 0x703   : > { %v4582_v47 = vpop.eup %3535  ;;  %v2150_v25 = vmul.f32 1.442695, %v2137_v33 }
 0x704   : > { %2163 = vadd.xlane.f32.xlu1 %v2162_v29  ;;  %v2168_v61 = vsel %vm1017_vm2, %v4582_v47, 0.0  ;;  %v2597_v29 = vld.sshfl [vmem:[#allocation1] sm:$0xff pattern:$0x73625140] }
 0x709   : > { %2512 = vrot.lane.b32.xlu0 %v4953_v27, %s3665_s8  ;;  %v4957_v27 = vld [vmem:[#allocation16_spill] sm:$0xff] }
 0x70c   : > { %2160 = vadd.xlane.f32.xlu1 %v2159_v3 }
 0x72c   : > { %v2119_v19 = vpop.xlane.xlu1 %2118 }
 0x72d   : > { %v2135_v18 = vsub.f32 %v1988_v51, %v2119_v19 }
 0x72f   : > { %v2146_v2 = vmul.f32 1.442695, %v2135_v18 }
 0x731   : > { %3537 = vpow2.f32 %v2146_v2 }
 0x732   : > { %3539 = vpow2.f32 %v2150_v25 }
 0x733   : > { %2169 = vadd.xlane.f32.xlu0 %v2168_v61 }
 0x734   : > { %v2128_v32 = vpop.xlane.xlu1 %2127 }
 0x735   : > { %v2138_v14 = vsub.f32 %v4542_v35, %v2128_v32  ;;  %v2431_v32 = vsel %vm833_vm1, %v4550_v46, 0 }
 0x737   : > { %v4587_v9 = vpop.eup %3537  ;;  %v2152_v24 = vmul.f32 1.442695, %v2138_v14 }
 0x738   : > { %v2165_v51 = vsel %vm1017_vm2, %v4587_v9, 0.0  ;;  %v4591_v10 = vpop.eup %3539 }
 0x739   : > { %3541 = vpow2.f32 %v2152_v24  ;;  %2166 = vadd.xlane.f32.xlu1 %v2165_v51  ;;  %v2171_v35 = vsel %vm1017_vm2, %v4591_v10, 0.0 }
 0x73c   : > { %v2131_v15 = vpop.xlane.xlu2 %2130 }
 0x73d   : > { %v2139_v4 = vsub.f32 %v2104_v40, %v2131_v15 }
 0x73f   : > { %v4593_v7 = vpop.eup %3541  ;;  %v2154_v28 = vmul.f32 1.442695, %v2139_v4 }
 0x740   : > { %v2174_v60 = vsel %vm1017_vm2, %v4593_v7, 0.0 }
 0x741   : > { %3543 = vpow2.f32 %v2154_v28  ;;  %2175 = vadd.xlane.f32.xlu2 %v2174_v60  ;;  %2172 = vadd.xlane.f32.xlu1 %v2171_v35 }
 0x744   : > { %v2542_v14 = vpop.permute.xlu2 %2541 }
 0x747   : > { %v4599_v12 = vpop.eup %3543  ;;  %2478 = vrot.lane.b32.xlu0 %v4954_v39, %s3666_s9 }
 0x748   : > { %v2177_v40 = vsel %vm1017_vm2, %v4599_v12, 0.0 }
 0x749   : > { %2178 = vadd.xlane.f32.xlu1 %v2177_v40 }
 0x74c   : > { %v4618_v45 = vpop.permute.xlu1 %2449  ;;  %v2508_v51 = vpop.permute.xlu2 %2507 }
 0x74f   : > { %2570 = vrot.lane.b32.xlu0 %v4955_v54, %s3665_s8  ;;  %v2489_v54 = vsel %vm833_vm1, %v4566_v30, 0 }
 0x757   : > { %2594 = vrot.lane.b32.xlu0 %v4956_v42, %s3666_s9 }
 0x759   : > { %2599 = vrot.lane.b32.xlu2 %v2597_v29, %s3665_s8 }
 0x75f   : > { %2760 = vrot.lane.b32.xlu0 %v3963_v58, %s3666_s9 }
 0x761   : > { %2716 = vrot.lane.b32.xlu2 %v3947_v34, %s3666_s9  ;;  %v2402_v34 = vsel %vm833_vm1, %v4560_v57, 0 }
 0x762   : > { %2536 = vrot.lane.b32.xlu1 %v4957_v27, %s3666_s9 }
 0x768   : > { %v2158_v3 = vpop.xlane.xlu0 %2157 }
 0x769   : > { %3545 = vrcp.f32 %v2158_v3 }
 0x76a   : > { %2565 = vrot.lane.b32.xlu1 %v4958_v6, %s3666_s9 }
 0x76f   : > { %v3546_v37 = vpop.eup %3545 }
 0x770   : > { %v2188_v59 = vmul.f32 %v3546_v37, %v4568_v62  ;;  %v2460_v62 = vsel %vm833_vm1, %v4562_v44, 0 }
 0x772   : > { %v2196_v19 = vpack.c.bf16 %v2188_v59, %v2188_v59  ;;  %2738 = vrot.lane.b32.xlu1 %v3953_v49, %s3666_s9 }
 0x774   : > { %3338 = vmatmul.msk.bf16.vlgmr.msra.gmra.mxu2 %vm1115_vm3, %v2196_v19  ;;  %v2547_v19 = vsel %vm833_vm1, %v2542_v14, 0 }
 0x775   : > { %2411 = vmatpush.bf16.xpose.msra.mxu2 %v2402_v34 }
 0x777   : > { %v2164_v58 = vpop.xlane.xlu1 %2163 }
 0x778   : > { %3547 = vrcp.f32 %v2164_v58 }
 0x77e   : > { %v3548_v18 = vpop.eup %3547 }
 0x77f   : > { %v2190_v33 = vmul.f32 %v3548_v18, %v4572_v16  ;;  %v2161_v2 = vpop.xlane.xlu1 %2160  ;;  %v2513_v16 = vpop.permute.xlu0 %2512 }
 0x780   : > { %3549 = vrcp.f32 %v2161_v2 }
 0x781   : > { %v2198_v61 = vpack.c.bf16 %v2190_v33, %v2190_v33 }
 0x783   : > { %3340 = vmatmul.msk.bf16.vlgmr.msrb.gmra.mxu0 %vm1115_vm3, %v2198_v61 }
 0x784   : > { %2469 = vmatpush.bf16.xpose.msrb.mxu0 %v2460_v62 }
 0x786   : > { %v3550_v49 = vpop.eup %3549 }
 0x787   : > { %v2189_v57 = vmul.f32 %v3550_v49, %v4576_v56  ;;  %v2518_v56 = vsel %vm833_vm1, %v2513_v16, 0 }
 0x789   : > { %v2197_v25 = vpack.c.bf16 %v2189_v57, %v2189_v57 }
 0x78b   : > { %3339 = vmatmul.msk.bf16.vlgmr.msrb.gmra.mxu3 %vm1115_vm3, %v2197_v25 }
 0x78c   : > { %2440 = vmatpush.bf16.xpose.msrb.mxu3 %v2431_v32 }
 0x7a6   : > { %v2170_v24 = vpop.xlane.xlu0 %2169 }
 0x7a7   : > { %3551 = vrcp.f32 %v2170_v24 }
 0x7ac   : > { %v2167_v15 = vpop.xlane.xlu1 %2166 }
 0x7ad   : > { %v3552_v44 = vpop.eup %3551  ;;  %3553 = vrcp.f32 %v2167_v15 }
 0x7ae   : > { %v2192_v4 = vmul.f32 %v3552_v44, %v4582_v47 }
 0x7b0   : > { %v2200_v28 = vpack.c.bf16 %v2192_v4, %v2192_v4 }
 0x7b2   : > { %3342 = vmatmul.msk.bf16.vlgmr.msrb.gmra.mxu2 %vm1115_vm3, %v2200_v28 }
 0x7b3   : > { %v3554_v60 = vpop.eup %3553  ;;  %2527 = vmatpush.bf16.xpose.msrb.mxu2 %v2518_v56 }
 0x7b4   : > { %v2191_v46 = vmul.f32 %v3554_v60, %v4587_v9  ;;  %v2176_v35 = vpop.xlane.xlu2 %2175  ;;  %v2173_v39 = vpop.xlane.xlu1 %2172 }
 0x7b5   : > { %3555 = vrcp.f32 %v2176_v35 }
 0x7b6   : > { %v2199_v40 = vpack.c.bf16 %v2191_v46, %v2191_v46  ;;  %3557 = vrcp.f32 %v2173_v39 }
 0x7b8   : > { %3341 = vmatmul.msk.bf16.vlgmr.msra.gmra.mxu1 %vm1115_vm3, %v2199_v40 }
 0x7b9   : > { %2498 = vmatpush.bf16.xpose.msra.mxu1 %v2489_v54  ;;  %v2479_v47 = vpop.permute.xlu0 %2478 }
 0x7bb   : > { %v3556_v42 = vpop.eup %3555 }
 0x7bc   : > { %v3558_v29 = vpop.eup %3557  ;;  %v2194_v27 = vmul.f32 %v3556_v42, %v4593_v7  ;;  %v2600_v3 = vpop.permute.xlu2 %2599 }
 0x7bd   : > { %v2179_v6 = vpop.xlane.xlu1 %2178  ;;  %v2193_v9 = vmul.f32 %v3558_v29, %v4591_v10  ;;  %v2605_v61 = vsel %vm833_vm1, %v2600_v3, 0 }
 0x7be   : > { %3559 = vrcp.f32 %v2179_v6  ;;  %v2202_v37 = vpack.c.bf16 %v2194_v27, %v2194_v27 }
 0x7bf   : > { %v2201_v59 = vpack.c.bf16 %v2193_v9, %v2193_v9 }
 0x7c0   : > { %3344 = vmatmul.msk.bf16.vlgmr.msra.gmra.mxu0 %vm1115_vm3, %v2202_v37 }
 0x7c1   : > { %3343 = vmatmul.msk.bf16.vlgmr.msra.gmra.mxu3 %vm1115_vm3, %v2201_v59  ;;  %v2571_v30 = vpop.permute.xlu0 %2570 }
 0x7c2   : > { %2556 = vmatpush.bf16.xpose.msra.mxu3 %v2547_v19  ;;  %v2576_v34 = vsel %vm833_vm1, %v2571_v30, 0  ;;  %3346 = vmatmul.msk.bf16.vlgmr.msra.gmra.mxu2 %vm833_vm1, %v4556_v36 }
 0x7c3   : > { %2585 = vmatpush.bf16.xpose.msra.mxu0 %v2576_v34 }
 0x7c4   : > { %v3560_v7 = vpop.eup %3559  ;;  %v2717_v58 = vpop.permute.xlu2 %2716 }
 0x7c5   : > { %v2195_v10 = vmul.f32 %v3560_v7, %v4599_v12  ;;  %v2718_v18 = vrot.slane %v2717_v58, 2 }
 0x7c7   : > { %v2203_v33 = vpack.c.bf16 %v2195_v10, %v2195_v10  ;;  %v2723_v2 = vsel %vm798_vm14, %v2718_v18, 0 }
 0x7c8   : > { %2732 = vmatpush.bf16.msra.mxu2 %v2723_v2 }
 0x7c9   : > { %3345 = vmatmul.msk.bf16.vlgmr.msrb.gmra.mxu1 %vm1115_vm3, %v2203_v33  ;;  %v2595_v62 = vpop.permute.xlu0 %2594 }
 0x7ca   : > { %2614 = vmatpush.bf16.xpose.msrb.mxu1 %v2605_v61 }
 0x7d0   : > { %3348 = vmatmul.msk.bf16.vlgmr.msrb.gmra.mxu0 %vm833_vm1, %v4618_v45 }
 0x7d1   : > { %3347 = vmatmul.msk.bf16.vlgmr.msrb.gmra.mxu3 %vm833_vm1, %v4554_v38  ;;  %v2761_v36 = vpop.permute.xlu0 %2760 }
 0x7d2   : > { %v2762_v12 = vrot.slane %v2761_v36, 2  ;;  %3350 = vmatmul.msk.bf16.vlgmr.msrb.gmra.mxu2 %vm833_vm1, %v2508_v51 }
 0x7d4   : > { %v2767_v49 = vsel %vm798_vm14, %v2762_v12, 0  ;;  %v2537_v57 = vpop.permute.xlu1 %2536 }
 0x7d5   : > { %2776 = vmatpush.bf16.msrb.mxu0 %v2767_v49 }
 0x7d9   : > { %3349 = vmatmul.msk.bf16.vlgmr.msra.gmra.mxu1 %vm833_vm1, %v2479_v47 }
 0x7dc   : > { %v2566_v25 = vpop.permute.xlu1 %2565 }
 0x7e0   : > { %3352 = vmatmul.msk.bf16.vlgmr.msra.gmra.mxu0 %vm833_vm1, %v2566_v25 }
 0x7e1   : > { %3351 = vmatmul.msk.bf16.vlgmr.msra.gmra.mxu3 %vm833_vm1, %v2537_v57 }
 0x7e4   : > { %v2739_v32 = vpop.permute.xlu1 %2738 }
 0x7e5   : > { %v2740_v45 = vrot.slane %v2739_v32, 2 }
 0x7e7   : > { %v2745_v16 = vsel %vm798_vm14, %v2740_v45, 0 }
 0x7e8   : > { %2754 = vmatpush.bf16.msrb.mxu3 %v2745_v16 }
 0x7e9   : > { %3353 = vmatmul.msk.bf16.vlgmr.msrb.gmra.mxu1 %vm833_vm1, %v2595_v62 }
 0x7f7   : > { %v4664_v38 = vpop.f32.mrf.mxu2 }
 0x7ff   : > { %v2224_v14 = vpop.f32.mrf.mxu2 }
 0x800   : > { %v4666_v24 = vpop.f32.mrf.mxu0 }
 0x808   : > { %v2268_v51 = vpop.f32.mrf.mxu0 }
 0x80e   : > { %v4668_v15 = vpop.f32.mrf.mxu3 }
 0x816   : > { %v2246_v44 = vpop.f32.mrf.mxu3 }
 0x835   : > { %v4670_v4 = vpop.f32.mrf.mxu2  ;;  %v4672_v28 = vpop.f32.mrf.mxu1 }
 0x83d   : > { %v2312_v56 = vpop.f32.mrf.mxu2  ;;  %v2290_v60 = vpop.f32.mrf.mxu1 }
 0x83e   : > { %v4674_v46 = vpop.f32.mrf.mxu0 }
 0x844   : > { %v4676_v35 = vpop.f32.mrf.mxu3 }
 0x845   : > { %v2413_v39 = vpop.f32.mrf.mxu2 }
 0x846   : > { %v4678_v40 = vpop.f32.mrf.mxu1  ;;  %v2356_v54 = vpop.f32.mrf.mxu0  ;;  %v2620_v47 = vsel %vm1017_vm2, %v2413_v39, -inf }
 0x847   : > { %2621 = vmax.xlane.f32.xlu2 %v2620_v47 }
 0x84c   : > { %v2334_v42 = vpop.f32.mrf.mxu3 }
 0x84d   : > { %v2415_v29 = vpop.f32.mrf.mxu2 }
 0x84e   : > { %v2378_v27 = vpop.f32.mrf.mxu1  ;;  %v2471_v3 = vpop.f32.mrf.mxu0 }
 0x84f   : > { %v2626_v6 = vsel %vm1017_vm2, %v2471_v3, -inf }
 0x850   : > { %2627 = vmax.xlane.f32.xlu0 %v2626_v6 }
 0x854   : > { %v4682_v9 = vpop.f32.mrf.mxu3 }
 0x855   : > { %v2529_v37 = vpop.f32.mrf.mxu2  ;;  %v2623_v59 = vsel %vm1017_vm2, %v4682_v9, -inf }
 0x856   : > { %v2500_v19 = vpop.f32.mrf.mxu1  ;;  %v2473_v30 = vpop.f32.mrf.mxu0  ;;  %2624 = vmax.xlane.f32.xlu1 %v2623_v59  ;;  %v2632_v58 = vsel %vm1017_vm2, %v2529_v37, -inf }
 0x857   : > { %v2629_v34 = vsel %vm1017_vm2, %v2500_v19, -inf }
 0x858   : > { %2630 = vmax.xlane.f32.xlu2 %v2629_v34 }
 0x85c   : > { %v2444_v7 = vpop.f32.mrf.mxu3 }
 0x85d   : > { %v2531_v10 = vpop.f32.mrf.mxu2 }
 0x85e   : > { %v2502_v18 = vpop.f32.mrf.mxu1  ;;  %2633 = vmax.xlane.f32.xlu1 %v2632_v58  ;;  %v4688_v33 = vpop.f32.mrf.mxu0 }
 0x85f   : > { %v2638_v25 = vsel %vm1017_vm2, %v4688_v33, -inf }
 0x864   : > { %v2558_v2 = vpop.f32.mrf.mxu3 }
 0x865   : > { %v2635_v61 = vsel %vm1017_vm2, %v2558_v2, -inf }
 0x866   : > { %v2616_v62 = vpop.f32.mrf.mxu1  ;;  %2636 = vmax.xlane.f32.xlu0 %v2635_v61  ;;  %v2589_v36 = vpop.f32.mrf.mxu0 }
 0x867   : > { %v2641_v12 = vsel %vm1017_vm2, %v2616_v62, -inf }
 0x868   : > { %2642 = vmax.xlane.f32.xlu1 %v2641_v12 }
 0x86c   : > { %v2560_v49 = vpop.f32.mrf.mxu3 }
 0x86e   : > { %v2618_v57 = vpop.f32.mrf.mxu1 }
 0x870   : > { %2782 = vrot.lane.b32.xlu2 %v3957_v52, %s3666_s9 }
 0x899   : > { %2639 = vmax.xlane.f32.xlu2 %v2638_v25 }
 0x8ba   : > { %v2622_v32 = vpop.xlane.xlu2 %2621 }
 0x8bb   : > { %v2644_v45 = vsub.f32 %v2413_v39, %v2622_v32 }
 0x8bd   : > { %v2652_v16 = vmul.f32 1.442695, %v2644_v45 }
 0x8bf   : > { %3561 = vpow2.f32 %v2652_v16 }
 0x8c3   : > { %v2628_v14 = vpop.xlane.xlu0 %2627 }
 0x8c4   : > { %v2646_v51 = vsub.f32 %v2471_v3, %v2628_v14 }
 0x8c5   : > { %v3562_v44 = vpop.eup %3561 }
 0x8c6   : > { %v2656_v56 = vmul.f32 1.442695, %v2646_v51  ;;  %v2668_v60 = vsel %vm1017_vm2, %v3562_v44, 0.0 }
 0x8c7   : > { %2669 = vadd.xlane.f32.xlu0 %v2668_v60 }
 0x8c8   : > { %3563 = vpow2.f32 %v2656_v56 }
 0x8c9   : > { %v2625_v54 = vpop.xlane.xlu1 %2624 }
 0x8ca   : > { %v2645_v16 = vsub.f32 %v4682_v9, %v2625_v54 }
 0x8cb   : > { %v2631_v47 = vpop.xlane.xlu2 %2630 }
 0x8cc   : > { %v2647_v42 = vsub.f32 %v2500_v19, %v2631_v47  ;;  %v2654_v51 = vmul.f32 1.442695, %v2645_v16 }
 0x8ce   : > { %v2658_v52 = vmul.f32 1.442695, %v2647_v42  ;;  %v3564_v29 = vpop.eup %3563 }
 0x8cf   : > { %v2674_v27 = vsel %vm1017_vm2, %v3564_v29, 0.0 }
 0x8d0   : > { %3565 = vpow2.f32 %v2658_v52  ;;  %2675 = vadd.xlane.f32.xlu1 %v2674_v27 }
 0x8d1   : > { %v2634_v39 = vpop.xlane.xlu1 %2633 }
 0x8d2   : > { %v2648_v6 = vsub.f32 %v2529_v37, %v2634_v39 }
 0x8d3   : > { %v2783_v59 = vpop.permute.xlu2 %2782 }
 0x8d4   : > { %v2784_v30 = vrot.slane %v2783_v59, 2  ;;  %v2660_v3 = vmul.f32 1.442695, %v2648_v6 }
 0x8d6   : > { %v3566_v34 = vpop.eup %3565  ;;  %v2789_v7 = vsel %vm798_vm14, %v2784_v30, 0  ;;  %3567 = vpow2.f32 %v2660_v3 }
 0x8d7   : > { %2798 = vmatpush.bf16.msra.mxu1 %v2789_v7  ;;  %v2677_v10 = vsel %vm1017_vm2, %v3566_v34, 0.0 }
 0x8d8   : > { %2678 = vadd.xlane.f32.xlu0 %v2677_v10 }
 0x8d9   : > { %v2637_v19 = vpop.xlane.xlu0 %2636 }
 0x8da   : > { %v2649_v58 = vsub.f32 %v2558_v2, %v2637_v19 }
 0x8db   : > { %v2643_v18 = vpop.xlane.xlu1 %2642 }
 0x8dc   : > { %v2651_v61 = vsub.f32 %v2616_v62, %v2643_v18  ;;  %v3568_v36 = vpop.eup %3567  ;;  %v2662_v12 = vmul.f32 1.442695, %v2649_v58 }
 0x8dd   : > { %v2680_v37 = vsel %vm1017_vm2, %v3568_v36, 0.0 }
 0x8de   : > { %v2666_v49 = vmul.f32 1.442695, %v2651_v61  ;;  %3569 = vpow2.f32 %v2662_v12 }
 0x8e0   : > { %3571 = vpow2.f32 %v2666_v49  ;;  %2681 = vadd.xlane.f32.xlu0 %v2680_v37 }
 0x8e4   : > { %v4701_v57 = vpop.eup %3569 }
 0x8e5   : > { %v2683_v32 = vsel %vm1017_vm2, %v4701_v57, 0.0 }
 0x8e6   : > { %v3572_v25 = vpop.eup %3571  ;;  %2684 = vadd.xlane.f32.xlu1 %v2683_v32 }
 0x8e7   : > { %v2689_v45 = vsel %vm1017_vm2, %v3572_v25, 0.0 }
 0x8e8   : > { %2690 = vadd.xlane.f32.xlu0 %v2689_v45 }
 0x8fc   : > { %2848 = vrot.lane.b32.xlu0 %v3980_v23, %s3666_s9 }
 0x8ff   : > { %2804 = vrot.lane.b32.xlu1 %v3970_v1, %s3666_s9 }
 0x904   : > { %2870 = vrot.lane.b32.xlu0 %v3985_v0, %s3666_s9 }
 0x90c   : > { %v2640_v2 = vpop.xlane.xlu2 %2639 }
 0x90d   : > { %v2650_v62 = vsub.f32 %v4688_v33, %v2640_v2 }
 0x90f   : > { %v2664_v14 = vmul.f32 1.442695, %v2650_v62 }
 0x911   : > { %3573 = vpow2.f32 %v2664_v14 }
 0x912   : > { %3575 = vpow2.f32 %v2654_v51 }
 0x917   : > { %v3574_v56 = vpop.eup %3573 }
 0x918   : > { %v2686_v60 = vsel %vm1017_vm2, %v3574_v56, 0.0  ;;  %v3576_v23 = vpop.eup %3575 }
 0x919   : > { %2687 = vadd.xlane.f32.xlu2 %v2686_v60  ;;  %v2671_v47 = vsel %vm1017_vm2, %v3576_v23, 0.0 }
 0x921   : > { %2672 = vadd.xlane.f32.xlu2 %v2671_v47 }
 0x939   : > { %2826 = vrot.lane.b32.xlu2 %v3975_v17, %s3666_s9 }
 0x93a   : > { %v2670_v1 = vpop.xlane.xlu0 %2669 }
 0x93b   : > { %3577 = vrcp.f32 %v2670_v1 }
 0x941   : > { %v3578_v0 = vpop.eup %3577 }
 0x942   : > { %v2700_v33 = vmul.f32 %v3578_v0, %v3562_v44 }
 0x943   : > { %v2676_v9 = vpop.xlane.xlu1 %2675 }
 0x944   : > { %v2708_v54 = vpack.c.bf16 %v2700_v33, %v2700_v33  ;;  %3579 = vrcp.f32 %v2676_v9 }
 0x946   : > { %3354 = vmatmul.msk.bf16.vlgmr.msra.gmra.mxu2 %vm1115_vm3, %v2708_v54 }
 0x94a   : > { %v3580_v42 = vpop.eup %3579 }
 0x94b   : > { %v2679_v52 = vpop.xlane.xlu0 %2678  ;;  %v2702_v27 = vmul.f32 %v3580_v42, %v3564_v29 }
 0x94c   : > { %3581 = vrcp.f32 %v2679_v52 }
 0x94d   : > { %v2710_v39 = vpack.c.bf16 %v2702_v27, %v2702_v27 }
 0x94f   : > { %3356 = vmatmul.msk.bf16.vlgmr.msrb.gmra.mxu0 %vm1115_vm3, %v2710_v39 }
 0x952   : > { %v3582_v6 = vpop.eup %3581 }
 0x953   : > { %v2703_v59 = vmul.f32 %v3582_v6, %v3566_v34  ;;  %v2682_v17 = vpop.xlane.xlu0 %2681 }
 0x954   : > { %3583 = vrcp.f32 %v2682_v17  ;;  %v1787_v17 = vpack.c.bf16 %v4521_v5, %v4521_v5 }
 0x955   : > { %v2711_v30 = vpack.c.bf16 %v2703_v59, %v2703_v59 }
 0x957   : > { %3357 = vmatmul.msk.bf16.vlgmr.msra.gmra.mxu1 %vm1115_vm3, %v2711_v30 }
 0x959   : > { %v2685_v44 = vpop.xlane.xlu1 %2684 }
 0x95a   : > { %v3584_v19 = vpop.eup %3583 }
 0x95b   : > { %v2691_v3 = vpop.xlane.xlu0 %2690  ;;  %v2704_v18 = vmul.f32 %v3584_v19, %v3568_v36  ;;  %v1803_v19 = vunpack.c.l.b16 %v1787_v17 }
 0x95c   : > { %3585 = vrcp.f32 %v2691_v3 }
 0x95d   : > { %v2712_v37 = vpack.c.bf16 %v2704_v18, %v2704_v18  ;;  %v1811_v18 = vpack.c.b16 %v1803_v19, %v1803_v19 }
 0x962   : > { %v3586_v12 = vpop.eup %3585 }
 0x963   : > { %v2707_v32 = vmul.f32 %v3586_v12, %v3572_v25 }
 0x965   : > { %v2715_v62 = vpack.c.bf16 %v2707_v32, %v2707_v32 }
 0x96e   : > { %v2849_v7 = vpop.permute.xlu0 %2848 }
 0x96f   : > { %v2850_v10 = vrot.slane %v2849_v7, 2 }
 0x971   : > { %v2855_v58 = vsel %vm798_vm14, %v2850_v10, 0  ;;  %v2805_v29 = vpop.permute.xlu1 %2804 }
 0x972   : > { %2864 = vmatpush.bf16.msra.mxu0 %v2855_v58  ;;  %v2806_v61 = vrot.slane %v2805_v29, 2 }
 0x974   : > { %v2811_v34 = vsel %vm798_vm14, %v2806_v61, 0 }
 0x975   : > { %2820 = vmatpush.bf16.msrb.mxu2 %v2811_v34 }
 0x976   : > { %v2871_v49 = vpop.permute.xlu0 %2870 }
 0x977   : > { %v2872_v45 = vrot.slane %v2871_v49, 2 }
 0x978   : > { %3358 = vmatmul.msk.bf16.vlgmr.msrb.gmra.mxu2 %vm1115_vm3, %v2712_v37 }
 0x979   : > { %v2877_v2 = vsel %vm798_vm14, %v2872_v45, 0 }
 0x97a   : > { %2886 = vmatpush.bf16.msrb.mxu1 %v2877_v2  ;;  %v1788_v2 = vpack.c.bf16 %v4527_v11, %v4527_v11 }
 0x97d   : > { %3361 = vmatmul.msk.bf16.vlgmr.msrb.gmra.mxu1 %vm1115_vm3, %v2715_v62 }
 0x98c   : > { %v2688_v16 = vpop.xlane.xlu2 %2687 }
 0x98d   : > { %3587 = vrcp.f32 %v2688_v16 }
 0x993   : > { %v3588_v36 = vpop.eup %3587 }
 0x994   : > { %v2706_v14 = vmul.f32 %v3588_v36, %v3574_v56  ;;  %v2673_v51 = vpop.xlane.xlu2 %2672  ;;  %v1804_v36 = vunpack.c.l.b16 %v1788_v2 }
 0x995   : > { %3589 = vrcp.f32 %v2673_v51 }
 0x996   : > { %v2714_v60 = vpack.c.bf16 %v2706_v14, %v2706_v14  ;;  %3591 = vrcp.f32 %v2685_v44  ;;  %v1812_v14 = vpack.c.b16 %v1804_v36, %v1804_v36 }
 0x998   : > { %3360 = vmatmul.msk.bf16.vlgmr.msra.gmra.mxu0 %vm1115_vm3, %v2714_v60 }
 0x99b   : > { %v3590_v47 = vpop.eup %3589 }
 0x99c   : > { %v2701_v25 = vmul.f32 %v3590_v47, %v3576_v23  ;;  %v2827_v1 = vpop.permute.xlu2 %2826  ;;  %v3592_v54 = vpop.eup %3591 }
 0x99d   : > { %v2828_v0 = vrot.slane %v2827_v1, 2  ;;  %v2705_v42 = vmul.f32 %v3592_v54, %v4701_v57 }
 0x99e   : > { %v2709_v33 = vpack.c.bf16 %v2701_v25, %v2701_v25 }
 0x99f   : > { %v2833_v9 = vsel %vm798_vm14, %v2828_v0, 0  ;;  %v2713_v56 = vpack.c.bf16 %v2705_v42, %v2705_v42 }
 0x9a0   : > { %3355 = vmatmul.msk.bf16.vlgmr.msrb.gmra.mxu3 %vm1115_vm3, %v2709_v33 }
 0x9a1   : > { %2842 = vmatpush.bf16.msra.mxu3 %v2833_v9 }
 0x9b0   : > { %3359 = vmatmul.msk.bf16.vlgmr.msra.gmra.mxu3 %vm1115_vm3, %v2713_v56 }
 0x9c9   : > { %v2734_v52 = vpop.f32.mrf.mxu2 }
 0x9ca   : > { %v2892_v27 = vpack.c.bf16 %v2734_v52, %v2734_v52 }
 0x9cc   : > { %v2908_v39 = vunpack.c.l.b16 %v2892_v27  ;;  %v2778_v6 = vpop.f32.mrf.mxu0  ;;  %v1789_v27 = vpack.c.bf16 %v4525_v31, %v4525_v31 }
 0x9cd   : > { %v2894_v23 = vpack.c.bf16 %v2778_v6, %v2778_v6 }
 0x9ce   : > { %v2916_v59 = vpack.c.b16 %v2908_v39, %v2908_v39  ;;  %v1790_v39 = vpack.c.bf16 %v4537_v50, %v4537_v50  ;;  %v2380_v50 = vpack.c.bf16 %v4664_v38, %v4664_v38  ;;  %v1275_v38 = vpack.c.bf16 %v4327_v55, %v4327_v55 }
 0x9cf   : > { %v2910_v30 = vunpack.c.l.b16 %v2894_v23 }
 0x9d0   : > { %2924 = vrot.lane.b32.xlu1 %v2916_v59, %s3665_s8  ;;  %v1806_v17 = vunpack.c.l.b16 %v1790_v39  ;;  %v1278_v39 = vpack.c.bf16 %v4350_v8, %v4350_v8 }
 0x9d1   : > { %v2918_v3 = vpack.c.b16 %v2910_v30, %v2910_v30  ;;  %v2736_v44 = vpop.f32.mrf.mxu2  ;;  %v1805_v30 = vunpack.c.l.b16 %v1789_v27 }
 0x9d2   : > { %v1791_v44 = vpack.c.bf16 %v4531_v48, %v4531_v48  ;;  %v1814_v31 = vpack.c.b16 %v1806_v17, %v1806_v17 }
 0x9d3   : > { %2928 = vrot.lane.b32.xlu0 %v2918_v3, %s3665_s8  ;;  %v1813_v3 = vpack.c.b16 %v1805_v30, %v1805_v30  ;;  %v1280_v30 = vpack.c.bf16 %v4352_v20, %v4352_v20  ;;  %v1281_v20 = vpack.c.bf16 %v4356_v22, %v4356_v22  ;;  %v1282_v22 = vpack.c.bf16 %v4361_v13, %v4361_v13 }
 0x9d4   : > { %v2800_v57 = vpop.f32.mrf.mxu1  ;;  %v2780_v7 = vpop.f32.mrf.mxu0 }
 0x9d5   : > { %v2895_v10 = vpack.c.bf16 %v2800_v57, %v2800_v57  ;;  %v1792_v57 = vpack.c.bf16 %v4533_v43, %v4533_v43  ;;  %v2383_v43 = vpack.c.bf16 %v4672_v28, %v4672_v28 }
 0x9d7   : > { %v2911_v58 = vunpack.c.l.b16 %v2895_v10  ;;  %v1807_v10 = vunpack.c.l.b16 %v1791_v44  ;;  %v1808_v19 = vunpack.c.l.b16 %v1792_v57  ;;  %v3398_v57 = vld [vmem:[%s4926_s5 + $0x8] sm:$0xff] }
 0x9d9   : > { %v2919_v29 = vpack.c.b16 %v2911_v58, %v2911_v58  ;;  %v1815_v48 = vpack.c.b16 %v1807_v10, %v1807_v10 }
 0x9db   : > { %2930 = vrot.lane.b32.xlu1 %v2919_v29, %s3665_s8  ;;  %1819 = vrot.lane.b32.xlu0 %v1811_v18, %s3665_s8  ;;  %v1816_v18 = vpack.c.b16 %v1808_v19, %v1808_v19  ;;  %v3397_v19 = vld [vmem:[%s4926_s5] sm:$0xff] }
 0x9dc   : > { %v2802_v61 = vpop.f32.mrf.mxu1 }
 0x9dd   : > { %v1793_v61 = vpack.c.bf16 %v4529_v21, %v4529_v21 }
 0x9df   : > { %v1809_v28 = vunpack.c.l.b16 %v1793_v61 }
 0x9e1   : > { %v1817_v21 = vpack.c.b16 %v1809_v28, %v1809_v28  ;;  %v4962_v28 = vld [vmem:[#allocation9_spill] sm:$0xff] }
 0x9fa   : > { %v2888_v12 = vpop.f32.mrf.mxu1 }
 0x9fb   : > { %v2822_v34 = vpop.f32.mrf.mxu2  ;;  %v2899_v9 = vpack.c.bf16 %v2888_v12, %v2888_v12 }
 0x9fc   : > { %v2896_v25 = vpack.c.bf16 %v2822_v34, %v2822_v34 }
 0x9fd   : > { %v2915_v42 = vunpack.c.l.b16 %v2899_v9 }
 0x9fe   : > { %v2912_v33 = vunpack.c.l.b16 %v2896_v25  ;;  %v1276_v25 = vpack.c.bf16 %v4348_v26, %v4348_v26  ;;  %v1279_v26 = vpack.c.bf16 %v4354_v63, %v4354_v63  ;;  %v3399_v63 = vld [vmem:[%s4926_s5 + $0x10] sm:$0xff] }
 0x9ff   : > { %v2923_v6 = vpack.c.b16 %v2915_v42, %v2915_v42  ;;  %v2385_v42 = vpack.c.bf16 %v4676_v35, %v4676_v35 }
 0xa00   : > { %v2920_v54 = vpack.c.b16 %v2912_v33, %v2912_v33 }
 0xa02   : > { %v2890_v49 = vpop.f32.mrf.mxu1 }
 0xa03   : > { %v2824_v5 = vpop.f32.mrf.mxu2 }
 0xa04   : > { %v2382_v5 = vpack.c.bf16 %v4666_v24, %v4666_v24  ;;  %v1794_v24 = vpack.c.bf16 %v4544_v41, %v4544_v41  ;;  %v2386_v41 = vpack.c.bf16 %v4674_v46, %v4674_v46  ;;  %v1277_v46 = vpack.c.bf16 %v4337_v53, %v4337_v53  ;;  %v3400_v53 = vld [vmem:[%s4926_s5 + $0x18] sm:$0xff] }
 0xa05   : > { %v3084_v27 = vsel %vm330_vm0, %v3400_v53, 0 }
 0xa06   : > { %3090 = vmatpush.bf16.xpose.msra.mxu2 %v3084_v27 }
 0xa15   : > { %v2866_v37 = vpop.f32.mrf.mxu0 }
 0xa16   : > { %v2898_v32 = vpack.c.bf16 %v2866_v37, %v2866_v37 }
 0xa18   : > { %v2914_v45 = vunpack.c.l.b16 %v2898_v32  ;;  %v2381_v32 = vpack.c.bf16 %v4668_v15, %v4668_v15  ;;  %v2387_v15 = vpack.c.bf16 %v4678_v40, %v4678_v40 }
 0xa1a   : > { %v2922_v62 = vpack.c.b16 %v2914_v45, %v2914_v45 }
 0xa1c   : > { %2936 = vrot.lane.b32.xlu1 %v2922_v62, %s3665_s8  ;;  %v1810_v62 = vunpack.c.l.b16 %v1794_v24  ;;  %v4963_v24 = vld [vmem:[#allocation12_spill] sm:$0xff] }
 0xa1d   : > { %v2868_v16 = vpop.f32.mrf.mxu0 }
 0xa1e   : > { %v2384_v16 = vpack.c.bf16 %v4670_v4, %v4670_v4  ;;  %v1818_v36 = vpack.c.b16 %v1810_v62, %v1810_v62 }
 0xa23   : > { %v2756_v51 = vpop.f32.mrf.mxu3 }
 0xa24   : > { %v2893_v60 = vpack.c.bf16 %v2756_v51, %v2756_v51  ;;  %1821 = vrot.lane.b32.xlu1 %v1812_v14, %s3665_s8 }
 0xa26   : > { %v2909_v47 = vunpack.c.l.b16 %v2893_v60 }
 0xa28   : > { %v2917_v1 = vpack.c.b16 %v2909_v47, %v2909_v47 }
 0xa2a   : > { %2926 = vrot.lane.b32.xlu2 %v2917_v1, %s3665_s8 }
 0xa2b   : > { %v2758_v0 = vpop.f32.mrf.mxu3 }
 0xa32   : > { %2932 = vrot.lane.b32.xlu2 %v2920_v54, %s3665_s8 }
 0xa33   : > { %v2844_v11 = vpop.f32.mrf.mxu3 }
 0xa34   : > { %v2897_v56 = vpack.c.bf16 %v2844_v11, %v2844_v11 }
 0xa36   : > { %v2913_v52 = vunpack.c.l.b16 %v2897_v56 }
 0xa38   : > { %v2921_v23 = vpack.c.b16 %v2913_v52, %v2913_v52 }
 0xa3a   : > { %2934 = vrot.lane.b32.xlu0 %v2921_v23, %s3665_s8  ;;  %2938 = vrot.lane.b32.xlu2 %v2923_v6, %s3665_s8  ;;  %v3081_v23 = vsel %vm330_vm0, %v3399_v63, 0 }
 0xa3b   : > { %v2846_v59 = vpop.f32.mrf.mxu3  ;;  %3091 = vmatpush.bf16.xpose.msra.mxu2 %v3081_v23 }
 0xa42   : > { %1825 = vrot.lane.b32.xlu0 %v1814_v31, %s3665_s8  ;;  %1823 = vrot.lane.b32.xlu2 %v1813_v3, %s3665_s8  ;;  %v2925_v7 = vpop.permute.xlu1 %2924  ;;  %v3078_v31 = vsel %vm330_vm0, %v3398_v57, 0 }
 0xa43   : > { %v2942_v58 = vsel %vm833_vm1, %v2380_v50, %v2925_v7  ;;  %3092 = vmatpush.bf16.xpose.msra.mxu2 %v3078_v31 }
 0xa44   : > { %2972 = vrot.lane.b32.xlu1 %v2942_v58, %s3663_s23 }
 0xa45   : > { %v2929_v29 = vpop.permute.xlu0 %2928 }
 0xa46   : > { %v2948_v55 = vsel %vm833_vm1, %v2382_v5, %v2929_v29  ;;  %v3075_v29 = vsel %vm330_vm0, %v3397_v19, 0 }
 0xa4a   : > { %1829 = vrot.lane.b32.xlu0 %v1816_v18, %s3665_s8  ;;  %1827 = vrot.lane.b32.xlu2 %v1815_v48, %s3665_s8  ;;  %v4959_v18 = vld [vmem:[#allocation10_spill] sm:$0xff] }
 0xa4b   : > { %3093 = vmatpush.bf16.xpose.msra.mxu2 %v3075_v29 }
 0xa4d   : > { %v2931_v12 = vpop.permute.xlu1 %2930  ;;  %v1820_v49 = vpop.permute.xlu0 %1819 }
 0xa4e   : > { %v2951_v34 = vsel %vm833_vm1, %v2383_v43, %v2931_v12  ;;  %v1837_v37 = vsel %vm833_vm1, %v1275_v38, %v1820_v49 }
 0xa4f   : > { %2978 = vrot.lane.b32.xlu1 %v2951_v34, %s3663_s23  ;;  %1868 = vst.msk [vmem:[#allocation2] sm:$0x3] %vm1867_vm4, %v1837_v37  ;;  %v4960_v34 = vld [vmem:[#allocation11_spill] sm:$0xff]  ;;  %v4961_v37 = vld [vmem:[#allocation8_spill] sm:$0xff] }
 0xa52   : > { %2976 = vrot.lane.b32.xlu0 %v2948_v55, %s3663_s23 }
 0xa57   : > { %1831 = vrot.lane.b32.xlu1 %v1817_v21, %s3665_s8 }
 0xa84   : > { %v2927_v45 = vpop.permute.xlu2 %2926 }
 0xa85   : > { %v2945_v2 = vsel %vm833_vm1, %v2381_v32, %v2927_v45 }
 0xa86   : > { %2974 = vrot.lane.b32.xlu2 %v2945_v2, %s3663_s23 }
 0xa8c   : > { %v2933_v14 = vpop.permute.xlu2 %2932 }
 0xa8d   : > { %v2954_v51 = vsel %vm833_vm1, %v2384_v16, %v2933_v14  ;;  %v4964_v16 = vld [vmem:[#allocation13_spill] sm:$0xff]  ;;  %v4965_v14 = vld [vmem:[#allocation6_spill] sm:$0xff] }
 0xa8e   : > { %v2937_v60 = vpop.permute.xlu1 %2936  ;;  %1833 = vrot.lane.b32.xlu2 %v1818_v36, %s3665_s8  ;;  %2980 = vrot.lane.b32.xlu0 %v2954_v51, %s3663_s23  ;;  %v4966_v51 = vld [vmem:[#allocation7_spill] sm:$0xff]  ;;  %s3243_s8 = sshll.u32 %s270_s29, 4 }
 0xa8f   : > { %v2960_v4 = vsel %vm833_vm1, %v2386_v41, %v2937_v60  ;;  %v3454_v60 = vld [vmem:[%s4927_s6] ss:$0 sm:$0xff]  ;;  %s4867_s9 = scalar_lea.vmem [#allocation3], %s3243_s8  ;;  %s3613_s8 = scalar_lea.hbm %s4928_s7, 64 }
 0xa90   : > { %s3174_s17 = sshll.u32 %s4867_s9, 4  ;;  %p3615_p1 = scmp.lt.s32.totalorder %s3613_s8, %s3609_s20  ;;  %s3175_s17 = int_to_ptr.vmem [resolvable:$true] %s3174_s17 }
 0xa92   : > { %p3616_p2 = por %p3615_p1, %p3614_p0 }
 0xa94   : > { %v2939_v47 = vpop.permute.xlu2 %2938  ;;  %p3617_p3 = pnand %p3616_p2, %p3612_p13 }
 0xa95   : > { %v2963_v1 = vsel %vm833_vm1, %v2387_v15, %v2939_v47 }
 0xa96   : > { %v1822_v0 = vpop.permute.xlu1 %1821  ;;  %2984 = vrot.lane.b32.xlu2 %v2960_v4, %s3663_s23  ;;  %2986 = vrot.lane.b32.xlu0 %v2963_v1, %s3663_s23 }
 0xa97   : > { %v1841_v33 = vsel %vm833_vm1, %v1276_v25, %v1822_v0 }
 0xa98   : > { %1869 = vst.msk [vmem:[#allocation2 + $0x2] sm:$0x3] %vm1867_vm4, %v1841_v33 }
 0xa9c   : > { %v1824_v40 = vpop.permute.xlu2 %1823 }
 0xa9d   : > { %v1845_v9 = vsel %vm833_vm1, %v1277_v46, %v1824_v40 }
 0xa9e   : > { %1870 = vst.msk [vmem:[#allocation2 + $0x4] sm:$0x3] %vm1867_vm4, %v1845_v9 }
 0xaa4   : > { %v1828_v54 = vpop.permute.xlu2 %1827 }
 0xaa5   : > { %v1853_v11 = vsel %vm833_vm1, %v1279_v26, %v1828_v54 }
 0xaa6   : > { %1872 = vst.msk [vmem:[#allocation2 + $0x8] sm:$0x3] %vm1867_vm4, %v1853_v11 }
 0xaac   : > { %v2935_v56 = vpop.permute.xlu0 %2934 }
 0xaad   : > { %v2957_v52 = vsel %vm833_vm1, %v2385_v42, %v2935_v56 }
 0xaae   : > { %2982 = vrot.lane.b32.xlu1 %v2957_v52, %s3663_s23 }
 0xab4   : > { %v1826_v35 = vpop.permute.xlu0 %1825 }
 0xab5   : > { %v1849_v6 = vsel %vm833_vm1, %v1278_v39, %v1826_v35 }
 0xab6   : > { %1871 = vst.msk [vmem:[#allocation2 + $0x6] sm:$0x3] %vm1867_vm4, %v1849_v6  ;;  %v2973_v59 = vpop.permute.xlu1 %2972 }
 0xab7   : > { %2997 = vst.msk [vmem:[#allocation2] sm:$0x3] %vm2996_vm5, %v2973_v59 }
 0xabc   : > { %v1830_v17 = vpop.permute.xlu0 %1829 }
 0xabd   : > { %v1857_v3 = vsel %vm833_vm1, %v1280_v30, %v1830_v17 }
 0xabe   : > { %1873 = vst.msk [vmem:[#allocation2 + $0xa] sm:$0x3] %vm1867_vm4, %v1857_v3  ;;  %v3005_v8 = vld [vmem:[#allocation2] sm:$0x3] }
 0xabf   : > { %3026 = vst [vmem:[#allocation1] ss:$4 sm:$0xff] %v3005_v8 }
 0xac1   : > { %v2979_v44 = vpop.permute.xlu1 %2978 }
 0xac2   : > { %3000 = vst.msk [vmem:[#allocation2 + $0x6] sm:$0x3] %vm2996_vm5, %v2979_v44 }
 0xac4   : > { %v2977_v50 = vpop.permute.xlu0 %2976 }
 0xac5   : > { %2999 = vst.msk [vmem:[#allocation2 + $0x4] sm:$0x3] %vm2996_vm5, %v2977_v50 }
 0xac9   : > { %v3008_v7 = vld [vmem:[#allocation2 + $0x6] sm:$0x3]  ;;  %v1832_v10 = vpop.permute.xlu1 %1831 }
 0xaca   : > { %3035 = vst [vmem:[#allocation1 + $0x3] ss:$4 sm:$0xff] %v3008_v7  ;;  %v1861_v58 = vsel %vm833_vm1, %v1281_v20, %v1832_v10 }
 0xacb   : > { %1874 = vst.msk [vmem:[#allocation2 + $0xc] sm:$0x3] %vm1867_vm4, %v1861_v58 }
 0xacc   : > { %v3007_v48 = vld [vmem:[#allocation2 + $0x4] sm:$0x3] }
 0xacd   : > { %3032 = vst [vmem:[#allocation1 + $0x2] ss:$4 sm:$0xff] %v3007_v48 }
 0xace   : > { %3109 = vst [vmem:[#allocation1 + $0x10] ss:$2 sm:$0xff] %v4959_v18 }
 0xae0   : > { %v2975_v43 = vpop.permute.xlu2 %2974 }
 0xae1   : > { %2998 = vst.msk [vmem:[#allocation2 + $0x2] sm:$0x3] %vm2996_vm5, %v2975_v43 }
 0xae8   : > { %v3006_v38 = vld [vmem:[#allocation2 + $0x2] sm:$0x3]  ;;  %v1834_v61 = vpop.permute.xlu2 %1833 }
 0xae9   : > { %3029 = vst [vmem:[#allocation1 + $0x1] ss:$4 sm:$0xff] %v3006_v38  ;;  %v1865_v12 = vsel %vm833_vm1, %v1282_v22, %v1834_v61 }
 0xaea   : > { %3111 = vst [vmem:[#allocation1 + $0x11] ss:$2 sm:$0xff] %v4960_v34 }
 0xaeb   : > { %1875 = vst.msk [vmem:[#allocation2 + $0xe] sm:$0x3] %vm1867_vm4, %v1865_v12 }
 0xaf0   : > { %v2985_v49 = vpop.permute.xlu2 %2984  ;;  %v3048_v5 = vld.sshfl [vmem:[#allocation1] sm:$0xff pattern:$0x73625140] }
 0xaf1   : > { %3003 = vst.msk [vmem:[#allocation2 + $0xc] sm:$0x3] %vm2996_vm5, %v2985_v49  ;;  %3378 = vmatmul.msk.bf16.vlgmr.msra.gmra.mxu2 %vm330_vm0, %v3048_v5  ;;  %v3121_v46 = vld.sshfl [vmem:[#allocation1 + $0x10] sm:$0xff pattern:$0x75316420] }
 0xaf2   : > { %3105 = vst [vmem:[#allocation1] ss:$2 sm:$0xff] %v4961_v37 }
 0xaf3   : > { %3107 = vst [vmem:[#allocation1 + $0x1] ss:$2 sm:$0xff] %v4962_v28 }
 0xaf8   : > { %v3011_v13 = vld [vmem:[#allocation2 + $0xc] sm:$0x3] }
 0xaf9   : > { %3044 = vst [vmem:[#allocation1 + $0x22] ss:$4 sm:$0xff] %v3011_v13 }
 0xafa   : > { %v3120_v15 = vld.sshfl [vmem:[#allocation1] sm:$0xff pattern:$0x75316420] }
 0xb00   : > { %v2981_v55 = vpop.permute.xlu0 %2980 }
 0xb01   : > { %3001 = vst.msk [vmem:[#allocation2 + $0x8] sm:$0x3] %vm2996_vm5, %v2981_v55 }
 0xb08   : > { %v3009_v21 = vld [vmem:[#allocation2 + $0x8] sm:$0x3]  ;;  %v2987_v32 = vpop.permute.xlu0 %2986 }
 0xb09   : > { %3038 = vst [vmem:[#allocation1 + $0x20] ss:$4 sm:$0xff] %v3009_v21 }
 0xb0a   : > { %3004 = vst.msk [vmem:[#allocation2 + $0xe] sm:$0x3] %vm2996_vm5, %v2987_v32 }
 0xb0b   : > { %3117 = vst [vmem:[#allocation1 + $0x30] ss:$2 sm:$0xff] %v4963_v24 }
 0xb11   : > { %v3012_v45 = vld [vmem:[#allocation2 + $0xe] sm:$0x3] }
 0xb12   : > { %3047 = vst [vmem:[#allocation1 + $0x23] ss:$4 sm:$0xff] %v3012_v45 }
 0xb20   : > { %v2983_v2 = vpop.permute.xlu1 %2982 }
 0xb21   : > { %3002 = vst.msk [vmem:[#allocation2 + $0xa] sm:$0x3] %vm2996_vm5, %v2983_v2 }
 0xb28   : > { %v3010_v62 = vld [vmem:[#allocation2 + $0xa] sm:$0x3] }
 0xb29   : > { %3041 = vst [vmem:[#allocation1 + $0x21] ss:$4 sm:$0xff] %v3010_v62 }
 0xb2a   : > { %3119 = vst [vmem:[#allocation1 + $0x31] ss:$2 sm:$0xff] %v4964_v16 }
 0xb30   : > { %v3049_v36 = vld.sshfl [vmem:[#allocation1 + $0x20] sm:$0xff pattern:$0x73625140] }
 0xb31   : > { %3379 = vmatmul.msk.bf16.gmra.mxu2 %vm330_vm0, %v3049_v36  ;;  %3113 = vst [vmem:[#allocation1 + $0x20] ss:$2 sm:$0xff] %v4965_v14  ;;  %v3123_v6 = vld.sshfl [vmem:[#allocation1 + $0x30] sm:$0xff pattern:$0x75316420] }
 0xb32   : > { %3115 = vst [vmem:[#allocation1 + $0x21] ss:$2 sm:$0xff] %v4966_v51 }
 0xb39   : > { %v3122_v56 = vld.sshfl [vmem:[#allocation1 + $0x20] sm:$0xff pattern:$0x75316420] }
 0xb74   : > { %v3095_v41 = vpop.f32.mrf.mxu2 }
 0xb75   : > { %v3096_v47 = vadd.f32 %v3454_v60, %v3095_v41 }
 0xb77   : > { %v3128_v25 = vadd.f32 %v3120_v15, %v3096_v47 }
 0xb79   : > { %v3136_v4 = vrot.slane %v3128_v25, 4  ;;  %v3144_v1 = vpack.c.bf16 %v3128_v25, %v3128_v25 }
 0xb7b   : > { %v3145_v0 = vpack.c.bf16 %v3136_v4, %v3136_v4  ;;  %3153 = vst.msk [vmem:[%s4867_s9] sm:$0x3] %vm3152_vm6, %v3144_v1 }
 0xb7c   : > { %v3097_v33 = vpop.f32.mrf.mxu2 }
 0xb7d   : > { %3154 = vst.msk [vmem:[%s4867_s9 + $0x2] sm:$0x3] %vm3152_vm6, %v3145_v0  ;;  %v3098_v40 = vadd.f32 %v3454_v60, %v3097_v33 }
 0xb7f   : > { %v3129_v9 = vadd.f32 %v3121_v46, %v3098_v40 }
 0xb81   : > { %v3137_v26 = vrot.slane %v3129_v9, 4  ;;  %v3146_v54 = vpack.c.bf16 %v3129_v9, %v3129_v9 }
 0xb83   : > { %v3147_v11 = vpack.c.bf16 %v3137_v26, %v3137_v26  ;;  %3155 = vst.msk [vmem:[%s4867_s9 + $0x4] sm:$0x3] %vm3152_vm6, %v3146_v54 }
 0xb85   : > { %3156 = vst.msk [vmem:[%s4867_s9 + $0x6] sm:$0x3] %vm3152_vm6, %v3147_v11 }
 0xbb4   : > { %v3100_v42 = vpop.f32.mrf.mxu2 }
 0xbb5   : > { %v3101_v52 = vadd.f32 %v3454_v60, %v3100_v42 }
 0xbb7   : > { %v3130_v53 = vadd.f32 %v3122_v56, %v3101_v52 }
 0xbb9   : > { %v3138_v27 = vrot.slane %v3130_v53, 4  ;;  %v3148_v63 = vpack.c.bf16 %v3130_v53, %v3130_v53 }
 0xbbb   : > { %v3149_v39 = vpack.c.bf16 %v3138_v27, %v3138_v27  ;;  %3157 = vst.msk [vmem:[%s4867_s9 + $0x8] sm:$0x3] %vm3152_vm6, %v3148_v63 }
 0xbbc   : > { %v3102_v35 = vpop.f32.mrf.mxu2 }
 0xbbd   : > { %3158 = vst.msk [vmem:[%s4867_s9 + $0xa] sm:$0x3] %vm3152_vm6, %v3149_v39  ;;  %v3103_v23 = vadd.f32 %v3454_v60, %v3102_v35 }
 0xbbf   : > { %v3131_v59 = vadd.f32 %v3123_v6, %v3103_v23 }
 0xbc1   : > { %v3139_v30 = vrot.slane %v3131_v59, 4  ;;  %v3150_v17 = vpack.c.bf16 %v3131_v59, %v3131_v59 }
 0xbc3   : > { %v3151_v3 = vpack.c.bf16 %v3139_v30, %v3139_v30  ;;  %3159 = vst.msk [vmem:[%s4867_s9 + $0xc] sm:$0x3] %vm3152_vm6, %v3150_v17 }
 0xbc5   : > { %3160 = vst.msk [vmem:[%s4867_s9 + $0xe] sm:$0x3] %vm3152_vm6, %v3151_v3 }
 0xbc6   : > { %3620 = shalt.err (!%p3617_p3)
}
 0xbc7   : > { %s3667_s29 = smov 2  }
 0xbc8   : > { %3402 = dma.vmem_to_hbm [thread:$0]  (%p3746_p5), %s3175_s17, 256, %s3177_s18, %s3162_s28, %s3663_s23, %s3663_s23, %s3667_s29  }
 0xbc9 PF: > { %p3408_p4 = scmp.ge.s32.totalorder %s3655_s27, 2  ;;  %s3191_s9 = sand.u32 1, %s3643_s24  }
 0xbca   : > { %s3192_s15 = scalar_lea.sflag [#allocation4], %s3191_s9 }
 0xbcb   : > { %p3405_p7 = pnand %p3408_p4, %p3750_p6 }
 0xbcd   : > { %p3406_p8 = pneg %p3405_p7 }
 0xbcf   : > { %3638 = dma.done.wait (%p3406_p8), %s3192_s15, 256  }
 0xbd0   : > { %3640 = vsyncadd (%p3406_p8), %s3192_s15, 4294967040  ;;  %p17_p9 = scmp.ge.s32.totalorder %s3733_s30, 6   ;;  %s4967_s24 = smov %s3647_s25 }
 0xbd1   : > { %s4968_s25 = smov %s3651_s26  ;;  %s4969_s26 = smov %s3744_s10 }
 0xbd2   : > { %s4970_s27 = smov %s3733_s30  ;;  %19 = sbr.rel (!%p17_p9) target bundleno = 3 (0x3), region = 118 }
 0xbd7   :  { %3198 = vsyncpa [#allocation4], 1 }
 0xbd8   :  { %3200 = vsyncpa [#allocation4 + $0x1], 1 }

</bundles_post_ra>
